<compile_context>
chip_gen: v6e
topology: v6e:2x2x1
jax: 0.10.0
libtpu: 0.0.40
codegen_flags: <defaults>
</compile_context>

<pallas_src>
import functools

import jax
import jax.numpy as jnp
from jax import lax
from jax.experimental import pallas as pl
from jax.experimental.pallas import tpu as pltpu
from jax.scipy.special import gammaln


# ----------------------------- helpers -------------------------------------
def _round_up(x, m):
    return ((x + m - 1) // m) * m


@functools.lru_cache(maxsize=None)
def _vmem_capacity_bytes():
    try:
        info = pltpu.get_tpu_info()
        cap = getattr(info, "vmem_capacity_bytes", None)
        if cap:
            return int(cap)
    except Exception:
        pass
    return 64 * 1024 * 1024  # conservative fallback (v7x per-TC figure)


@functools.lru_cache(maxsize=None)
def _vmem_limit_bytes():
    # Generation-aware scoped-VMEM budget: ~3/4 of physical, capped at 96 MiB
    # (v7x -> ~48 MiB, v5e/v6e -> 96 MiB).
    return int(min(_vmem_capacity_bytes() * 3 // 4, 96 * 1024 * 1024))


def _pick_class_tile(c, f_pad, budget_bytes):
    """Largest divisor of c whose bf16 [F_pad, tile*F_pad] Sinv slab fits the budget."""
    per_class = f_pad * f_pad * 2  # bf16
    max_tile = max(1, budget_bytes // per_class)
    for t in range(min(c, max_tile), 0, -1):
        if c % t == 0:
            return t
    return 1


def _pick_backbone_k_tile(d_in, f, budget_bytes):
    """Keep the whole bf16 weight resident if it fits (double-buffered);
    otherwise pick a 128-multiple K tile that divides the padded d_in."""
    if 2 * d_in * f * 2 <= budget_bytes:
        return d_in, d_in
    d_pad = _round_up(d_in, 128)
    units = d_pad // 128
    max_units = max(1, (budget_bytes // (2 * f * 2)) // 128)
    t_units = max(1, min(units, max_units))
    while units % t_units != 0:
        t_units -= 1
    return t_units * 128, d_pad


# --------------------------- backbone kernel --------------------------------
def backbone_kernel(x_ref, w_ref, b_ref, o_ref, acc_ref):
    k = pl.program_id(1)

    @pl.when(k == 0)
    def _():
        acc_ref[...] = jnp.zeros_like(acc_ref)

    acc_ref[...] += jnp.dot(x_ref[...], w_ref[...], preferred_element_type=jnp.float32)

    @pl.when(k == pl.num_programs(1) - 1)
    def _():
        o_ref[...] = jnp.maximum(acc_ref[...] + b_ref[...], 0.0)


def backbone_forward(x2d, w, b, *, tile_m=512):
    n, d_in = x2d.shape
    f = w.shape[1]
    vlim = _vmem_limit_bytes()
    tk, d_pad = _pick_backbone_k_tile(d_in, f, vlim // 4)

    tm = min(tile_m, _round_up(n, 8))
    # keep the double-buffered row tile within ~1/4 of the VMEM budget
    max_tm = max(8, ((vlim // 4) // max(1, 2 * tk * 2)) // 8 * 8)
    tm = max(8, min(tm, max_tm))
    n_pad = _round_up(n, tm)

    x_pad = jnp.zeros((n_pad, d_pad), jnp.bfloat16).at[:n, :d_in].set(x2d.astype(jnp.bfloat16))
    w_pad = jnp.zeros((d_pad, f), jnp.bfloat16).at[:d_in].set(w.astype(jnp.bfloat16))
    b_f32 = b.astype(jnp.float32).reshape(1, f)

    flops = 2 * n_pad * d_pad * f
    bytes_accessed = n_pad * d_pad * 2 + d_pad * f * 2 + f * 4 + n_pad * f * 4
    out = pl.pallas_call(
        backbone_kernel,
        grid=(n_pad // tm, d_pad // tk),
        in_specs=[pl.BlockSpec((tm, tk), lambda i, k: (i, k)),   # row tile (pipelined)
                  pl.BlockSpec((tk, f), lambda i, k: (k, 0)),    # weight K tile
                  pl.BlockSpec((1, f), lambda i, k: (0, 0))],    # bias resident
        out_specs=pl.BlockSpec((tm, f), lambda i, k: (i, 0)),
        out_shape=jax.ShapeDtypeStruct((n_pad, f), jnp.float32),
        scratch_shapes=[pltpu.VMEM((tm, f), jnp.float32)],
        compiler_params=pltpu.CompilerParams(
            dimension_semantics=("parallel", "arbitrary"),
            vmem_limit_bytes=vlim),
        cost_estimate=pl.CostEstimate(flops=flops, transcendentals=0,
                                      bytes_accessed=bytes_accessed),
    )(x_pad, w_pad, b_f32)
    return out[:n]


# ------------------------------ fit kernel ----------------------------------
def fit_kernel(lab_ref, x_ref, m_ref, prior_ref, scal_ref, sigma_ref, mu_ref, *, feat_dim):
    j = pl.program_id(0)                              # class id = grid index
    kappa = scal_ref[0]                               # SMEM scalar reads
    nu = scal_ref[1]
    fd = jnp.float32(feat_dim)

    X = x_ref[...]                                    # [Ns, F]
    mask = (lab_ref[...] == j).astype(jnp.float32)    # [Ns, 1] class membership
    n_j = jnp.sum(mask)
    n_safe = jnp.maximum(n_j, 1.0)                    # guard empty class (mean)

    xm = X * mask
    # sum_outer(X_j) = X_j^T X_j, contracted on axis 0 (no explicit transpose).
    # TODO(synk): for many-way / many-shot episodes a scalar-prefetch grouped
    # formulation (sorted rows + per-class offsets) avoids the C-fold redundancy.
    s_j = lax.dot_general(xm, X, dimension_numbers=(((0,), (0,)), ((), ())),
                          preferred_element_type=jnp.float32)            # [F, F]
    mean_j = jnp.sum(xm, axis=0, keepdims=True) / n_safe                  # [1, F]

    denom = kappa + n_j
    mu_j = (kappa / denom) * m_ref[...] + (n_j / denom) * mean_j          # [1, F]
    mu_outer = lax.dot_general(mu_j, mu_j,
                               dimension_numbers=(((0,), (0,)), ((), ())),
                               preferred_element_type=jnp.float32)        # [F, F]

    # prior_ref already holds the hoisted L L^T + kappa m^T m term.
    sigma_ns = prior_ref[...] + s_j - denom * mu_outer
    # empty-class guard: the reference never fits absent classes; floor the
    # denominator so absent classes stay finite instead of exploding to inf.
    nu_n = jnp.where(n_j > 0.5, nu + n_j - fd + 1.0, 1.0)
    scale = (denom + 1.0) / (nu_n * denom)
    sigma_ref[0] = sigma_ns * scale
    mu_ref[0] = mu_j


def fit_call(X, labels_int, m, prior, scalars, num_classes):
    ns, f = X.shape
    c = num_classes
    kernel = functools.partial(fit_kernel, feat_dim=f)
    flops = c * (2 * ns * f * f + 2 * f * f)
    bytes_accessed = (ns * f + f * f + f + c * f * f + c * f) * 4 + ns * 4
    sigma, mu = pl.pallas_call(
        kernel,
        grid=(c,),                                                    # one class per step
        in_specs=[pl.BlockSpec((ns, 1), lambda j: (0, 0)),            # int labels
                  pl.BlockSpec((ns, f), lambda j: (0, 0)),            # support features
                  pl.BlockSpec((1, f), lambda j: (0, 0)),             # prior mean m
                  pl.BlockSpec((f, f), lambda j: (0, 0)),             # L L^T + kappa m^T m
                  pl.BlockSpec(memory_space=pltpu.MemorySpace.SMEM)], # [kappa_, nu_]
        out_specs=[pl.BlockSpec((1, f, f), lambda j: (j, 0, 0)),      # sigma_j block
                   pl.BlockSpec((1, 1, f), lambda j: (j, 0, 0))],     # mu_j block
        out_shape=(jax.ShapeDtypeStruct((c, f, f), jnp.float32),
                   jax.ShapeDtypeStruct((c, 1, f), jnp.float32)),
        compiler_params=pltpu.CompilerParams(
            dimension_semantics=("parallel",),
            vmem_limit_bytes=_vmem_limit_bytes()),
        cost_estimate=pl.CostEstimate(flops=flops, transcendentals=0,
                                      bytes_accessed=bytes_accessed),
    )(labels_int, X, m, prior, scalars)
    return sigma, mu.reshape(c, f)


# ---------------------------- predict kernel --------------------------------
def predict_kernel(q_ref, sw_ref, smu_ref, mc_ref, bias_ref, common_ref, o_ref,
                   *, feat_dim, c_tile, f_pad):
    fd = jnp.float32(feat_dim)
    Qf = q_ref[...]                                                     # [TQ, F_pad] f32
    tq = Qf.shape[0]
    # One wide bf16 MXU matmul over every class in the tile: [TQ,F_pad]x[F_pad,Ct*F_pad].
    t = jnp.dot(Qf.astype(jnp.bfloat16), sw_ref[...],
                preferred_element_type=jnp.float32)                     # [TQ, Ct*F_pad]
    # Per-class quadratic form q^T Sinv q via reshape + lane reduce (no selector matmul,
    # no q_rep intermediate).
    quad = jnp.sum(t.reshape(tq, c_tile, f_pad) * Qf[:, None, :], axis=-1)   # [TQ, Ct]
    # Cross term q^T Sinv mu via Q @ (Sinv mu)^T (no transpose materialized).
    cross = lax.dot_general(Qf, smu_ref[0],
                            dimension_numbers=(((1,), (1,)), ((), ())),
                            preferred_element_type=jnp.float32)         # [TQ, Ct]
    dist = jnp.maximum(quad - 2.0 * cross + mc_ref[0], 0.0)             # clamp (numerics)
    common = common_ref[0]                                              # [1, Ct]
    o_ref[0] = bias_ref[0] - 0.5 * (common + fd) * jnp.log(1.0 + dist / common)


def predict_call(Q, sigma_inv, mu, bias, common):
    nq, f = Q.shape
    c = mu.shape[0]
    f_pad = _round_up(f, 128)           # lane-dense contraction dim (zero-pad is exact)
    vlim = _vmem_limit_bytes()

    c_tile = _pick_class_tile(c, f_pad, vlim // 8)
    tq = min(128, _round_up(nq, 8))
    nq_pad = _round_up(nq, tq)
    # give both TensorCores (v7x) work when the grid would otherwise be a single step
    if c // c_tile == 1 and nq_pad // tq == 1 and c_tile % 2 == 0:
        c_tile //= 2
    num_c = c // c_tile

    q_pad = jnp.zeros((nq_pad, f_pad), jnp.float32).at[:nq, :f].set(Q.astype(jnp.float32))
    sinv_pad = jnp.zeros((c, f_pad, f_pad), jnp.float32).at[:, :f, :f].set(sigma_inv)
    # Class-major wide bf16 layout: one lane-dense MXU operand [F_pad, C*F_pad].
    sinv_wide = jnp.transpose(sinv_pad, (1, 0, 2)).reshape(f_pad, c * f_pad).astype(jnp.bfloat16)

    smu = jnp.einsum('cgh,ch->cg', sigma_inv, mu)                       # Sinv @ mu  [C, F]
    mconst = jnp.einsum('cg,cg->c', smu, mu)                            # mu^T Sinv mu [C]
    smu3 = jnp.zeros((c, f_pad), jnp.float32).at[:, :f].set(smu).reshape(num_c, c_tile, f_pad)
    mc3 = mconst.reshape(num_c, 1, c_tile)
    bias3 = bias.reshape(num_c, 1, c_tile)
    common3 = common.reshape(num_c, 1, c_tile)

    kernel = functools.partial(predict_kernel, feat_dim=f, c_tile=c_tile, f_pad=f_pad)
    flops = 2 * nq_pad * f_pad * c * f_pad + 4 * nq_pad * c * f_pad
    bytes_accessed = (nq_pad * f_pad * 4 + c * f_pad * f_pad * 2
                      + c * f_pad * 4 + 3 * c * 4 + num_c * nq_pad * c_tile * 4)
    out3 = pl.pallas_call(
        kernel,
        # Class axis is the OUTER (slow) grid axis: the heavy Sinv slab is DMA'd
        # once per class tile and stays resident while query tiles stream inner.
        grid=(num_c, nq_pad // tq),
        in_specs=[pl.BlockSpec((tq, f_pad), lambda j, i: (i, 0)),             # query tile
                  pl.BlockSpec((f_pad, c_tile * f_pad), lambda j, i: (0, j)), # Sinv slab (bf16)
                  pl.BlockSpec((1, c_tile, f_pad), lambda j, i: (j, 0, 0)),   # Sinv @ mu
                  pl.BlockSpec((1, 1, c_tile), lambda j, i: (j, 0, 0)),       # mu^T Sinv mu
                  pl.BlockSpec((1, 1, c_tile), lambda j, i: (j, 0, 0)),       # bias
                  pl.BlockSpec((1, 1, c_tile), lambda j, i: (j, 0, 0))],      # common
        out_specs=pl.BlockSpec((1, tq, c_tile), lambda j, i: (j, i, 0)),
        out_shape=jax.ShapeDtypeStruct((num_c, nq_pad, c_tile), jnp.float32),
        compiler_params=pltpu.CompilerParams(
            dimension_semantics=("parallel", "parallel"),
            vmem_limit_bytes=vlim),
        cost_estimate=pl.CostEstimate(flops=flops, transcendentals=nq_pad * c,
                                      bytes_accessed=bytes_accessed),
    )(q_pad, sinv_wide, smu3, mc3, bias3, common3)

    logits = jnp.transpose(out3, (1, 0, 2)).reshape(nq_pad, c)
    return logits[:nq]


# ------------------------------ MetaQDA (FB) --------------------------------
def metaqda_forward(train_imgs, train_labels, query_imgs, params, reg_param=0.5):
    """Equivalent of MetaQDA.forward with variant='FB'."""
    n_sup = train_imgs.shape[0]
    n_qry = query_imgs.shape[0]

    # Single backbone launch for support + query (weights DMA'd once).
    all_x = jnp.concatenate([train_imgs.reshape(n_sup, -1),
                             query_imgs.reshape(n_qry, -1)], axis=0)
    feats = backbone_forward(all_x, params['backbone_w'], params['backbone_b'])
    support_feats = feats[:n_sup]
    query_feats = feats[n_sup:n_sup + n_qry]

    f = support_feats.shape[1]
    c = train_labels.shape[1]

    # Parameter preprocessing (matches MetaQDA_FB.fit_image_label).
    kappa_ = jnp.abs(params['kappa']).astype(jnp.float32) + 1e-6
    nu_ = jnp.maximum(params['nu'].astype(jnp.float32), jnp.float32(f - 1 + 1e-6))
    strict_lower = jnp.tril(jnp.ones((f, f), jnp.float32), k=-1)
    lower_triu = (jnp.diag(jnp.abs(params['triu_diag'])).astype(jnp.float32)
                  + params['triu_lower'].astype(jnp.float32) * strict_lower)
    m = params['m'].astype(jnp.float32).reshape(1, f)

    # Class-invariant prior L L^T + kappa m^T m: tiny FxF matmul, plain JAX
    # (no dedicated kernel launch / HBM round trip for a parameter-sized op).
    prior = lower_triu @ lower_triu.T + kappa_ * (m.T @ m)

    scalars = jnp.stack([kappa_, nu_]).astype(jnp.float32)   # SMEM scalar operand
    labels_int = jnp.argmax(train_labels, axis=1).astype(jnp.int32)[:, None]

    # Per-class mu_j / sigma_j, one class per (parallel) grid step.
    sigma, mu = fit_call(support_feats, labels_int, m, prior, scalars, c)

    # TODO(synk): matrix inverse, slogdet and lgamma have no clean Pallas TPU
    # equivalent; done in plain JAX (parameter-sized glue, not the hot path).
    n_per_class = jnp.sum(train_labels.astype(jnp.float32), axis=0)            # [C]
    eye = jnp.eye(f, dtype=jnp.float32)
    sigma_inv = (1.0 - reg_param) * jnp.linalg.inv(sigma) + reg_param * eye    # [C, F, F]
    common = nu_ + n_per_class + 1.0 - jnp.float32(f)                          # [C]
    _, logdet = jnp.linalg.slogdet(sigma)
    bias = (gammaln(0.5 * (common + f)) - gammaln(0.5 * common)
            - 0.5 * f * jnp.log(common) - 0.5 * logdet)                        # [C]

    # Mahalanobis-distance based prediction (wide bf16 MXU formulation) in Pallas.
    return predict_call(query_feats, sigma_inv, mu, bias, common)


# --------------------------------- main --------------------------------------
if __name__ == "__main__":
    key = jax.random.PRNGKey(0)
    k_sup, k_qry, k_w = jax.random.split(key, 3)

    # small few-shot episode: 4-way, 4-shot support, 8 queries
    num_classes, shots, num_query = 4, 4, 8
    c_img, h_img, w_img = 4, 8, 8
    x_dim = 32                                   # feature dim (x_dim of MetaQDA)
    d_in = c_img * h_img * w_img

    train_imgs = jax.random.normal(k_sup, (num_classes * shots, c_img, h_img, w_img), jnp.float32)
    query_imgs = jax.random.normal(k_qry, (num_query, c_img, h_img, w_img), jnp.float32)
    train_labels = jax.nn.one_hot(jnp.repeat(jnp.arange(num_classes), shots),
                                  num_classes, dtype=jnp.float32)

    # deterministic parameters (shapes from MetaQDA_FB.__init__ + toy backbone)
    params = {
        'backbone_w': 0.05 * jax.random.normal(k_w, (d_in, x_dim), jnp.float32),
        'backbone_b': jnp.zeros((1, x_dim), jnp.float32),
        'm': jnp.zeros((1, x_dim), jnp.float32),
        'kappa': jnp.float32(0.1),
        'nu': jnp.float32(x_dim),
        'triu_diag': jnp.ones((x_dim,), jnp.float32),
        'triu_lower': jnp.eye(x_dim, dtype=jnp.float32),
    }

    fwd = jax.jit(functools.partial(metaqda_forward, reg_param=0.5))
    preds = jax.block_until_ready(fwd(train_imgs, train_labels, query_imgs, params))

    assert preds.shape == (num_query, num_classes), preds.shape
    assert bool(jnp.all(jnp.isfinite(preds)))
    print("KERNEL_OK")
</pallas_src>

<mosaic_0001>
module attributes {stable_mosaic.version = 11 : i64} {
  func.func @backbone_kernel(%arg0: i32, %arg1: i32, %arg2: memref<24x256xbf16, #tpu.memory_space<vmem>>, %arg3: memref<256x32xbf16, #tpu.memory_space<vmem>>, %arg4: memref<1x32xf32, #tpu.memory_space<vmem>>, %arg5: memref<24x32xf32, #tpu.memory_space<vmem>>, %arg6: memref<24x32xf32, #tpu.memory_space<vmem>>) attributes {dimension_semantics = [#tpu.dimension_semantics<parallel>, #tpu.dimension_semantics<arbitrary>], iteration_bounds = array<i64: 1, 1>, scalar_prefetch = 0 : i64, scratch_operands = 1 : i64, tpu.core_type = #tpu.core_type<tc>, window_params = [{transform_indices = @transform_0, window_bounds = array<i64: 24, 256>}, {transform_indices = @transform_1, window_bounds = array<i64: 256, 32>}, {pipeline_mode = #tpu.pipeline_mode<synchronous>, transform_indices = @transform_2, window_bounds = array<i64: 1, 32>}, {transform_indices = @transform_3, window_bounds = array<i64: 24, 32>}]} {
    %c0_i32 = arith.constant 0 : i32
    %0 = arith.cmpi eq, %arg1, %c0_i32 : i32
    %1 = arith.extui %0 : i1 to i32
    %c0_i32_0 = arith.constant 0 : i32
    %2 = arith.cmpi ne, %1, %c0_i32_0 : i32
    scf.if %2 {
      %cst_10 = arith.constant 0.000000e+00 : f32
      %12 = vector.broadcast %cst_10 : f32 to vector<24x32xf32>
      %c0_11 = arith.constant 0 : index
      %c0_12 = arith.constant 0 : index
      %13 = vector.load %arg6[%c0_11, %c0_12] : memref<24x32xf32, #tpu.memory_space<vmem>>, vector<24x32xf32>
      tpu.vector_store %arg6[%c0_11, %c0_12], %12 {strides = array<i32>} : memref<24x32xf32, #tpu.memory_space<vmem>>, vector<24x32xf32>,
    } else {
    }
    %c0 = arith.constant 0 : index
    %c0_1 = arith.constant 0 : index
    %3 = vector.load %arg6[%c0, %c0_1] : memref<24x32xf32, #tpu.memory_space<vmem>>, vector<24x32xf32>
    %c0_2 = arith.constant 0 : index
    %c0_3 = arith.constant 0 : index
    %4 = vector.load %arg2[%c0_2, %c0_3] : memref<24x256xbf16, #tpu.memory_space<vmem>>, vector<24x256xbf16>
    %c0_4 = arith.constant 0 : index
    %c0_5 = arith.constant 0 : index
    %5 = vector.load %arg3[%c0_4, %c0_5] : memref<256x32xbf16, #tpu.memory_space<vmem>>, vector<256x32xbf16>
    %cst = arith.constant dense<0.000000e+00> : vector<24x32xf32>
    %6 = tpu.matmul %4, %5, %cst {dimension_numbers = #tpu.dot_dimension_numbers<[1], [0], [0], [1], [0, 0, 1, 1], [], []>} : vector<24x256xbf16>, vector<256x32xbf16>, vector<24x32xf32> -> vector<24x32xf32>
    %7 = arith.addf %3, %6 : vector<24x32xf32>
    %c0_6 = arith.constant 0 : index
    %c0_7 = arith.constant 0 : index
    %8 = vector.load %arg6[%c0_6, %c0_7] : memref<24x32xf32, #tpu.memory_space<vmem>>, vector<24x32xf32>
    tpu.vector_store %arg6[%c0_6, %c0_7], %7 {strides = array<i32>} : memref<24x32xf32, #tpu.memory_space<vmem>>, vector<24x32xf32>,
    %c0_i32_8 = arith.constant 0 : i32
    %9 = arith.cmpi eq, %arg1, %c0_i32_8 : i32
    %10 = arith.extui %9 : i1 to i32
    %c0_i32_9 = arith.constant 0 : i32
    %11 = arith.cmpi ne, %10, %c0_i32_9 : i32
    scf.if %11 {
      %c0_10 = arith.constant 0 : index
      %c0_11 = arith.constant 0 : index
      %12 = vector.load %arg6[%c0_10, %c0_11] : memref<24x32xf32, #tpu.memory_space<vmem>>, vector<24x32xf32>
      %c0_12 = arith.constant 0 : index
      %c0_13 = arith.constant 0 : index
      %13 = vector.load %arg4[%c0_12, %c0_13] : memref<1x32xf32, #tpu.memory_space<vmem>>, vector<1x32xf32>
      %14 = vector.broadcast %13 : vector<1x32xf32> to vector<24x32xf32>
      %15 = arith.addf %12, %14 : vector<24x32xf32>
      %cst_14 = arith.constant 0.000000e+00 : f32
      %16 = vector.broadcast %cst_14 : f32 to vector<24x32xf32>
      %17 = arith.maximumf %15, %16 : vector<24x32xf32>
      %c0_15 = arith.constant 0 : index
      %c0_16 = arith.constant 0 : index
      %18 = vector.load %arg5[%c0_15, %c0_16] : memref<24x32xf32, #tpu.memory_space<vmem>>, vector<24x32xf32>
      tpu.vector_store %arg5[%c0_15, %c0_16], %17 {strides = array<i32>} : memref<24x32xf32, #tpu.memory_space<vmem>>, vector<24x32xf32>,
    } else {
    }
    return
  }
  func.func @transform_0(%arg0: i32, %arg1: i32) -> (i32, i32) {
    %c0_i32 = arith.constant 0 : i32
    return %arg0, %arg1 : i32, i32
  }
  func.func @transform_1(%arg0: i32, %arg1: i32) -> (i32, i32) {
    %c0_i32 = arith.constant 0 : i32
    %c0_i32_0 = arith.constant 0 : i32
    return %arg1, %c0_i32 : i32, i32
  }
  func.func @transform_2(%arg0: i32, %arg1: i32) -> (i32, i32) {
    %c0_i32 = arith.constant 0 : i32
    %c0_i32_0 = arith.constant 0 : i32
    %c0_i32_1 = arith.constant 0 : i32
    return %c0_i32, %c0_i32_0 : i32, i32
  }
  func.func @transform_3(%arg0: i32, %arg1: i32) -> (i32, i32) {
    %c0_i32 = arith.constant 0 : i32
    %c0_i32_0 = arith.constant 0 : i32
    return %arg0, %c0_i32 : i32, i32
  }
}

module attributes {stable_mosaic.version = 11 : i64} {
  func.func @fit_kernel(%arg0: i32, %arg1: memref<16x1xi32, #tpu.memory_space<vmem>>, %arg2: memref<16x32xf32, #tpu.memory_space<vmem>>, %arg3: memref<1x32xf32, #tpu.memory_space<vmem>>, %arg4: memref<32x32xf32, #tpu.memory_space<vmem>>, %arg5: memref<2xf32, #tpu.memory_space<smem>>, %arg6: memref<1x32x32xf32, #tpu.memory_space<vmem>>, %arg7: memref<1x1x32xf32, #tpu.memory_space<vmem>>) attributes {dimension_semantics = [#tpu.dimension_semantics<parallel>], iteration_bounds = array<i64: 4>, scalar_prefetch = 0 : i64, scratch_operands = 0 : i64, tpu.core_type = #tpu.core_type<tc>, window_params = [{pipeline_mode = #tpu.pipeline_mode<synchronous>, transform_indices = @transform_0, window_bounds = array<i64: 16, 1>}, {pipeline_mode = #tpu.pipeline_mode<synchronous>, transform_indices = @transform_1, window_bounds = array<i64: 16, 32>}, {pipeline_mode = #tpu.pipeline_mode<synchronous>, transform_indices = @transform_2, window_bounds = array<i64: 1, 32>}, {pipeline_mode = #tpu.pipeline_mode<synchronous>, transform_indices = @transform_3, window_bounds = array<i64: 32, 32>}, {transform_indices = @transform_4, window_bounds = array<i64: 2>}, {transform_indices = @transform_5, window_bounds = array<i64: 1, 32, 32>}, {transform_indices = @transform_6, window_bounds = array<i64: 1, 1, 32>}]} {
    %c0 = arith.constant 0 : index
    %0 = memref.load %arg5[%c0] : memref<2xf32, #tpu.memory_space<smem>>
    %c1 = arith.constant 1 : index
    %1 = memref.load %arg5[%c1] : memref<2xf32, #tpu.memory_space<smem>>
    %c0_0 = arith.constant 0 : index
    %c0_1 = arith.constant 0 : index
    %2 = vector.load %arg2[%c0_0, %c0_1] : memref<16x32xf32, #tpu.memory_space<vmem>>, vector<16x32xf32>
    %c0_2 = arith.constant 0 : index
    %c0_3 = arith.constant 0 : index
    %3 = vector.load %arg1[%c0_2, %c0_3] : memref<16x1xi32, #tpu.memory_space<vmem>>, vector<16x1xi32>
    %4 = vector.broadcast %arg0 : i32 to vector<16x1xi32>
    %5 = arith.cmpi eq, %3, %4 : vector<16x1xi32>
    %6 = arith.extui %5 : vector<16x1xi1> to vector<16x1xi32>
    %7 = arith.sitofp %6 : vector<16x1xi32> to vector<16x1xf32>
    %8 = vector.shape_cast %7 : vector<16x1xf32> to vector<1x16x1xf32>
    %cst = arith.constant dense<0.000000e+00> : vector<1xf32>
    %9 = vector.multi_reduction <add>, %8, %cst [1, 2] : vector<1x16x1xf32> to vector<1xf32>
    %10 = vector.shape_cast %9 : vector<1xf32> to vector<1x1x1xf32>
    %11 = vector.extract %10[0, 0, 0] : f32 from vector<1x1x1xf32>
    %cst_4 = arith.constant 1.000000e+00 : f32
    %12 = arith.maximumf %11, %cst_4 : f32
    %13 = vector.broadcast %7 : vector<16x1xf32> to vector<16x32xf32>
    %14 = arith.mulf %2, %13 : vector<16x32xf32>
    %cst_5 = arith.constant dense<0.000000e+00> : vector<32x32xf32>
    %15 = tpu.matmul %14, %2, %cst_5 {dimension_numbers = #tpu.dot_dimension_numbers<[0], [0], [1], [1], [0, 1, 1, 1], [], []>} : vector<16x32xf32>, vector<16x32xf32>, vector<32x32xf32> -> vector<32x32xf32>
    %cst_6 = arith.constant dense<0.000000e+00> : vector<32xf32>
    %16 = vector.multi_reduction <add>, %14, %cst_6 [0] : vector<16x32xf32> to vector<32xf32>
    %17 = vector.shape_cast %16 : vector<32xf32> to vector<1x32xf32>
    %18 = vector.broadcast %12 : f32 to vector<1x32xf32>
    %19 = arith.divf %17, %18 : vector<1x32xf32>
    %20 = arith.addf %0, %11 : f32
    %21 = arith.divf %0, %20 : f32
    %c0_7 = arith.constant 0 : index
    %c0_8 = arith.constant 0 : index
    %22 = vector.load %arg3[%c0_7, %c0_8] : memref<1x32xf32, #tpu.memory_space<vmem>>, vector<1x32xf32>
    %23 = vector.broadcast %21 : f32 to vector<1x32xf32>
    %24 = arith.mulf %23, %22 : vector<1x32xf32>
    %25 = arith.divf %11, %20 : f32
    %26 = vector.broadcast %25 : f32 to vector<1x32xf32>
    %27 = arith.mulf %26, %19 : vector<1x32xf32>
    %28 = arith.addf %24, %27 : vector<1x32xf32>
    %cst_9 = arith.constant dense<0.000000e+00> : vector<32x32xf32>
    %29 = tpu.matmul %28, %28, %cst_9 {dimension_numbers = #tpu.dot_dimension_numbers<[0], [0], [1], [1], [0, 1, 1, 1], [], []>} : vector<1x32xf32>, vector<1x32xf32>, vector<32x32xf32> -> vector<32x32xf32>
    %c0_10 = arith.constant 0 : index
    %c0_11 = arith.constant 0 : index
    %30 = vector.load %arg4[%c0_10, %c0_11] : memref<32x32xf32, #tpu.memory_space<vmem>>, vector<32x32xf32>
    %31 = arith.addf %30, %15 : vector<32x32xf32>
    %32 = vector.broadcast %20 : f32 to vector<32x32xf32>
    %33 = arith.mulf %32, %29 : vector<32x32xf32>
    %34 = arith.subf %31, %33 : vector<32x32xf32>
    %cst_12 = arith.constant 5.000000e-01 : f32
    %35 = arith.cmpf ogt, %11, %cst_12 : f32
    %36 = arith.addf %1, %11 : f32
    %cst_13 = arith.constant 3.200000e+01 : f32
    %37 = arith.subf %36, %cst_13 : f32
    %cst_14 = arith.constant 1.000000e+00 : f32
    %38 = arith.addf %37, %cst_14 : f32
    %cst_15 = arith.constant 1.000000e+00 : f32
    %39 = arith.select %35, %38, %cst_15 : f32
    %cst_16 = arith.constant 1.000000e+00 : f32
    %40 = arith.addf %20, %cst_16 : f32
    %41 = arith.mulf %39, %20 : f32
    %42 = arith.divf %40, %41 : f32
    %43 = vector.broadcast %42 : f32 to vector<32x32xf32>
    %44 = arith.mulf %34, %43 : vector<32x32xf32>
    %c0_17 = arith.constant 0 : index
    %c0_18 = arith.constant 0 : index
    %c0_19 = arith.constant 0 : index
    %45 = vector.load %arg6[%c0_17, %c0_18, %c0_19] : memref<1x32x32xf32, #tpu.memory_space<vmem>>, vector<1x32x32xf32>
    %46 = vector.shape_cast %45 : vector<1x32x32xf32> to vector<32x32xf32>
    %47 = vector.shape_cast %44 : vector<32x32xf32> to vector<1x32x32xf32>
    tpu.vector_store %arg6[%c0_17, %c0_18, %c0_19], %47 {strides = array<i32>} : memref<1x32x32xf32, #tpu.memory_space<vmem>>, vector<1x32x32xf32>,
    %c0_20 = arith.constant 0 : index
    %c0_21 = arith.constant 0 : index
    %c0_22 = arith.constant 0 : index
    %48 = vector.load %arg7[%c0_20, %c0_21, %c0_22] : memref<1x1x32xf32, #tpu.memory_space<vmem>>, vector<1x1x32xf32>
    %49 = vector.shape_cast %48 : vector<1x1x32xf32> to vector<1x32xf32>
    %50 = vector.shape_cast %28 : vector<1x32xf32> to vector<1x1x32xf32>
    tpu.vector_store %arg7[%c0_20, %c0_21, %c0_22], %50 {strides = array<i32>} : memref<1x1x32xf32, #tpu.memory_space<vmem>>, vector<1x1x32xf32>,
    return
  }
  func.func @transform_0(%arg0: i32) -> (i32, i32) {
    %c0_i32 = arith.constant 0 : i32
    %c0_i32_0 = arith.constant 0 : i32
    %c0_i32_1 = arith.constant 0 : i32
    return %c0_i32, %c0_i32_0 : i32, i32
  }
  func.func @transform_1(%arg0: i32) -> (i32, i32) {
    %c0_i32 = arith.constant 0 : i32
    %c0_i32_0 = arith.constant 0 : i32
    %c0_i32_1 = arith.constant 0 : i32
    return %c0_i32, %c0_i32_0 : i32, i32
  }
  func.func @transform_2(%arg0: i32) -> (i32, i32) {
    %c0_i32 = arith.constant 0 : i32
    %c0_i32_0 = arith.constant 0 : i32
    %c0_i32_1 = arith.constant 0 : i32
    return %c0_i32, %c0_i32_0 : i32, i32
  }
  func.func @transform_3(%arg0: i32) -> (i32, i32) {
    %c0_i32 = arith.constant 0 : i32
    %c0_i32_0 = arith.constant 0 : i32
    %c0_i32_1 = arith.constant 0 : i32
    return %c0_i32, %c0_i32_0 : i32, i32
  }
  func.func @transform_4(%arg0: i32) -> i32 {
    %c0_i32 = arith.constant 0 : i32
    %c0_i32_0 = arith.constant 0 : i32
    return %c0_i32 : i32
  }
  func.func @transform_5(%arg0: i32) -> (i32, i32, i32) {
    %c0_i32 = arith.constant 0 : i32
    %c0_i32_0 = arith.constant 0 : i32
    %c0_i32_1 = arith.constant 0 : i32
    return %arg0, %c0_i32, %c0_i32_0 : i32, i32, i32
  }
  func.func @transform_6(%arg0: i32) -> (i32, i32, i32) {
    %c0_i32 = arith.constant 0 : i32
    %c0_i32_0 = arith.constant 0 : i32
    %c0_i32_1 = arith.constant 0 : i32
    return %arg0, %c0_i32, %c0_i32_0 : i32, i32, i32
  }
}

module attributes {stable_mosaic.version = 11 : i64} {
  func.func @predict_kernel(%arg0: i32, %arg1: i32, %arg2: memref<8x128xf32, #tpu.memory_space<vmem>>, %arg3: memref<128x256xbf16, #tpu.memory_space<vmem>>, %arg4: memref<1x2x128xf32, #tpu.memory_space<vmem>>, %arg5: memref<1x1x2xf32, #tpu.memory_space<vmem>>, %arg6: memref<1x1x2xf32, #tpu.memory_space<vmem>>, %arg7: memref<1x1x2xf32, #tpu.memory_space<vmem>>, %arg8: memref<1x8x2xf32, #tpu.memory_space<vmem>>) attributes {dimension_semantics = [#tpu.dimension_semantics<parallel>, #tpu.dimension_semantics<parallel>], iteration_bounds = array<i64: 2, 1>, scalar_prefetch = 0 : i64, scratch_operands = 0 : i64, tpu.core_type = #tpu.core_type<tc>, window_params = [{transform_indices = @transform_0, window_bounds = array<i64: 8, 128>}, {transform_indices = @transform_1, window_bounds = array<i64: 128, 256>}, {transform_indices = @transform_2, window_bounds = array<i64: 1, 2, 128>}, {transform_indices = @transform_3, window_bounds = array<i64: 1, 1, 2>}, {transform_indices = @transform_4, window_bounds = array<i64: 1, 1, 2>}, {transform_indices = @transform_5, window_bounds = array<i64: 1, 1, 2>}, {transform_indices = @transform_6, window_bounds = array<i64: 1, 8, 2>}]} {
    %c0 = arith.constant 0 : index
    %c0_0 = arith.constant 0 : index
    %0 = vector.load %arg2[%c0, %c0_0] : memref<8x128xf32, #tpu.memory_space<vmem>>, vector<8x128xf32>
    %1 = arith.truncf %0 : vector<8x128xf32> to vector<8x128xbf16>
    %c0_1 = arith.constant 0 : index
    %c0_2 = arith.constant 0 : index
    %2 = vector.load %arg3[%c0_1, %c0_2] : memref<128x256xbf16, #tpu.memory_space<vmem>>, vector<128x256xbf16>
    %cst = arith.constant dense<0.000000e+00> : vector<8x256xf32>
    %3 = tpu.matmul %1, %2, %cst {dimension_numbers = #tpu.dot_dimension_numbers<[1], [0], [0], [1], [0, 0, 1, 1], [], []>} : vector<8x128xbf16>, vector<128x256xbf16>, vector<8x256xf32> -> vector<8x256xf32>
    %4 = vector.shape_cast %3 : vector<8x256xf32> to vector<8x2x128xf32>
    %5 = vector.shape_cast %0 : vector<8x128xf32> to vector<8x1x128xf32>
    %6 = vector.broadcast %5 : vector<8x1x128xf32> to vector<8x2x128xf32>
    %7 = arith.mulf %4, %6 : vector<8x2x128xf32>
    %cst_3 = arith.constant dense<0.000000e+00> : vector<8x2xf32>
    %8 = vector.multi_reduction <add>, %7, %cst_3 [2] : vector<8x2x128xf32> to vector<8x2xf32>
    %c0_4 = arith.constant 0 : index
    %c0_5 = arith.constant 0 : index
    %c0_6 = arith.constant 0 : index
    %9 = vector.load %arg4[%c0_4, %c0_5, %c0_6] : memref<1x2x128xf32, #tpu.memory_space<vmem>>, vector<1x2x128xf32>
    %10 = vector.shape_cast %9 : vector<1x2x128xf32> to vector<2x128xf32>
    %cst_7 = arith.constant dense<0.000000e+00> : vector<8x2xf32>
    %11 = tpu.matmul %0, %10, %cst_7 {dimension_numbers = #tpu.dot_dimension_numbers<[1], [1], [0], [0], [0, 0, 1, 0], [], []>} : vector<8x128xf32>, vector<2x128xf32>, vector<8x2xf32> -> vector<8x2xf32>
    %cst_8 = arith.constant 2.000000e+00 : f32
    %12 = vector.broadcast %cst_8 : f32 to vector<8x2xf32>
    %13 = arith.mulf %12, %11 : vector<8x2xf32>
    %14 = arith.subf %8, %13 : vector<8x2xf32>
    %c0_9 = arith.constant 0 : index
    %c0_10 = arith.constant 0 : index
    %c0_11 = arith.constant 0 : index
    %15 = vector.load %arg5[%c0_9, %c0_10, %c0_11] : memref<1x1x2xf32, #tpu.memory_space<vmem>>, vector<1x1x2xf32>
    %16 = vector.shape_cast %15 : vector<1x1x2xf32> to vector<1x2xf32>
    %17 = vector.broadcast %16 : vector<1x2xf32> to vector<8x2xf32>
    %18 = arith.addf %14, %17 : vector<8x2xf32>
    %cst_12 = arith.constant 0.000000e+00 : f32
    %19 = vector.broadcast %cst_12 : f32 to vector<8x2xf32>
    %20 = arith.maximumf %18, %19 : vector<8x2xf32>
    %c0_13 = arith.constant 0 : index
    %c0_14 = arith.constant 0 : index
    %c0_15 = arith.constant 0 : index
    %21 = vector.load %arg7[%c0_13, %c0_14, %c0_15] : memref<1x1x2xf32, #tpu.memory_space<vmem>>, vector<1x1x2xf32>
    %22 = vector.shape_cast %21 : vector<1x1x2xf32> to vector<1x2xf32>
    %c0_16 = arith.constant 0 : index
    %c0_17 = arith.constant 0 : index
    %c0_18 = arith.constant 0 : index
    %23 = vector.load %arg6[%c0_16, %c0_17, %c0_18] : memref<1x1x2xf32, #tpu.memory_space<vmem>>, vector<1x1x2xf32>
    %24 = vector.shape_cast %23 : vector<1x1x2xf32> to vector<1x2xf32>
    %cst_19 = arith.constant 3.200000e+01 : f32
    %25 = vector.broadcast %cst_19 : f32 to vector<1x2xf32>
    %26 = arith.addf %22, %25 : vector<1x2xf32>
    %cst_20 = arith.constant 5.000000e-01 : f32
    %27 = vector.broadcast %cst_20 : f32 to vector<1x2xf32>
    %28 = arith.mulf %27, %26 : vector<1x2xf32>
    %29 = vector.broadcast %22 : vector<1x2xf32> to vector<8x2xf32>
    %30 = arith.divf %20, %29 : vector<8x2xf32>
    %cst_21 = arith.constant 1.000000e+00 : f32
    %31 = vector.broadcast %cst_21 : f32 to vector<8x2xf32>
    %32 = arith.addf %31, %30 : vector<8x2xf32>
    %33 = math.log %32 : vector<8x2xf32>
    %34 = vector.broadcast %28 : vector<1x2xf32> to vector<8x2xf32>
    %35 = arith.mulf %34, %33 : vector<8x2xf32>
    %36 = vector.broadcast %24 : vector<1x2xf32> to vector<8x2xf32>
    %37 = arith.subf %36, %35 : vector<8x2xf32>
    %c0_22 = arith.constant 0 : index
    %c0_23 = arith.constant 0 : index
    %c0_24 = arith.constant 0 : index
    %38 = vector.load %arg8[%c0_22, %c0_23, %c0_24] : memref<1x8x2xf32, #tpu.memory_space<vmem>>, vector<1x8x2xf32>
    %39 = vector.shape_cast %38 : vector<1x8x2xf32> to vector<8x2xf32>
    %40 = vector.shape_cast %37 : vector<8x2xf32> to vector<1x8x2xf32>
    tpu.vector_store %arg8[%c0_22, %c0_23, %c0_24], %40 {strides = array<i32>} : memref<1x8x2xf32, #tpu.memory_space<vmem>>, vector<1x8x2xf32>,
    return
  }
  func.func @transform_0(%arg0: i32, %arg1: i32) -> (i32, i32) {
    %c0_i32 = arith.constant 0 : i32
    %c0_i32_0 = arith.constant 0 : i32
    return %arg1, %c0_i32 : i32, i32
  }
  func.func @transform_1(%arg0: i32, %arg1: i32) -> (i32, i32) {
    %c0_i32 = arith.constant 0 : i32
    %c0_i32_0 = arith.constant 0 : i32
    return %c0_i32, %arg0 : i32, i32
  }
  func.func @transform_2(%arg0: i32, %arg1: i32) -> (i32, i32, i32) {
    %c0_i32 = arith.constant 0 : i32
    %c0_i32_0 = arith.constant 0 : i32
    %c0_i32_1 = arith.constant 0 : i32
    return %arg0, %c0_i32, %c0_i32_0 : i32, i32, i32
  }
  func.func @transform_3(%arg0: i32, %arg1: i32) -> (i32, i32, i32) {
    %c0_i32 = arith.constant 0 : i32
    %c0_i32_0 = arith.constant 0 : i32
    %c0_i32_1 = arith.constant 0 : i32
    return %arg0, %c0_i32, %c0_i32_0 : i32, i32, i32
  }
  func.func @transform_4(%arg0: i32, %arg1: i32) -> (i32, i32, i32) {
    %c0_i32 = arith.constant 0 : i32
    %c0_i32_0 = arith.constant 0 : i32
    %c0_i32_1 = arith.constant 0 : i32
    return %arg0, %c0_i32, %c0_i32_0 : i32, i32, i32
  }
  func.func @transform_5(%arg0: i32, %arg1: i32) -> (i32, i32, i32) {
    %c0_i32 = arith.constant 0 : i32
    %c0_i32_0 = arith.constant 0 : i32
    %c0_i32_1 = arith.constant 0 : i32
    return %arg0, %c0_i32, %c0_i32_0 : i32, i32, i32
  }
  func.func @transform_6(%arg0: i32, %arg1: i32) -> (i32, i32, i32) {
    %c0_i32 = arith.constant 0 : i32
    %c0_i32_0 = arith.constant 0 : i32
    return %arg0, %arg1, %c0_i32 : i32, i32, i32
  }
}

</mosaic_0001>

<bundles_post_ra>
// kernel: custom-call.17
= control target key start
LH: loop header
LB: loop body
LE: loop exit
PB: predicated region body
PF: predicated region fallthrough
CT: control target
= control target key end

     0   :  { %5 = vsyncpa [#allocation4], 0  ;;  %s1093_s0 = inlined_call_operand.vmem [shape: f32[4,32,32], index: 0, kind: input, shape index: {}]   ;;  %s1094_s1 = inlined_call_operand.vmem [shape: f32[4,32,32], index: 1, kind: output, shape index: {0}]   ;;  %s1095_s2 = inlined_call_operand.hbm [shape: s32[4,32], index: 2, kind: output, shape index: {1}]   ;;  %s1096_s3 = inlined_call_operand.vmem [shape: s32[4,32], index: 3, kind: output, shape index: {2}]  }
   0x1   :  { %7 = vsyncpa [#allocation4 + $0x1], 0  ;;  %s845_s12 = smov 0   ;;  %s847_s13 = smov 0  }
   0x2   :  { %s849_s14 = smov 0   ;;  %s851_s15 = smov 0  }
   0x3 LB: > { %s866_s16 = sadd.s32 4294967295, %s813_s15   ;;  %s643_s17 = sadd.s32 4294967294, %s813_s15   ;;  %s813_s15 = sphi %s851_s15, %s1104_s15   ;;  %s809_s14 = sphi %s849_s14, %s1103_s14   ;;  %s805_s13 = sphi %s847_s13, %s1102_s13   ;;  %s801_s12 = sphi %s845_s12, %s1101_s12  }
   0x4   : > { %s870_s18 = sadd.s32 1, %s813_s15   ;;  %s17_s19 = sshrl.u32 %s813_s15, 3 }
   0x5   : > { %s18_s20 = sshrl.u32 %s870_s18, 3  ;;  %s22_s21 = sadd.s32 1, %s809_s14 }
   0x6   : > { %s19_s22 = ssub.s32 %s17_s19, %s18_s20  ;;  %p32_p0 = scmp.ne.s32.totalorder %s809_s14, %s805_s13 }
   0x7   : > { %p20_p1 = scmp.eq.s32.totalorder %s19_s22, 0  ;;  %p33_p2 = scmp.eq.s32.totalorder %s866_s16, 3 }
   0x8   : > { %p38_p3 = scmp.ne.s32.totalorder %s805_s13, %s801_s12  ;;  %p39_p4 = scmp.eq.s32.totalorder %s643_s17, 3 }
   0x9   : > { %s881_s23 = scalar_select %p20_p1, %s809_s14, %s22_s21  }
   0xa   : > { %p883_p5 = por %p33_p2, %p32_p0  ;;  %p887_p6 = por %p39_p4, %p38_p3 }
   0xb   : > { %p645_p7 = scmp.ge.s32.totalorder %s813_s15, 4 }
   0xc   : > { %s85_s26 = sand.u32 (!%p645_p7), 1, %s813_s15   ;;  %s647_s27 = sshll.u32 (!%p645_p7), %s813_s15, 5 }
   0xd   : > { %83 = sbr.rel (%p645_p7) target bundleno = 21 (0x15), region = 16  ;;  %s646_s28 = sshll.u32 (!%p645_p7), %s85_s26, 5 }
   0xe   : > { %s89_s4 = scalar_lea.vmem (!%p645_p7), %s1093_s0, %s647_s27  ;;  %s87_s5 = scalar_lea.vmem (!%p645_p7), [#allocation0], %s646_s28 }
  0x12   : > { %v102_v0 = vld [vmem:[%s89_s4] sm:$0xff]  ;;  %v104_v1 = vld [vmem:[%s89_s4 + $0x8] sm:$0xff]  ;;  %v106_v2 = vld [vmem:[%s89_s4 + $0x10] sm:$0xff] }
  0x13   : > { %103 = vst [vmem:[%s87_s5] sm:$0xff] %v102_v0  ;;  %105 = vst [vmem:[%s87_s5 + $0x8] sm:$0xff] %v104_v1  ;;  %v108_v3 = vld [vmem:[%s89_s4 + $0x18] sm:$0xff] }
  0x14   : > { %107 = vst [vmem:[%s87_s5 + $0x10] sm:$0xff] %v106_v2  ;;  %109 = vst [vmem:[%s87_s5 + $0x18] sm:$0xff] %v108_v3 }
  0x15 PF: > { %p648_p8 = scmp.ge.s32.totalorder %s813_s15, 1  ;;  %p114_p9 = scmp.lt.s32.totalorder %s813_s15, 5 }
  0x17   : > { %p115_p10 = pnand %p648_p8, %p114_p9 }
  0x19   : > { %118 = sbr.rel (%p115_p10) target bundleno = 574 (0x23e), region = 39 }
  0x1e   : > { %s121_s6 = sand.u32 1, %s866_s16   ;;  %s136_s7 = sand.u32 1, %s805_s13   ;;  %v166_v4 = vlaneseq  ;;  %v823_v10 = vmov 0  }
  0x1f   : > { %s649_s8 = sshll.u32 %s121_s6, 5  ;;  %s903_s9 = sshll.u32 %s136_s7, 2 }
  0x20   : > { %v906_v5 = vshrl.u32 %v166_v4, 7  ;;  %s123_s10 = scalar_lea.vmem [#allocation0], %s649_s8  ;;  %s908_s11 = scalar_lea.vmem [#allocation1], %s649_s8 }
  0x21   : > { %v147_v6 = vld [vmem:[%s123_s10] sm:$0xff]  ;;  %v653_v7 = vld [vmem:[%s123_s10 + $0x8] sm:$0xff]  ;;  %v655_v8 = vld [vmem:[%s123_s10 + $0x10] sm:$0xff]  ;;  %s161_s17 = sand.u32 7, %s866_s16   ;;  %s138_s20 = scalar_lea.vmem [#allocation3], %s903_s9 }
  0x22   : > { %148 = vst [vmem:[%s908_s11] sm:$0xff] %v147_v6  ;;  %654 = vst [vmem:[%s908_s11 + $0x8] sm:$0xff] %v653_v7  ;;  %v657_v9 = vld [vmem:[%s123_s10 + $0x18] sm:$0xff]  ;;  %s915_s19 = scalar_lea.vmem [#allocation2], %s161_s17  ;;  %s144_s21 = scalar_lea.vmem [#allocation6], %s903_s9 }
  0x23   : > { %656 = vst [vmem:[%s908_s11 + $0x10] sm:$0xff] %v655_v8  ;;  %658 = vst [vmem:[%s908_s11 + $0x18] sm:$0xff] %v657_v9  ;;  %s920_s22 = scalar_lea.vmem [#allocation5], %s161_s17  ;;  %s815_s26 = smov 0  }
  0x24   : > { %165 = vst [vmem:[%s915_s19] sm:$0x1] %v823_v10 }
  0x25 LB: >> { %s659_s27 = sshll.u32 %s817_s26, 3  ;;  %s174_s26 = sadd.s32 1, %s817_s26   ;;  %s817_s26 = sphi %s815_s26, %s174_s26  }
  0x26   : >> { %v178_v11 = vstv %s659_s27  ;;  %s176_s28 = scalar_lea.vmem [#allocation7], %s659_s27  ;;  %p171_p11 = scmp.ge.s32.totalorder %s174_s26, 4  }
  0x27   : >> { %v179_v12 = vadd.s32 %v178_v11, %v906_v5  ;;  %s923_s29 = smov (%p171_p11), 0  }
  0x28   : > { %173 = sbr.rel (!%p171_p11) target bundleno = 37 (0x25), region = 199 }
  0x29   : >> { %180 = vst [vmem:[%s176_s28] sm:$0xff] %v179_v12 }
  0x2d LB: >> { %v191_v13 = vld [vmem:[%s908_s11] sm:$0xff]  ;;  %v662_v14 = vld [vmem:[%s908_s11 + $0x8] sm:$0xff]  ;;  %v931_v15 = vadd.s32 8, %v906_v5  ;;  %v934_v17 = vstv %s821_s29  ;;  %v663_v19 = vld [vmem:[%s908_s11 + $0x10] sm:$0xff]  ;;  %v940_v20 = vadd.s32 16, %v906_v5  ;;  %v948_v25 = vadd.s32 24, %v906_v5  ;;  %s285_s4 = scalar_lea.vmem %s908_s11, %s821_s29 [#allocation1]  ;;  %s821_s29 = sphi %s923_s29, %s186_s29  }
  0x2e   : >> { %v192_v16 = vand.u32 2147483647, %v191_v13  ;;  %v204_v18 = vand.u32 2147483647, %v662_v14  ;;  %vm195_vm0 = vcmp.ge.s32.totalorder %v906_v5, %v934_v17  ;;  %v216_v23 = vand.u32 2147483647, %v663_v19 }
  0x2f   : >> { %vm207_vm3 = vcmp.ge.s32.totalorder %v931_v15, %v934_v17  ;;  %v664_v24 = vld [vmem:[%s908_s11 + $0x18] sm:$0xff]  ;;  %vm219_vm6 = vcmp.ge.s32.totalorder %v940_v20, %v934_v17  ;;  %vm231_vm9 = vcmp.ge.s32.totalorder %v948_v25, %v934_v17  ;;  %s273_s30 = ssub.s32 128, %s821_s29  ;;  %v279_v61 = vand.u32 127, %v166_v4  ;;  %v282_v63 = vld [vmem:[%s915_s19] ss:$0 sm:$0xff]  ;;  %s291_s6 = scalar_lea.vmem [#allocation7], %s821_s29 }
  0x30   : >> { %vm661_vm1 = vcmp.gt.f32.partialorder %v192_v16, -inf  ;;  %v228_v28 = vand.u32 2147483647, %v664_v24  ;;  %v287_v0 = vld [vmem:[%s285_s4] ss:$0 sm:$0xff]  ;;  %s186_s29 = sadd.s32 1, %s821_s29  }
  0x31   : >> { %vm199_vm2 = vmand %vm195_vm0, %vm661_vm1  ;;  %v293_v1 = vld [vmem:[%s291_s6] ss:$0 sm:$0xff]  ;;  %p183_p12 = scmp.ge.s32.totalorder %s186_s29, 32  }
  0x32   : >> { %v200_v21 = vsel %vm199_vm2, %v906_v5, %v934_v17  ;;  %v201_v22 = vsel %vm199_vm2, %v192_v16, -inf  ;;  %s476_s17 = sshrl.u32 (%p183_p12), %s866_s16, 3  ;;  %s674_s26 = sshll.u32 (%p183_p12), %s866_s16, 5 }
  0x33   : >> { %vm210_vm4 = vcmp.lt.f32.partialorder %v201_v22, %v204_v18  ;;  %s675_s27 = sshll.u32 (%p183_p12), %s476_s17, 6  ;;  %s449_s29 = scalar_lea.vmem (%p183_p12), %s1094_s1, %s674_s26 }
  0x34   : >> { %vm211_vm5 = vmand %vm207_vm3, %vm210_vm4  ;;  %vm962_vm3 = vcmp.eq.s32.totalorder %v279_v61, %v934_v17  ;;  %s824_s26 = smov (%p183_p12), [#allocation3]  }
  0x35   : >> { %v212_v26 = vsel %vm211_vm5, %v931_v15, %v200_v21  ;;  %v213_v27 = vsel %vm211_vm5, %v204_v18, %v201_v22  ;;  %vm326_vm5 = vcmp.gt.s32.totalorder %v931_v15, %v934_v17 }
  0x36   : >> { %vm222_vm7 = vcmp.lt.f32.partialorder %v213_v27, %v216_v23 }
  0x37   : >> { %vm223_vm8 = vmand %vm219_vm6, %vm222_vm7  ;;  %vm311_vm6 = vcmp.gt.s32.totalorder %v906_v5, %v934_v17  ;;  %vm341_vm7 = vcmp.gt.s32.totalorder %v940_v20, %v934_v17 }
  0x38   : >> { %v224_v29 = vsel %vm223_vm8, %v940_v20, %v212_v26  ;;  %v225_v30 = vsel %vm223_vm8, %v216_v23, %v213_v27 }
  0x39   : >> { %vm234_vm10 = vcmp.lt.f32.partialorder %v225_v30, %v228_v28 }
  0x3a   : >> { %vm235_vm11 = vmand %vm231_vm9, %vm234_vm10  ;;  %vm356_vm9 = vcmp.gt.s32.totalorder %v948_v25, %v934_v17 }
  0x3b   : >> { %v236_v31 = vsel %vm235_vm11, %v948_v25, %v224_v29  ;;  %v237_v32 = vsel %vm235_vm11, %v228_v28, %v225_v30  ;;  %vm330_vm10 = vmand %vm326_vm5, %vm962_vm3 }
  0x3c   : >> { %v238_v33 = vrot.slane %v237_v32, 1  ;;  %v239_v34 = vrot.slane %v236_v31, 1  ;;  %vm315_vm11 = vmand %vm311_vm6, %vm962_vm3 }
  0x3e   : >> { %vm240_vm12 = vcmp.ge.f32.partialorder %v238_v33, %v237_v32  ;;  %v243_v35 = vrot.slane %v238_v33, 1  ;;  %v244_v36 = vrot.slane %v239_v34, 1 }
  0x3f   : >> { %v241_v37 = vsel %vm240_vm12, %v238_v33, %v237_v32  ;;  %v242_v38 = vsel %vm240_vm12, %v239_v34, %v236_v31  ;;  %vm345_vm12 = vmand %vm341_vm7, %vm962_vm3 }
  0x40   : >> { %vm245_vm13 = vcmp.ge.f32.partialorder %v243_v35, %v241_v37  ;;  %v248_v39 = vrot.slane %v243_v35, 1  ;;  %v249_v40 = vrot.slane %v244_v36, 1 }
  0x41   : >> { %v246_v41 = vsel %vm245_vm13, %v243_v35, %v241_v37  ;;  %v247_v42 = vsel %vm245_vm13, %v244_v36, %v242_v38  ;;  %vm360_vm13 = vmand %vm356_vm9, %vm962_vm3 }
  0x42   : >> { %vm250_vm14 = vcmp.ge.f32.partialorder %v248_v39, %v246_v41  ;;  %v253_v43 = vrot.slane %v248_v39, 1  ;;  %v254_v44 = vrot.slane %v249_v40, 1 }
  0x43   : >> { %v251_v45 = vsel %vm250_vm14, %v248_v39, %v246_v41  ;;  %v252_v46 = vsel %vm250_vm14, %v249_v40, %v247_v42  ;;  %vm303_vm14 = vcmp.gt.s32.totalorder %v279_v61, %v934_v17 }
  0x44   : >> { %vm255_vm15 = vcmp.ge.f32.partialorder %v253_v43, %v251_v45  ;;  %v258_v47 = vrot.slane %v253_v43, 1  ;;  %v259_v48 = vrot.slane %v254_v44, 1 }
  0x45   : >> { %v256_v49 = vsel %vm255_vm15, %v253_v43, %v251_v45  ;;  %v257_v50 = vsel %vm255_vm15, %v254_v44, %v252_v46 }
  0x46   : >> { %vm260_vm0 = vcmp.ge.f32.partialorder %v258_v47, %v256_v49  ;;  %v263_v51 = vrot.slane %v258_v47, 1  ;;  %v264_v52 = vrot.slane %v259_v48, 1 }
  0x47   : >> { %v261_v53 = vsel %vm260_vm0, %v258_v47, %v256_v49  ;;  %v262_v54 = vsel %vm260_vm0, %v259_v48, %v257_v50 }
  0x48   : >> { %vm265_vm1 = vcmp.ge.f32.partialorder %v263_v51, %v261_v53  ;;  %v268_v55 = vrot.slane %v263_v51, 1  ;;  %v269_v56 = vrot.slane %v264_v52, 1 }
  0x49   : >> { %v266_v57 = vsel %vm265_vm1, %v263_v51, %v261_v53  ;;  %v267_v58 = vsel %vm265_vm1, %v264_v52, %v262_v54 }
  0x4a   : >> { %vm270_vm2 = vcmp.ge.f32.partialorder %v268_v55, %v266_v57 }
  0x4b   : >> { %v272_v59 = vsel %vm270_vm2, %v269_v56, %v267_v58 }
  0x4c   : >> { %274 = vrot.lane.b32.xlu0 %v272_v59, %s273_s30 }
  0xbe   : >> { %v275_v60 = vpop.permute.xlu0 %274 }
  0xbf   : >> { %679 = vpush %v275_v60 }
  0xf0   : >> { %s680_s5 = spop %679 }
  0xf1   : >> { %v281_v2 = vstv %s680_s5  ;;  %s286_s8 = scalar_lea.vmem %s908_s11, %s680_s5 [#allocation1]  ;;  %s292_s10 = scalar_lea.vmem [#allocation7], %s680_s5 }
  0xf2   : >> { %v283_v3 = vsel %vm962_vm3, %v281_v2, %v282_v63  ;;  %v288_v6 = vld [vmem:[%s286_s8] ss:$0 sm:$0xff]  ;;  %s1042_s5 = scalar_lea.hbm (%p183_p12), %s1095_s2, %s675_s27 }
  0xf3   : >> { %v294_v7 = vld [vmem:[%s292_s10] ss:$0 sm:$0xff]  ;;  %284 = vst [vmem:[%s915_s19] sm:$0x1] %v283_v3  ;;  %289 = vst [vmem:[%s286_s8] sm:$0x1] %v287_v0  ;;  %vm297_vm4 = vcmp.ne.f32.partialorder %v288_v6, 0.0  ;;  %v304_v20 = vsel %vm303_vm14, %v288_v6, 0.0 }
  0xf4   : >> { %295 = vst [vmem:[%s292_s10] sm:$0x1] %v293_v1  ;;  %290 = vst [vmem:[%s285_s4] sm:$0x1] %v288_v6  ;;  %s440_s8 = scalar_lea.sflag (%p183_p12), [#allocation4], %s136_s7  ;;  %s749_s19 = sshll.u32 (%p183_p12), %s824_s26, 4  ;;  %s750_s19 = int_to_ptr.vmem [resolvable:$false] %s749_s19 }
  0xf5   : >> { %296 = vst [vmem:[%s291_s6] sm:$0x1] %v294_v7  ;;  %vm298_vm8 = vmand %vm962_vm3, %vm297_vm4  ;;  %s483_s6 = sshll.u32 (%p183_p12), %s138_s20, 4  ;;  %s484_s6 = int_to_ptr.vmem [resolvable:$true] %s483_s6 }
  0xf6   : >> { %v299_v8 = vsel %vm298_vm8, %v288_v6, 1.0  ;;  %s745_s10 = scalar_lea.vmem (%p183_p12), %s484_s6, 64  ;;  %p752_p2 = scmp.lt.s32.totalorder (%p183_p12), %s484_s6, %s750_s19 }
  0xf7   : >> { %v327_v9 = vsel %vm326_vm5, %v299_v8, 1.0  ;;  %v312_v10 = vsel %vm311_vm6, %v299_v8, 1.0  ;;  %v342_v11 = vsel %vm341_vm7, %v299_v8, 1.0  ;;  %v357_v12 = vsel %vm356_vm9, %v299_v8, 1.0  ;;  %p746_p13 = scmp.ne.s32.totalorder (%p183_p12), %s484_s6, %s745_s10 }
  0xf8   : >> { %737 = vrcp.f32 %v327_v9 }
  0xf9   : >> { %739 = vrcp.f32 %v312_v10  ;;  %p747_p0 = pnand (%p183_p12), %p746_p13, %p883_p5 }
  0xfa   : >> { %741 = vrcp.f32 %v342_v11  ;;  %v423_v44 = vld [vmem:[#allocation2] sm:$0xf] (%p183_p12) }
  0xfb   : >> { %743 = vrcp.f32 %v357_v12  ;;  %v665_v14 = vld [vmem:[%s908_s11 + $0x8] sm:$0xff]  ;;  %v308_v19 = vld [vmem:[%s908_s11] sm:$0xff]  ;;  %v667_v23 = vld [vmem:[%s908_s11 + $0x10] sm:$0xff]  ;;  %426 = vst [vmem:[%s138_s20] sm:$0xf] (%p183_p12), %v423_v44  ;;  %p748_p1 = pneg (%p183_p12), %p747_p0 }
  0xfc   : >> { %v669_v15 = vld [vmem:[%s908_s11 + $0x18] sm:$0xff]  ;;  %v367_v17 = vld [vmem:[#allocation7] sm:$0xff] (%p183_p12)  ;;  %v369_v43 = vld [vmem:[#allocation7 + $0x8] sm:$0xff] (%p183_p12) }
  0xfd   : > { %v371_v46 = vld [vmem:[#allocation7 + $0x10] sm:$0xff] (%p183_p12) }
 0x105   : >> { %v738_v13 = vpop.eup %737 }
 0x106   : >> { %v740_v16 = vpop.eup %739  ;;  %v329_v18 = vmul.f32 %v738_v13, %v665_v14 }
 0x107   : >> { %v742_v21 = vpop.eup %741  ;;  %v314_v22 = vmul.f32 %v740_v16, %v308_v19 }
 0x108   : >> { %v331_v24 = vsel %vm330_vm10, %v329_v18, 0.0  ;;  %v344_v26 = vmul.f32 %v742_v21, %v667_v23  ;;  %v744_v27 = vpop.eup %743 }
 0x109   : >> { %332 = vadd.xlane.f32.xlu1 %v331_v24  ;;  %v316_v28 = vsel %vm315_vm11, %v314_v22, 0.0  ;;  %v359_v30 = vmul.f32 %v744_v27, %v669_v15 }
 0x10a   : >> { %317 = vadd.xlane.f32.xlu0 %v316_v28  ;;  %v346_v29 = vsel %vm345_vm12, %v344_v26, 0.0 }
 0x10b   : >> { %v361_v31 = vsel %vm360_vm13, %v359_v30, 0.0 }
 0x10d   : >> { %347 = vadd.xlane.f32.xlu1 %v346_v29 }
 0x111   : >> { %362 = vadd.xlane.f32.xlu1 %v361_v31 }
 0x137   : > { %386 = vxpose.xlu0.b32.start [1/4] (short) (narrow) (%p183_p12), %v367_v17, 8 }
 0x13b   : > { %387 = vxpose.xlu0.b32.cont [2/4] (short) (narrow) (%p183_p12), %v369_v43, 8 }
 0x192   : >> { %v333_v32 = vpop.xlane.xlu1 %332 }
 0x193   : >> { %v334_v33 = vmul.f32 %v333_v32, %v304_v20  ;;  %v318_v34 = vpop.xlane.xlu0 %317 }
 0x194   : >> { %v319_v35 = vmul.f32 %v318_v34, %v304_v20 }
 0x195   : >> { %v335_v36 = vsub.f32 %v329_v18, %v334_v33 }
 0x196   : >> { %v320_v37 = vsub.f32 %v314_v22, %v319_v35  ;;  %v348_v38 = vpop.xlane.xlu1 %347 }
 0x197   : >> { %666 = vst [vmem:[%s908_s11 + $0x8] sm:$0xff] %v335_v36  ;;  %v349_v39 = vmul.f32 %v348_v38, %v304_v20 }
 0x198   : >> { %321 = vst [vmem:[%s908_s11] sm:$0xff] %v320_v37 }
 0x199   : >> { %v350_v40 = vsub.f32 %v344_v26, %v349_v39 }
 0x19a   : >> { %v363_v25 = vpop.xlane.xlu1 %362 }
 0x19b   : >> { %668 = vst [vmem:[%s908_s11 + $0x10] sm:$0xff] %v350_v40  ;;  %v364_v41 = vmul.f32 %v363_v25, %v304_v20 }
 0x19d   : >> { %v365_v42 = vsub.f32 %v359_v30, %v364_v41 }
 0x19e   : > { %v464_v5 = vld [vmem:[%s908_s11 + $0x8] sm:$0xff] (%p183_p12) }
 0x19f   : >> { %670 = vst [vmem:[%s908_s11 + $0x18] sm:$0xff] %v365_v42  ;;  %v462_v4 = vld [vmem:[%s908_s11] sm:$0xff] (%p183_p12)  ;;  %465 = vst [vmem:[%s449_s29 + $0x8] sm:$0xff] (%p183_p12), %v464_v5 }
 0x1a0   : > { %185 = sbr.rel (!%p183_p12) target bundleno = 45 (0x2d), region = 210  ;;  %463 = vst [vmem:[%s449_s29] sm:$0xff] (%p183_p12), %v462_v4 }
 0x1a2   : > { %v466_v45 = vld [vmem:[%s908_s11 + $0x10] sm:$0xff] (%p183_p12) }
 0x1a3   : > { %467 = vst [vmem:[%s449_s29 + $0x10] sm:$0xff] (%p183_p12), %v466_v45 }
 0x1a6   : > { %v468_v47 = vld [vmem:[%s908_s11 + $0x18] sm:$0xff]  ;;  %s751_s11 = scalar_lea.vmem %s750_s19, 128 }
 0x1a7   : > { %469 = vst [vmem:[%s449_s29 + $0x18] sm:$0xff] %v468_v47  ;;  %p753_p3 = scmp.lt.s32.totalorder %s751_s11, %s745_s10 }
 0x1a9   : > { %p754_p4 = por %p753_p3, %p752_p2 }
 0x1ab   : > { %p755_p7 = pnand %p754_p4, %p748_p1 }
 0x1ad   : > { %758 = shalt.err (!%p755_p7)
}
 0x1ae   : > { %s759_s20 = scalar_lea.hbm %s1042_s5, 64  ;;  %s763_s28 = scalar_lea.hbm %s1095_s2, 64 }
 0x1af   : > { %p760_p8 = scmp.ne.s32.totalorder %s1042_s5, %s759_s20  ;;  %p764_p11 = scmp.lt.s32.totalorder %s1042_s5, %s1095_s2 }
 0x1b0   : > { %p765_p12 = scmp.lt.s32.totalorder %s763_s28, %s759_s20 }
 0x1b1   : > { %p761_p9 = pnand %p760_p8, %p883_p5 }
 0x1b2   : > { %p766_p13 = por %p765_p12, %p764_p11 }
 0x1b3   : > { %p762_p10 = pneg %p761_p9 }
 0x1b5   : > { %p767_p0 = pnand %p766_p13, %p762_p10 }
 0x1b7   : > { %770 = shalt.err (!%p767_p0)
}
 0x1b8   : > { %681 = dma.vmem_to_hbm [thread:$0]  (%p883_p5), %s484_s6, 64, %s1042_s5, %s440_s8   ;;  %388 = vxpose.xlu0.b32.cont [3/4] (short) (narrow) %v371_v46, 8  ;;  %v373_v48 = vld [vmem:[#allocation7 + $0x18] sm:$0xff] }
 0x1b9   : > { %s676_s4 = sshll.u32 (%p883_p5), %s476_s17, 2 }
 0x1ba   : > { %s492_s5 = scalar_lea.vmem (%p883_p5), %s1096_s3, %s676_s4 }
 0x1bc   : > { %389 = vxpose.xlu0.b32.end [4/4] (short) (narrow) %v373_v48, 8 }
 0x22c   : > { %v402_v49 = vpop.trf.xlu0 }
 0x22d   : > { %418 = vst [vmem:[%s920_s22] sm:$0x1] %v402_v49 }
 0x231   : > { %489 = sbr.rel (!%p883_p5) target bundleno = 574 (0x23e), region = 80 }
 0x234   : > { %v431_v50 = vld [vmem:[#allocation5] sm:$0xf] }
 0x235   : > { %434 = vst [vmem:[%s144_s21] sm:$0xf] %v431_v50 }
 0x23c   : > { %v509_v51 = vld [vmem:[%s144_s21] sm:$0xf] }
 0x23d   : > { %510 = vst [vmem:[%s492_s5] sm:$0xf] %v509_v51 }
 0x23e PF: > { %p687_p1 = scmp.ge.s32.totalorder %s813_s15, 2  ;;  %s538_s22 = sand.u32 1, %s801_s12  }
 0x23f   : > { %s539_s16 = scalar_lea.sflag [#allocation4], %s538_s22 }
 0x240   : > { %p684_p5 = pnand %p687_p1, %p887_p6 }
 0x242   : > { %p685_p2 = pneg %p684_p5 }
 0x244   : > { %796 = dma.done.wait (%p685_p2), %s539_s16, 64  }
 0x245   : > { %798 = vsyncadd (%p685_p2), %s539_s16, 4294967232  ;;  %p10_p3 = scmp.ge.s32.totalorder %s870_s18, 6   ;;  %s1101_s12 = smov %s805_s13 }
 0x246   : > { %s1102_s13 = smov %s809_s14  ;;  %s1103_s14 = smov %s881_s23 }
 0x247   : > { %s1104_s15 = smov %s870_s18  ;;  %12 = sbr.rel (!%p10_p3) target bundleno = 3 (0x3), region = 221 }
 0x24c   :  { %551 = vsyncpa [#allocation4], 1 }
 0x24d   :  { %553 = vsyncpa [#allocation4 + $0x1], 1 }

// kernel: custom-call.10
= control target key start
LH: loop header
LB: loop body
LE: loop exit
PB: predicated region body
PF: predicated region fallthrough
CT: control target
= control target key end

     0   :  { %s956_s6 = smov 0   ;;  %s958_s7 = smov 0   ;;  %s1120_s0 = inlined_call_operand.vmem [shape: f32[4,1,32,32], index: 0, kind: input, shape index: {}]   ;;  %s1121_s1 = inlined_call_operand.vmem [shape: f32[4,1,32,32], index: 1, kind: output, shape index: {}]  }
   0x1   :  { %s960_s8 = smov 0  }
   0x2 LB: > { %s864_s9 = sadd.s32 4294967295, %s942_s8   ;;  %s33_s10 = sadd.s32 1, %s938_s7  ;;  %s942_s8 = sphi %s960_s8, %s7_s8   ;;  %s938_s7 = sphi %s958_s7, %s1123_s7   ;;  %s934_s6 = sphi %s956_s6, %s1122_s6  }
   0x3   : > { %p35_p0 = scmp.ge.s32.totalorder %s33_s10, 4  ;;  %p866_p1 = scmp.ge.s32.totalorder %s942_s8, 4 }
   0x4   : > { %s49_s11 = sand.u32 (!%p866_p1), 1, %s942_s8   ;;  %s884_s12 = sshll.u32 (!%p866_p1), %s938_s7, 5 }
   0x5   : > { %s1125_s10 = smov (%p35_p0, %s33_s10), 0  ;;  %47 = sbr.rel (%p866_p1) target bundleno = 13 (0xd), region = 16 }
   0x6   : > { %s867_s13 = sshll.u32 (!%p866_p1), %s49_s11, 5  ;;  %s58_s16 = scalar_lea.vmem (!%p866_p1), %s1120_s0, %s884_s12 }
   0x7   : > { %s51_s17 = scalar_lea.vmem (!%p866_p1), [#allocation0], %s867_s13 }
   0xa   : > { %v93_v0 = vld [vmem:[%s58_s16] sm:$0xff]  ;;  %v95_v1 = vld [vmem:[%s58_s16 + $0x8] sm:$0xff]  ;;  %v97_v2 = vld [vmem:[%s58_s16 + $0x10] sm:$0xff] }
   0xb   : > { %94 = vst [vmem:[%s51_s17] sm:$0xff] %v93_v0  ;;  %96 = vst [vmem:[%s51_s17 + $0x8] sm:$0xff] %v95_v1  ;;  %v99_v3 = vld [vmem:[%s58_s16 + $0x18] sm:$0xff] }
   0xc   : > { %98 = vst [vmem:[%s51_s17 + $0x10] sm:$0xff] %v97_v2  ;;  %100 = vst [vmem:[%s51_s17 + $0x18] sm:$0xff] %v99_v3 }
   0xd PF: > { %p870_p2 = scmp.ge.s32.totalorder %s942_s8, 1  ;;  %p105_p3 = scmp.lt.s32.totalorder %s942_s8, 5 }
   0xf   : > { %p106_p4 = pnand %p870_p2, %p105_p3 }
  0x11   : > { %109 = sbr.rel (%p106_p4) target bundleno = 4571 (0x11db), region = 54 }
  0x16   : > { %s112_s18 = sand.u32 1, %s864_s9   ;;  %v123_v4 = vlaneseq  ;;  %v944_v13 = vmov -1.0   ;;  %v945_v57 = vmov 0.0   ;;  %s885_s21 = sshll.u32 %s934_s6, 5 }
  0x17   : > { %s871_s19 = sshll.u32 %s112_s18, 5  ;;  %s755_s24 = scalar_lea.vmem %s1121_s1, %s885_s21 }
  0x18   : > { %v983_v5 = vand.u32 127, %v123_v4  ;;  %v985_v6 = vshrl.u32 %v123_v4, 7  ;;  %s987_s20 = scalar_lea.vmem [#allocation0], %s871_s19 }
  0x19   : > { %v130_v7 = vld [vmem:[%s987_s20] sm:$0xff]  ;;  %v873_v40 = vld [vmem:[%s987_s20 + $0x8] sm:$0xff] }
  0x1a   : > { %vm129_vm0 = vcmp.eq.s32.totalorder %v985_v6, %v983_v5  ;;  %vm125_vm1 = vcmp.lt.s32.totalorder %v983_v5, 32  ;;  %vm134_vm2 = vcmp.ge.s32.totalorder %v985_v6, %v983_v5  ;;  %vm196_vm4 = vcmp.eq.s32.totalorder %v983_v5, 0 }
  0x1b   : > { %v131_v8 = vsel %vm129_vm0, %v130_v7, 0.0  ;;  %vm135_vm3 = vmand %vm134_vm2, %vm125_vm1  ;;  %vm193_vm5 = vcmp.eq.s32.totalorder %v983_v5, %v985_v6  ;;  %v197_v14 = vsel %vm196_vm4, 1.0, %v944_v13  ;;  %vm225_vm6 = vcmp.eq.s32.totalorder %v983_v5, 1 }
  0x1c   : > { %132 = vadd.xlane.f32.xlu0 %v131_v8  ;;  %v136_v10 = vsel %vm135_vm3, %v130_v7, 0.0  ;;  %v198_v15 = vsel %vm193_vm5, %v197_v14, 0.0  ;;  %vm235_vm7 = vcmp.eq.s32.totalorder %v983_v5, 2  ;;  %vm245_vm8 = vcmp.eq.s32.totalorder %v983_v5, 3 }
  0x1d   : > { %vm255_vm9 = vcmp.eq.s32.totalorder %v983_v5, 4  ;;  %v144_v35 = vadd.s32 8, %v985_v6  ;;  %vm265_vm11 = vcmp.eq.s32.totalorder %v983_v5, 5  ;;  %vm275_vm14 = vcmp.eq.s32.totalorder %v983_v5, 6 }
  0x1e   : > { %vm285_vm0 = vcmp.eq.s32.totalorder %v983_v5, 7  ;;  %vm295_vm2 = vcmp.eq.s32.totalorder %v983_v5, 8  ;;  %vm309_vm3 = vcmp.eq.s32.totalorder %v983_v5, 9  ;;  %vm323_vm4 = vcmp.eq.s32.totalorder %v983_v5, 10 }
  0x1f   : > { %vm145_vm10 = vcmp.eq.s32.totalorder %v144_v35, %v983_v5  ;;  %vm150_vm12 = vcmp.ge.s32.totalorder %v144_v35, %v983_v5  ;;  %vm204_vm15 = vcmp.eq.s32.totalorder %v983_v5, %v144_v35  ;;  %vm337_vm5 = vcmp.eq.s32.totalorder %v983_v5, 11 }
  0x20   : > { %v147_v41 = vsel %vm145_vm10, %v873_v40, 0.0  ;;  %vm151_vm13 = vmand %vm150_vm12, %vm125_vm1  ;;  %v205_v58 = vsel %vm204_vm15, -1.0, %v945_v57  ;;  %vm393_vm12 = vcmp.eq.s32.totalorder %v983_v5, 15  ;;  %vm425_vm15 = vcmp.eq.s32.totalorder %v983_v5, 17 }
  0x21   : > { %v152_v48 = vsel %vm151_vm13, %v873_v40, 0.0 }
  0xa5   : > { %v992_v9 = vpop.xlane.xlu0 %132 }
  0xa6   : > { %912 = vrcp.f32 %v992_v9 }
  0xb3   : > { %v1000_v11 = vpop.eup %912 }
  0xb4   : > { %v138_v12 = vmul.f32 %v1000_v11, %v136_v10 }
  0xb6   : > { %139 = vst [vmem:[#allocation2] sm:$0xff] %v138_v12 }
  0xbd   : > { %v221_v16 = vld [vmem:[#allocation2 + $0x1] ss:$0 sm:$0xff]  ;;  %v231_v19 = vld [vmem:[#allocation2 + $0x2] ss:$0 sm:$0xff]  ;;  %v241_v24 = vld [vmem:[#allocation2 + $0x3] ss:$0 sm:$0xff] }
  0xbe   : > { %v222_v17 = vxor.u32 2147483648, %v221_v16  ;;  %v232_v21 = vxor.u32 2147483648, %v231_v19  ;;  %v242_v26 = vxor.u32 2147483648, %v241_v24  ;;  %v251_v29 = vld [vmem:[#allocation2 + $0x4] ss:$0 sm:$0xff] }
  0xbf   : > { %v252_v31 = vxor.u32 2147483648, %v251_v29  ;;  %v261_v34 = vld [vmem:[#allocation2 + $0x5] ss:$0 sm:$0xff]  ;;  %v271_v42 = vld [vmem:[#allocation2 + $0x6] ss:$0 sm:$0xff] }
  0xc0   : > { %v226_v18 = vmul.f32 %v222_v17, %v198_v15  ;;  %v262_v37 = vxor.u32 2147483648, %v261_v34  ;;  %v272_v44 = vxor.u32 2147483648, %v271_v42  ;;  %v281_v51 = vld [vmem:[#allocation2 + $0x7] ss:$0 sm:$0xff] }
  0xc1   : > { %v282_v54 = vxor.u32 2147483648, %v281_v51  ;;  %v160_v51 = vadd.s32 16, %v985_v6 }
  0xc2   : > { %227 = vadd.xlane.f32.xlu0 %v226_v18 }
  0xc3   : > { %vm166_vm10 = vcmp.ge.s32.totalorder %v160_v51, %v983_v5  ;;  %vm211_vm13 = vcmp.eq.s32.totalorder %v983_v5, %v160_v51 }
 0x14b   : > { %v228_v20 = vpop.xlane.xlu0 %227 }
 0x14c   : > { %v229_v22 = vsel %vm225_vm6, %v228_v20, %v198_v15  ;;  %vm351_vm6 = vcmp.eq.s32.totalorder %v983_v5, 12 }
 0x14d   : > { %v236_v23 = vmul.f32 %v232_v21, %v229_v22 }
 0x14f   : > { %237 = vadd.xlane.f32.xlu1 %v236_v23 }
 0x1d8   : > { %v238_v25 = vpop.xlane.xlu1 %237 }
 0x1d9   : > { %v239_v27 = vsel %vm235_vm7, %v238_v25, %v229_v22  ;;  %vm365_vm7 = vcmp.eq.s32.totalorder %v983_v5, 13 }
 0x1da   : > { %v246_v28 = vmul.f32 %v242_v26, %v239_v27 }
 0x1dc   : > { %247 = vadd.xlane.f32.xlu1 %v246_v28 }
 0x265   : > { %v248_v30 = vpop.xlane.xlu1 %247 }
 0x266   : > { %v249_v32 = vsel %vm245_vm8, %v248_v30, %v239_v27  ;;  %vm161_vm8 = vcmp.eq.s32.totalorder %v160_v51, %v983_v5 }
 0x267   : > { %v256_v33 = vmul.f32 %v252_v31, %v249_v32 }
 0x269   : > { %257 = vadd.xlane.f32.xlu0 %v256_v33 }
 0x2f2   : > { %v258_v36 = vpop.xlane.xlu0 %257 }
 0x2f3   : > { %v259_v38 = vsel %vm255_vm9, %v258_v36, %v249_v32  ;;  %vm379_vm9 = vcmp.eq.s32.totalorder %v983_v5, 14 }
 0x2f4   : > { %v266_v39 = vmul.f32 %v262_v37, %v259_v38 }
 0x2f6   : > { %267 = vadd.xlane.f32.xlu1 %v266_v39 }
 0x2fa   : > { %148 = vadd.xlane.f32.xlu1 %v147_v41 }
 0x37f   : > { %v268_v43 = vpop.xlane.xlu1 %267 }
 0x380   : > { %v269_v45 = vsel %vm265_vm11, %v268_v43, %v259_v38  ;;  %vm167_vm11 = vmand %vm166_vm10, %vm125_vm1  ;;  %vm551_vm10 = vcmp.eq.s32.totalorder %v983_v5, 24 }
 0x381   : > { %v276_v46 = vmul.f32 %v272_v44, %v269_v45 }
 0x383   : > { %277 = vadd.xlane.f32.xlu0 %v276_v46  ;;  %v1014_v47 = vpop.xlane.xlu1 %148 }
 0x384   : > { %914 = vrcp.f32 %v1014_v47 }
 0x391   : > { %v1020_v49 = vpop.eup %914 }
 0x392   : > { %v154_v50 = vmul.f32 %v1020_v49, %v152_v48 }
 0x394   : > { %155 = vst [vmem:[#allocation2 + $0x8] sm:$0xff] %v154_v50 }
 0x39b   : > { %v291_v52 = vld [vmem:[#allocation2 + $0x8] ss:$0 sm:$0xff]  ;;  %v305_v63 = vld [vmem:[#allocation2 + $0x9] ss:$0 sm:$0xff]  ;;  %v319_v10 = vld [vmem:[#allocation2 + $0xa] ss:$0 sm:$0xff] }
 0x39c   : > { %v292_v55 = vxor.u32 2147483648, %v291_v52  ;;  %v306_v2 = vxor.u32 2147483648, %v305_v63  ;;  %v320_v14 = vxor.u32 2147483648, %v319_v10  ;;  %v333_v19 = vld [vmem:[#allocation2 + $0xb] ss:$0 sm:$0xff] }
 0x39d   : > { %v334_v22 = vxor.u32 2147483648, %v333_v19  ;;  %v347_v27 = vld [vmem:[#allocation2 + $0xc] ss:$0 sm:$0xff]  ;;  %v361_v35 = vld [vmem:[#allocation2 + $0xd] ss:$0 sm:$0xff] }
 0x39e   : > { %v300_v60 = vmul.f32 %v292_v55, %v205_v58  ;;  %v348_v30 = vxor.u32 2147483648, %v347_v27  ;;  %v362_v38 = vxor.u32 2147483648, %v361_v35  ;;  %v375_v43 = vld [vmem:[#allocation2 + $0xe] ss:$0 sm:$0xff] }
 0x39f   : > { %v376_v46 = vxor.u32 2147483648, %v375_v43 }
 0x40c   : > { %v278_v53 = vpop.xlane.xlu0 %277 }
 0x40d   : > { %v279_v56 = vsel %vm275_vm14, %v278_v53, %v269_v45  ;;  %vm407_vm14 = vcmp.eq.s32.totalorder %v983_v5, 16 }
 0x40e   : > { %v286_v59 = vmul.f32 %v282_v54, %v279_v56 }
 0x410   : > { %287 = vadd.xlane.f32.xlu0 %v286_v59  ;;  %v389_v59 = vld [vmem:[#allocation2 + $0xf] ss:$0 sm:$0xff] }
 0x414   : > { %301 = vadd.xlane.f32.xlu0 %v300_v60 }
 0x499   : > { %v288_v61 = vpop.xlane.xlu0 %287 }
 0x49a   : > { %v289_v62 = vsel %vm285_vm0, %v288_v61, %v279_v56  ;;  %v390_v61 = vxor.u32 2147483648, %v389_v59  ;;  %vm443_vm0 = vcmp.eq.s32.totalorder %v983_v5, 18 }
 0x49b   : > { %v296_v0 = vmul.f32 %v292_v55, %v289_v62  ;;  %v874_v55 = vld [vmem:[%s987_s20 + $0x10] sm:$0xff] }
 0x49d   : > { %v302_v1 = vpop.xlane.xlu0 %301  ;;  %297 = vadd.xlane.f32.xlu1 %v296_v0 }
 0x49e   : > { %v303_v3 = vsel %vm295_vm2, %v302_v1, %v205_v58  ;;  %v163_v58 = vsel %vm161_vm8, %v874_v55, 0.0 }
 0x49f   : > { %v314_v4 = vmul.f32 %v306_v2, %v303_v3 }
 0x4a1   : > { %315 = vadd.xlane.f32.xlu0 %v314_v4 }
 0x526   : > { %v298_v7 = vpop.xlane.xlu1 %297 }
 0x527   : > { %v299_v8 = vsel %vm295_vm2, %v298_v7, %v289_v62  ;;  %vm461_vm2 = vcmp.eq.s32.totalorder %v983_v5, 19 }
 0x528   : > { %v310_v12 = vmul.f32 %v306_v2, %v299_v8 }
 0x52a   : > { %v316_v13 = vpop.xlane.xlu0 %315  ;;  %311 = vadd.xlane.f32.xlu1 %v310_v12 }
 0x52b   : > { %v317_v15 = vsel %vm309_vm3, %v316_v13, %v303_v3  ;;  %v168_v3 = vsel %vm167_vm11, %v874_v55, 0.0  ;;  %vm573_vm11 = vcmp.eq.s32.totalorder %v983_v5, 25 }
 0x52c   : > { %v328_v16 = vmul.f32 %v320_v14, %v317_v15 }
 0x52e   : > { %329 = vadd.xlane.f32.xlu0 %v328_v16 }
 0x5b3   : > { %v312_v17 = vpop.xlane.xlu1 %311 }
 0x5b4   : > { %v313_v18 = vsel %vm309_vm3, %v312_v17, %v299_v8  ;;  %vm479_vm3 = vcmp.eq.s32.totalorder %v983_v5, 20 }
 0x5b5   : > { %v324_v20 = vmul.f32 %v320_v14, %v313_v18 }
 0x5b7   : > { %v330_v21 = vpop.xlane.xlu0 %329  ;;  %325 = vadd.xlane.f32.xlu1 %v324_v20 }
 0x5b8   : > { %v331_v23 = vsel %vm323_vm4, %v330_v21, %v317_v15 }
 0x5b9   : > { %v342_v24 = vmul.f32 %v334_v22, %v331_v23 }
 0x5bb   : > { %343 = vadd.xlane.f32.xlu0 %v342_v24 }
 0x640   : > { %v326_v25 = vpop.xlane.xlu1 %325 }
 0x641   : > { %v327_v26 = vsel %vm323_vm4, %v326_v25, %v313_v18  ;;  %v212_v18 = vsel %vm211_vm13, -1.0, %v945_v57  ;;  %vm497_vm4 = vcmp.eq.s32.totalorder %v983_v5, 21  ;;  %vm617_vm13 = vcmp.eq.s32.totalorder %v983_v5, 27 }
 0x642   : > { %v338_v28 = vmul.f32 %v334_v22, %v327_v26 }
 0x644   : > { %v344_v29 = vpop.xlane.xlu0 %343  ;;  %339 = vadd.xlane.f32.xlu1 %v338_v28 }
 0x645   : > { %v345_v31 = vsel %vm337_vm5, %v344_v29, %v331_v23 }
 0x646   : > { %v356_v32 = vmul.f32 %v348_v30, %v345_v31 }
 0x648   : > { %357 = vadd.xlane.f32.xlu0 %v356_v32 }
 0x6cd   : > { %v340_v33 = vpop.xlane.xlu1 %339 }
 0x6ce   : > { %v341_v34 = vsel %vm337_vm5, %v340_v33, %v327_v26 }
 0x6cf   : > { %v352_v36 = vmul.f32 %v348_v30, %v341_v34 }
 0x6d1   : > { %v358_v37 = vpop.xlane.xlu0 %357  ;;  %353 = vadd.xlane.f32.xlu1 %v352_v36 }
 0x6d2   : > { %v359_v39 = vsel %vm351_vm6, %v358_v37, %v345_v31 }
 0x6d3   : > { %v370_v40 = vmul.f32 %v362_v38, %v359_v39 }
 0x6d5   : > { %371 = vadd.xlane.f32.xlu0 %v370_v40 }
 0x75a   : > { %v354_v41 = vpop.xlane.xlu1 %353 }
 0x75b   : > { %v355_v42 = vsel %vm351_vm6, %v354_v41, %v341_v34  ;;  %vm515_vm6 = vcmp.eq.s32.totalorder %v983_v5, 22 }
 0x75c   : > { %v366_v44 = vmul.f32 %v362_v38, %v355_v42 }
 0x75e   : > { %v372_v45 = vpop.xlane.xlu0 %371  ;;  %367 = vadd.xlane.f32.xlu1 %v366_v44 }
 0x75f   : > { %v373_v48 = vsel %vm365_vm7, %v372_v45, %v359_v39 }
 0x760   : > { %v384_v50 = vmul.f32 %v376_v46, %v373_v48 }
 0x762   : > { %385 = vadd.xlane.f32.xlu0 %v384_v50 }
 0x7e7   : > { %v368_v52 = vpop.xlane.xlu1 %367 }
 0x7e8   : > { %v369_v53 = vsel %vm365_vm7, %v368_v52, %v355_v42 }
 0x7e9   : > { %v380_v54 = vmul.f32 %v376_v46, %v369_v53 }
 0x7eb   : > { %v386_v56 = vpop.xlane.xlu0 %385  ;;  %381 = vadd.xlane.f32.xlu1 %v380_v54 }
 0x7ec   : > { %v387_v60 = vsel %vm379_vm9, %v386_v56, %v373_v48 }
 0x7ed   : > { %v398_v62 = vmul.f32 %v390_v61, %v387_v60 }
 0x7ef   : > { %164 = vadd.xlane.f32.xlu1 %v163_v58 }
 0x7f3   : > { %399 = vadd.xlane.f32.xlu1 %v398_v62 }
 0x874   : > { %v382_v63 = vpop.xlane.xlu1 %381 }
 0x875   : > { %v383_v0 = vsel %vm379_vm9, %v382_v63, %v369_v53 }
 0x876   : > { %v394_v1 = vmul.f32 %v390_v61, %v383_v0 }
 0x878   : > { %395 = vadd.xlane.f32.xlu0 %v394_v1  ;;  %v1037_v2 = vpop.xlane.xlu1 %164 }
 0x879   : > { %916 = vrcp.f32 %v1037_v2 }
 0x87c   : > { %v400_v8 = vpop.xlane.xlu1 %399 }
 0x87d   : > { %v401_v13 = vsel %vm393_vm12, %v400_v8, %v387_v60 }
 0x886   : > { %v1043_v4 = vpop.eup %916 }
 0x887   : > { %v170_v7 = vmul.f32 %v1043_v4, %v168_v3 }
 0x889   : > { %171 = vst [vmem:[#allocation2 + $0x10] sm:$0xff] %v170_v7 }
 0x890   : > { %v403_v10 = vld [vmem:[#allocation2 + $0x10] ss:$0 sm:$0xff]  ;;  %v421_v20 = vld [vmem:[#allocation2 + $0x11] ss:$0 sm:$0xff]  ;;  %v439_v31 = vld [vmem:[#allocation2 + $0x12] ss:$0 sm:$0xff] }
 0x891   : > { %v404_v12 = vxor.u32 2147483648, %v403_v10  ;;  %v422_v22 = vxor.u32 2147483648, %v421_v20  ;;  %v440_v33 = vxor.u32 2147483648, %v439_v31  ;;  %v457_v42 = vld [vmem:[#allocation2 + $0x13] ss:$0 sm:$0xff] }
 0x892   : > { %v458_v44 = vxor.u32 2147483648, %v457_v42  ;;  %v475_v55 = vld [vmem:[#allocation2 + $0x14] ss:$0 sm:$0xff]  ;;  %v493_v7 = vld [vmem:[#allocation2 + $0x15] ss:$0 sm:$0xff] }
 0x893   : > { %v412_v14 = vmul.f32 %v404_v12, %v401_v13  ;;  %v416_v19 = vmul.f32 %v404_v12, %v212_v18  ;;  %v476_v58 = vxor.u32 2147483648, %v475_v55  ;;  %v494_v10 = vxor.u32 2147483648, %v493_v7  ;;  %v511_v20 = vld [vmem:[#allocation2 + $0x16] ss:$0 sm:$0xff] }
 0x895   : > { %413 = vadd.xlane.f32.xlu1 %v412_v14 }
 0x901   : > { %v396_v15 = vpop.xlane.xlu0 %395 }
 0x902   : > { %v397_v16 = vsel %vm393_vm12, %v396_v15, %v383_v0  ;;  %vm595_vm12 = vcmp.eq.s32.totalorder %v983_v5, 26 }
 0x903   : > { %v408_v17 = vmul.f32 %v404_v12, %v397_v16 }
 0x905   : > { %409 = vadd.xlane.f32.xlu0 %v408_v17 }
 0x909   : > { %417 = vadd.xlane.f32.xlu0 %v416_v19 }
 0x91e   : > { %v414_v21 = vpop.xlane.xlu1 %413 }
 0x91f   : > { %v415_v23 = vsel %vm407_vm14, %v414_v21, %v401_v13  ;;  %v176_v21 = vadd.s32 24, %v985_v6 }
 0x920   : > { %v430_v24 = vmul.f32 %v422_v22, %v415_v23 }
 0x921   : > { %vm177_vm5 = vcmp.eq.s32.totalorder %v176_v21, %v983_v5  ;;  %vm182_vm7 = vcmp.ge.s32.totalorder %v176_v21, %v983_v5  ;;  %vm218_vm9 = vcmp.eq.s32.totalorder %v983_v5, %v176_v21 }
 0x922   : > { %431 = vadd.xlane.f32.xlu0 %v430_v24  ;;  %vm183_vm8 = vmand %vm182_vm7, %vm125_vm1  ;;  %vm533_vm1 = vcmp.eq.s32.totalorder %v983_v5, 23 }
 0x98e   : > { %v410_v25 = vpop.xlane.xlu0 %409 }
 0x98f   : > { %v411_v26 = vsel %vm407_vm14, %v410_v25, %v397_v16 }
 0x990   : > { %v426_v27 = vmul.f32 %v422_v22, %v411_v26 }
 0x992   : > { %v418_v28 = vpop.xlane.xlu0 %417  ;;  %427 = vadd.xlane.f32.xlu1 %v426_v27 }
 0x993   : > { %v419_v29 = vsel %vm407_vm14, %v418_v28, %v212_v18  ;;  %vm639_vm14 = vcmp.eq.s32.totalorder %v983_v5, 28 }
 0x994   : > { %v434_v30 = vmul.f32 %v422_v22, %v419_v29 }
 0x996   : > { %435 = vadd.xlane.f32.xlu1 %v434_v30 }
 0x9ab   : > { %v432_v32 = vpop.xlane.xlu0 %431 }
 0x9ac   : > { %v433_v34 = vsel %vm425_vm15, %v432_v32, %v415_v23  ;;  %v512_v23 = vxor.u32 2147483648, %v511_v20 }
 0x9ad   : > { %v448_v35 = vmul.f32 %v440_v33, %v433_v34 }
 0x9af   : > { %449 = vadd.xlane.f32.xlu1 %v448_v35 }
 0xa1b   : > { %v428_v36 = vpop.xlane.xlu1 %427 }
 0xa1c   : > { %v429_v37 = vsel %vm425_vm15, %v428_v36, %v411_v26  ;;  %v875_v26 = vld [vmem:[%s987_s20 + $0x18] sm:$0xff] }
 0xa1d   : > { %v444_v38 = vmul.f32 %v440_v33, %v429_v37  ;;  %v179_v27 = vsel %vm177_vm5, %v875_v26, 0.0  ;;  %vm724_vm5 = vweird.f32 %v992_v9 }
 0xa1f   : > { %445 = vadd.xlane.f32.xlu0 %v444_v38  ;;  %v436_v39 = vpop.xlane.xlu1 %435 }
 0xa20   : > { %v437_v40 = vsel %vm425_vm15, %v436_v39, %v419_v29  ;;  %v184_v39 = vsel %vm183_vm8, %v875_v26, 0.0  ;;  %vm661_vm15 = vcmp.eq.s32.totalorder %v983_v5, 29 }
 0xa21   : > { %v452_v41 = vmul.f32 %v440_v33, %v437_v40  ;;  %v529_v33 = vld [vmem:[#allocation2 + $0x17] ss:$0 sm:$0xff] }
 0xa22   : > { %v530_v35 = vxor.u32 2147483648, %v529_v33 }
 0xa23   : > { %453 = vadd.xlane.f32.xlu0 %v452_v41 }
 0xa38   : > { %v450_v43 = vpop.xlane.xlu1 %449 }
 0xa39   : > { %v451_v45 = vsel %vm443_vm0, %v450_v43, %v433_v34 }
 0xa3a   : > { %v466_v46 = vmul.f32 %v458_v44, %v451_v45 }
 0xa3c   : > { %467 = vadd.xlane.f32.xlu0 %v466_v46 }
 0xaa8   : > { %v446_v48 = vpop.xlane.xlu0 %445 }
 0xaa9   : > { %v447_v50 = vsel %vm443_vm0, %v446_v48, %v429_v37 }
 0xaaa   : > { %v462_v51 = vmul.f32 %v458_v44, %v447_v50 }
 0xaac   : > { %463 = vadd.xlane.f32.xlu1 %v462_v51  ;;  %v454_v52 = vpop.xlane.xlu0 %453 }
 0xaad   : > { %v455_v53 = vsel %vm443_vm0, %v454_v52, %v437_v40  ;;  %vm683_vm0 = vcmp.eq.s32.totalorder %v983_v5, 30 }
 0xaae   : > { %v470_v54 = vmul.f32 %v458_v44, %v455_v53 }
 0xab0   : > { %471 = vadd.xlane.f32.xlu1 %v470_v54  ;;  %v219_v54 = vsel %vm218_vm9, -1.0, %v945_v57 }
 0xac5   : > { %v468_v56 = vpop.xlane.xlu0 %467 }
 0xac6   : > { %v469_v59 = vsel %vm461_vm2, %v468_v56, %v451_v45 }
 0xac7   : > { %v484_v60 = vmul.f32 %v476_v58, %v469_v59 }
 0xac9   : > { %485 = vadd.xlane.f32.xlu1 %v484_v60 }
 0xb35   : > { %v464_v61 = vpop.xlane.xlu1 %463 }
 0xb36   : > { %v465_v62 = vsel %vm461_vm2, %v464_v61, %v447_v50 }
 0xb37   : > { %v480_v63 = vmul.f32 %v476_v58, %v465_v62 }
 0xb39   : > { %481 = vadd.xlane.f32.xlu0 %v480_v63  ;;  %v472_v0 = vpop.xlane.xlu1 %471 }
 0xb3a   : > { %v473_v1 = vsel %vm461_vm2, %v472_v0, %v455_v53  ;;  %vm705_vm2 = vcmp.eq.s32.totalorder %v983_v5, 31 }
 0xb3b   : > { %v488_v3 = vmul.f32 %v476_v58, %v473_v1 }
 0xb3d   : > { %489 = vadd.xlane.f32.xlu0 %v488_v3 }
 0xb52   : > { %v486_v8 = vpop.xlane.xlu1 %485 }
 0xb53   : > { %v487_v12 = vsel %vm479_vm3, %v486_v8, %v469_v59 }
 0xb54   : > { %v502_v13 = vmul.f32 %v494_v10, %v487_v12 }
 0xb56   : > { %503 = vadd.xlane.f32.xlu0 %v502_v13 }
 0xbc2   : > { %v482_v14 = vpop.xlane.xlu0 %481 }
 0xbc3   : > { %v483_v15 = vsel %vm479_vm3, %v482_v14, %v465_v62 }
 0xbc4   : > { %v498_v16 = vmul.f32 %v494_v10, %v483_v15 }
 0xbc6   : > { %499 = vadd.xlane.f32.xlu1 %v498_v16  ;;  %v490_v17 = vpop.xlane.xlu0 %489 }
 0xbc7   : > { %v491_v18 = vsel %vm479_vm3, %v490_v17, %v473_v1  ;;  %vm729_vm3 = vweird.f32 %v1014_v47 }
 0xbc8   : > { %v506_v19 = vmul.f32 %v494_v10, %v491_v18 }
 0xbca   : > { %507 = vadd.xlane.f32.xlu1 %v506_v19 }
 0xbdf   : > { %v504_v22 = vpop.xlane.xlu0 %503 }
 0xbe0   : > { %v505_v24 = vsel %vm497_vm4, %v504_v22, %v487_v12 }
 0xbe1   : > { %v520_v25 = vmul.f32 %v512_v23, %v505_v24 }
 0xbe3   : > { %521 = vadd.xlane.f32.xlu1 %v520_v25 }
 0xbe7   : > { %180 = vadd.xlane.f32.xlu1 %v179_v27 }
 0xc4f   : > { %v500_v28 = vpop.xlane.xlu1 %499 }
 0xc50   : > { %v501_v29 = vsel %vm497_vm4, %v500_v28, %v483_v15 }
 0xc51   : > { %v516_v30 = vmul.f32 %v512_v23, %v501_v29 }
 0xc53   : > { %517 = vadd.xlane.f32.xlu0 %v516_v30  ;;  %v508_v31 = vpop.xlane.xlu1 %507 }
 0xc54   : > { %v509_v6 = vsel %vm497_vm4, %v508_v31, %v491_v18 }
 0xc55   : > { %v524_v32 = vmul.f32 %v512_v23, %v509_v6 }
 0xc57   : > { %525 = vadd.xlane.f32.xlu0 %v524_v32 }
 0xc6c   : > { %v522_v34 = vpop.xlane.xlu1 %521 }
 0xc6d   : > { %v523_v36 = vsel %vm515_vm6, %v522_v34, %v505_v24 }
 0xc6e   : > { %v538_v37 = vmul.f32 %v530_v35, %v523_v36 }
 0xc70   : > { %539 = vadd.xlane.f32.xlu1 %v538_v37  ;;  %v1067_v38 = vpop.xlane.xlu1 %180 }
 0xc71   : > { %918 = vrcp.f32 %v1067_v38  ;;  %vm741_vm4 = vweird.f32 %v1067_v38 }
 0xc7e   : > { %v1073_v40 = vpop.eup %918 }
 0xc7f   : > { %v186_v41 = vmul.f32 %v1073_v40, %v184_v39 }
 0xc81   : > { %187 = vst [vmem:[#allocation2 + $0x18] sm:$0xff] %v186_v41 }
 0xc88   : > { %v547_v50 = vld [vmem:[#allocation2 + $0x18] ss:$0 sm:$0xff]  ;;  %v569_v0 = vld [vmem:[#allocation2 + $0x19] ss:$0 sm:$0xff]  ;;  %v591_v19 = vld [vmem:[#allocation2 + $0x1a] ss:$0 sm:$0xff] }
 0xc89   : > { %v548_v51 = vxor.u32 2147483648, %v547_v50  ;;  %v570_v3 = vxor.u32 2147483648, %v569_v0  ;;  %v592_v21 = vxor.u32 2147483648, %v591_v19  ;;  %v613_v32 = vld [vmem:[#allocation2 + $0x1b] ss:$0 sm:$0xff] }
 0xc8a   : > { %v614_v34 = vxor.u32 2147483648, %v613_v32  ;;  %v635_v50 = vld [vmem:[#allocation2 + $0x1c] ss:$0 sm:$0xff] }
 0xc8b   : > { %v564_v56 = vmul.f32 %v548_v51, %v219_v54 }
 0xcdc   : > { %v518_v42 = vpop.xlane.xlu0 %517 }
 0xcdd   : > { %v519_v43 = vsel %vm515_vm6, %v518_v42, %v501_v29 }
 0xcde   : > { %v534_v44 = vmul.f32 %v530_v35, %v519_v43 }
 0xce0   : > { %535 = vadd.xlane.f32.xlu0 %v534_v44  ;;  %v526_v45 = vpop.xlane.xlu0 %525 }
 0xce1   : > { %v527_v46 = vsel %vm515_vm6, %v526_v45, %v509_v6  ;;  %vm735_vm6 = vweird.f32 %v1037_v2 }
 0xce2   : > { %v542_v48 = vmul.f32 %v530_v35, %v527_v46 }
 0xce4   : > { %543 = vadd.xlane.f32.xlu0 %v542_v48 }
 0xcf9   : > { %v540_v52 = vpop.xlane.xlu1 %539 }
 0xcfa   : > { %v541_v53 = vsel %vm533_vm1, %v540_v52, %v523_v36  ;;  %v636_v52 = vxor.u32 2147483648, %v635_v50 }
 0xcfb   : > { %v556_v55 = vmul.f32 %v548_v51, %v541_v53 }
 0xcfd   : > { %557 = vadd.xlane.f32.xlu0 %v556_v55 }
 0xd01   : > { %565 = vadd.xlane.f32.xlu0 %v564_v56 }
 0xd69   : > { %v536_v58 = vpop.xlane.xlu0 %535 }
 0xd6a   : > { %v537_v59 = vsel %vm533_vm1, %v536_v58, %v519_v43 }
 0xd6b   : > { %v552_v60 = vmul.f32 %v548_v51, %v537_v59 }
 0xd6d   : > { %v544_v61 = vpop.xlane.xlu0 %543  ;;  %553 = vadd.xlane.f32.xlu1 %v552_v60 }
 0xd6e   : > { %v545_v62 = vsel %vm533_vm1, %v544_v61, %v527_v46 }
 0xd6f   : > { %v560_v63 = vmul.f32 %v548_v51, %v545_v62 }
 0xd71   : > { %561 = vadd.xlane.f32.xlu1 %v560_v63 }
 0xd86   : > { %v558_v1 = vpop.xlane.xlu0 %557 }
 0xd87   : > { %v559_v7 = vsel %vm551_vm10, %v558_v1, %v541_v53  ;;  %v657_v1 = vld [vmem:[#allocation2 + $0x1d] ss:$0 sm:$0xff] }
 0xd88   : > { %v578_v8 = vmul.f32 %v570_v3, %v559_v7 }
 0xd8a   : > { %579 = vadd.xlane.f32.xlu0 %v578_v8  ;;  %v566_v57 = vpop.xlane.xlu0 %565 }
 0xd8b   : > { %v567_v10 = vsel %vm551_vm10, %v566_v57, %v219_v54 }
 0xd8c   : > { %v586_v12 = vmul.f32 %v570_v3, %v567_v10 }
 0xd8e   : > { %587 = vadd.xlane.f32.xlu0 %v586_v12 }
 0xdf6   : > { %v554_v13 = vpop.xlane.xlu1 %553 }
 0xdf7   : > { %v555_v14 = vsel %vm551_vm10, %v554_v13, %v537_v59 }
 0xdf8   : > { %v574_v15 = vmul.f32 %v570_v3, %v555_v14 }
 0xdfa   : > { %575 = vadd.xlane.f32.xlu1 %v574_v15  ;;  %v562_v16 = vpop.xlane.xlu1 %561 }
 0xdfb   : > { %v563_v17 = vsel %vm551_vm10, %v562_v16, %v545_v62 }
 0xdfc   : > { %v582_v18 = vmul.f32 %v570_v3, %v563_v17 }
 0xdfe   : > { %583 = vadd.xlane.f32.xlu1 %v582_v18 }
 0xe13   : > { %v580_v20 = vpop.xlane.xlu0 %579 }
 0xe14   : > { %v581_v22 = vsel %vm573_vm11, %v580_v20, %v559_v7  ;;  %v658_v7 = vxor.u32 2147483648, %v657_v1  ;;  %v679_v20 = vld [vmem:[#allocation2 + $0x1e] ss:$0 sm:$0xff] }
 0xe15   : > { %v600_v23 = vmul.f32 %v592_v21, %v581_v22 }
 0xe17   : > { %601 = vadd.xlane.f32.xlu0 %v600_v23  ;;  %v588_v24 = vpop.xlane.xlu0 %587 }
 0xe18   : > { %v589_v25 = vsel %vm573_vm11, %v588_v24, %v567_v10 }
 0xe19   : > { %v608_v26 = vmul.f32 %v592_v21, %v589_v25 }
 0xe1b   : > { %609 = vadd.xlane.f32.xlu0 %v608_v26 }
 0xe83   : > { %v576_v27 = vpop.xlane.xlu1 %575 }
 0xe84   : > { %v577_v28 = vsel %vm573_vm11, %v576_v27, %v555_v14 }
 0xe85   : > { %v596_v29 = vmul.f32 %v592_v21, %v577_v28 }
 0xe87   : > { %597 = vadd.xlane.f32.xlu1 %v596_v29  ;;  %v584_v30 = vpop.xlane.xlu1 %583 }
 0xe88   : > { %v585_v31 = vsel %vm573_vm11, %v584_v30, %v563_v17 }
 0xe89   : > { %v604_v6 = vmul.f32 %v592_v21, %v585_v31 }
 0xe8b   : > { %605 = vadd.xlane.f32.xlu1 %v604_v6 }
 0xea0   : > { %v602_v33 = vpop.xlane.xlu0 %601 }
 0xea1   : > { %v603_v35 = vsel %vm595_vm12, %v602_v33, %v581_v22  ;;  %v680_v22 = vxor.u32 2147483648, %v679_v20  ;;  %v701_v33 = vld [vmem:[#allocation2 + $0x1f] ss:$0 sm:$0xff] }
 0xea2   : > { %v622_v36 = vmul.f32 %v614_v34, %v603_v35 }
 0xea4   : > { %623 = vadd.xlane.f32.xlu0 %v622_v36  ;;  %v610_v37 = vpop.xlane.xlu0 %609 }
 0xea5   : > { %v611_v39 = vsel %vm595_vm12, %v610_v37, %v589_v25 }
 0xea6   : > { %v630_v41 = vmul.f32 %v614_v34, %v611_v39 }
 0xea8   : > { %631 = vadd.xlane.f32.xlu0 %v630_v41 }
 0xf10   : > { %v598_v42 = vpop.xlane.xlu1 %597 }
 0xf11   : > { %v599_v43 = vsel %vm595_vm12, %v598_v42, %v577_v28 }
 0xf12   : > { %v618_v44 = vmul.f32 %v614_v34, %v599_v43 }
 0xf14   : > { %619 = vadd.xlane.f32.xlu1 %v618_v44  ;;  %v606_v45 = vpop.xlane.xlu1 %605 }
 0xf15   : > { %v607_v46 = vsel %vm595_vm12, %v606_v45, %v585_v31 }
 0xf16   : > { %v626_v48 = vmul.f32 %v614_v34, %v607_v46 }
 0xf18   : > { %627 = vadd.xlane.f32.xlu1 %v626_v48 }
 0xf2d   : > { %v624_v51 = vpop.xlane.xlu0 %623 }
 0xf2e   : > { %v625_v53 = vsel %vm617_vm13, %v624_v51, %v603_v35  ;;  %v702_v35 = vxor.u32 2147483648, %v701_v33 }
 0xf2f   : > { %v644_v54 = vmul.f32 %v636_v52, %v625_v53 }
 0xf31   : > { %645 = vadd.xlane.f32.xlu0 %v644_v54  ;;  %v632_v55 = vpop.xlane.xlu0 %631 }
 0xf32   : > { %v633_v56 = vsel %vm617_vm13, %v632_v55, %v611_v39 }
 0xf33   : > { %v652_v58 = vmul.f32 %v636_v52, %v633_v56 }
 0xf35   : > { %653 = vadd.xlane.f32.xlu0 %v652_v58 }
 0xf9d   : > { %v620_v59 = vpop.xlane.xlu1 %619 }
 0xf9e   : > { %v621_v60 = vsel %vm617_vm13, %v620_v59, %v599_v43 }
 0xf9f   : > { %v640_v61 = vmul.f32 %v636_v52, %v621_v60 }
 0xfa1   : > { %641 = vadd.xlane.f32.xlu1 %v640_v61  ;;  %v628_v62 = vpop.xlane.xlu1 %627 }
 0xfa2   : > { %v629_v63 = vsel %vm617_vm13, %v628_v62, %v607_v46 }
 0xfa3   : > { %v648_v0 = vmul.f32 %v636_v52, %v629_v63 }
 0xfa5   : > { %649 = vadd.xlane.f32.xlu1 %v648_v0 }
 0xfba   : > { %v646_v3 = vpop.xlane.xlu0 %645 }
 0xfbb   : > { %v647_v8 = vsel %vm639_vm14, %v646_v3, %v625_v53 }
 0xfbc   : > { %v666_v57 = vmul.f32 %v658_v7, %v647_v8 }
 0xfbe   : > { %667 = vadd.xlane.f32.xlu0 %v666_v57  ;;  %v654_v10 = vpop.xlane.xlu0 %653 }
 0xfbf   : > { %v655_v12 = vsel %vm639_vm14, %v654_v10, %v633_v56 }
 0xfc0   : > { %v674_v13 = vmul.f32 %v658_v7, %v655_v12 }
 0xfc2   : > { %675 = vadd.xlane.f32.xlu0 %v674_v13 }
0x102a   : > { %v642_v14 = vpop.xlane.xlu1 %641 }
0x102b   : > { %v643_v15 = vsel %vm639_vm14, %v642_v14, %v621_v60 }
0x102c   : > { %v662_v16 = vmul.f32 %v658_v7, %v643_v15 }
0x102e   : > { %663 = vadd.xlane.f32.xlu1 %v662_v16  ;;  %v650_v17 = vpop.xlane.xlu1 %649 }
0x102f   : > { %v651_v18 = vsel %vm639_vm14, %v650_v17, %v629_v63 }
0x1030   : > { %v670_v19 = vmul.f32 %v658_v7, %v651_v18 }
0x1032   : > { %671 = vadd.xlane.f32.xlu1 %v670_v19 }
0x1047   : > { %v668_v21 = vpop.xlane.xlu0 %667 }
0x1048   : > { %v669_v23 = vsel %vm661_vm15, %v668_v21, %v647_v8 }
0x1049   : > { %v688_v24 = vmul.f32 %v680_v22, %v669_v23 }
0x104b   : > { %689 = vadd.xlane.f32.xlu0 %v688_v24  ;;  %v676_v25 = vpop.xlane.xlu0 %675 }
0x104c   : > { %v677_v26 = vsel %vm661_vm15, %v676_v25, %v655_v12 }
0x104d   : > { %v696_v27 = vmul.f32 %v680_v22, %v677_v26 }
0x104f   : > { %697 = vadd.xlane.f32.xlu0 %v696_v27 }
0x10b7   : > { %v664_v28 = vpop.xlane.xlu1 %663 }
0x10b8   : > { %v665_v29 = vsel %vm661_vm15, %v664_v28, %v643_v15 }
0x10b9   : > { %v684_v30 = vmul.f32 %v680_v22, %v665_v29 }
0x10bb   : > { %685 = vadd.xlane.f32.xlu1 %v684_v30  ;;  %v672_v31 = vpop.xlane.xlu1 %671 }
0x10bc   : > { %v673_v6 = vsel %vm661_vm15, %v672_v31, %v651_v18 }
0x10bd   : > { %v692_v32 = vmul.f32 %v680_v22, %v673_v6 }
0x10bf   : > { %693 = vadd.xlane.f32.xlu1 %v692_v32 }
0x10d4   : > { %v690_v34 = vpop.xlane.xlu0 %689 }
0x10d5   : > { %v691_v36 = vsel %vm683_vm0, %v690_v34, %v669_v23 }
0x10d6   : > { %v710_v37 = vmul.f32 %v702_v35, %v691_v36 }
0x10d8   : > { %711 = vadd.xlane.f32.xlu0 %v710_v37  ;;  %v698_v39 = vpop.xlane.xlu0 %697 }
0x10d9   : > { %v699_v41 = vsel %vm683_vm0, %v698_v39, %v677_v26 }
0x10da   : > { %v718_v42 = vmul.f32 %v702_v35, %v699_v41 }
0x10dc   : > { %719 = vadd.xlane.f32.xlu0 %v718_v42 }
0x1144   : > { %v686_v43 = vpop.xlane.xlu1 %685 }
0x1145   : > { %v687_v44 = vsel %vm683_vm0, %v686_v43, %v665_v29 }
0x1146   : > { %v706_v45 = vmul.f32 %v702_v35, %v687_v44 }
0x1148   : > { %707 = vadd.xlane.f32.xlu1 %v706_v45  ;;  %v694_v46 = vpop.xlane.xlu1 %693 }
0x1149   : > { %v695_v48 = vsel %vm683_vm0, %v694_v46, %v673_v6 }
0x114a   : > { %v714_v50 = vmul.f32 %v702_v35, %v695_v48 }
0x114c   : > { %715 = vadd.xlane.f32.xlu1 %v714_v50 }
0x1161   : > { %v712_v51 = vpop.xlane.xlu0 %711 }
0x1162   : > { %v713_v52 = vsel %vm705_vm2, %v712_v51, %v691_v36 }
0x1163   : > { %v728_v53 = vmul.f32 %v1020_v49, %v713_v52 }
0x1165   : > { %v730_v54 = vsel %vm729_vm3, %v713_v52, %v728_v53  ;;  %v720_v55 = vpop.xlane.xlu0 %719 }
0x1166   : > { %793 = vst [vmem:[%s755_s24 + $0x8] sm:$0xff] %v730_v54  ;;  %v721_v56 = vsel %vm705_vm2, %v720_v55, %v699_v41 }
0x1167   : > { %v740_v58 = vmul.f32 %v1073_v40, %v721_v56 }
0x1169   : > { %v742_v59 = vsel %vm741_vm4, %v721_v56, %v740_v58 }
0x116a   : > { %797 = vst [vmem:[%s755_s24 + $0x18] sm:$0xff] %v742_v59 }
0x11d1   : > { %v708_v60 = vpop.xlane.xlu1 %707 }
0x11d2   : > { %v709_v61 = vsel %vm705_vm2, %v708_v60, %v687_v44 }
0x11d3   : > { %v723_v49 = vmul.f32 %v1000_v11, %v709_v61 }
0x11d5   : > { %v725_v47 = vsel %vm724_vm5, %v709_v61, %v723_v49  ;;  %v716_v62 = vpop.xlane.xlu1 %715 }
0x11d6   : > { %791 = vst [vmem:[%s755_s24] sm:$0xff] %v725_v47  ;;  %v717_v63 = vsel %vm705_vm2, %v716_v62, %v695_v48 }
0x11d7   : > { %v734_v40 = vmul.f32 %v1043_v4, %v717_v63 }
0x11d9   : > { %v736_v38 = vsel %vm735_vm6, %v717_v63, %v734_v40 }
0x11da   : > { %795 = vst [vmem:[%s755_s24 + $0x10] sm:$0xff] %v736_v38 }
0x11db PF: > { %s7_s8 = sadd.s32 1, %s942_s8   ;;  %s1122_s6 = smov %s938_s7 }
0x11dc   : > { %p4_p5 = scmp.ge.s32.totalorder %s7_s8, 6   ;;  %s1123_s7 = smov %s1125_s10 }
0x11de   :  { %6 = sbr.rel (!%p4_p5) target bundleno = 2 (0x2), region = 158 }

// kernel: metaqda_forward.3
= control target key start
LH: loop header
LB: loop body
LE: loop exit
PB: predicated region body
PF: predicated region fallthrough
CT: control target
= control target key end

     0   :  { %vm19_vm0 = vcmask 261120   ;;  %v342_v21 = vmov 0.0   ;;  %s441_s1 = inlined_call_operand.vmem [shape: bf16[256,32], index: 1, kind: input, shape index: {}]   ;;  %s442_s0 = inlined_call_operand.vmem [shape: bf16[24,256], index: 0, kind: input, shape index: {}]   ;;  %s443_s2 = inlined_call_operand.vmem [shape: f32[1,32], index: 2, kind: input, shape index: {}]   ;;  %s444_s3 = inlined_call_operand.vmem [shape: f32[24,32], index: 3, kind: output, shape index: {}]  }
   0x1   :  { %v321_v0 = vld [vmem:[%s441_s1 + $0x78] sm:$0xff]   ;;  %v323_v2 = vld [vmem:[%s441_s1 + $0x70] sm:$0xff]   ;;  %v325_v4 = vld [vmem:[%s441_s1 + $0x68] sm:$0xff]   ;;  %20 = vst.msk [vmem:[#allocation2] sm:$0xff] %vm19_vm0, %v342_v21 }
   0x2   :  { %v322_v1 = vld [vmem:[%s441_s1 + $0x38] sm:$0xff]   ;;  %276 = vmatprep.subr.bf16.mxu0 %v321_v0  ;;  %304 = vmatprep.subr.bf16.mxu1 %v321_v0  ;;  %v324_v3 = vld [vmem:[%s441_s1 + $0x30] sm:$0xff]   ;;  %v326_v5 = vld [vmem:[%s441_s1 + $0x28] sm:$0xff]   ;;  %21 = vst.msk [vmem:[#allocation2 + $0x8] sm:$0xff] %vm19_vm0, %v342_v21 }
   0x3   :  { %277 = vmatpush3.bf16.msra.mxu0 %v322_v1  ;;  %312 = vmatpush3.bf16.msra.mxu1 %v322_v1  ;;  %v327_v6 = vld [vmem:[%s441_s1 + $0x60] sm:$0xff]   ;;  %v329_v8 = vld [vmem:[%s441_s1 + $0x58] sm:$0xff]   ;;  %v331_v10 = vld [vmem:[%s441_s1 + $0x50] sm:$0xff]   ;;  %22 = vst.msk [vmem:[#allocation2 + $0x10] sm:$0xff] %vm19_vm0, %v342_v21 }
   0x4   :  { %278 = vmatprep.subr.bf16.mxu0 %v323_v2  ;;  %305 = vmatprep.subr.bf16.mxu1 %v323_v2  ;;  %v328_v7 = vld [vmem:[%s441_s1 + $0x20] sm:$0xff]   ;;  %v330_v9 = vld [vmem:[%s441_s1 + $0x18] sm:$0xff]   ;;  %v28_v12 = vld [vmem:[%s442_s0 + $0x10] sm:$0xff] }
   0x5   :  { %v339_v11 = vld [vmem:[%s442_s0 + $0x4] ss:$8 sps:$4 sm:$0xff]   ;;  %v258_v13 = vcombine.high %v28_v12, %v28_v12  ;;  %v332_v14 = vld [vmem:[%s441_s1 + $0x10] sm:$0xff]   ;;  %v337_v19 = vld [vmem:[%s442_s0] ss:$8 sps:$4 sm:$0xff]   ;;  %v257_v20 = vcombine.low %v28_v12, %v28_v12 }
   0x6   :  { %v333_v15 = vld [vmem:[%s441_s1 + $0x48] sm:$0xff]   ;;  %206 = vmatprep.mubr.bf16.mxu0 %v339_v11  ;;  %v335_v17 = vld [vmem:[%s441_s1 + $0x40] sm:$0xff]  }
   0x7   :  { %279 = vmatpush3.bf16.msra.mxu0 %v324_v3  ;;  %313 = vmatpush3.bf16.msra.mxu1 %v324_v3  ;;  %v334_v16 = vld [vmem:[%s441_s1 + $0x8] sm:$0xff]   ;;  %v336_v18 = vld [vmem:[%s441_s1] sm:$0xff]  }
   0x8   :  { %280 = vmatprep.subr.bf16.mxu0 %v325_v4  ;;  %306 = vmatprep.subr.bf16.mxu1 %v325_v4  ;;  %v23_v24 = vld [vmem:[#allocation2] sm:$0xff] }
   0x9   :  { %214 = vmatprep.mubr.bf16.mxu1 %v258_v13  ;;  %v24_v34 = vld [vmem:[#allocation2 + $0x8] sm:$0xff]  ;;  %v275_v39 = vld [vmem:[%s443_s2] ss:$0 sm:$0xff] }
   0xa   :  { %v25_v26 = vld [vmem:[#allocation2 + $0x10] sm:$0xff] }
   0xb   :  { %281 = vmatpush3.bf16.msra.mxu0 %v326_v5  ;;  %314 = vmatpush3.bf16.msra.mxu1 %v326_v5 }
   0xc   :  { %282 = vmatprep.subr.bf16.mxu0 %v327_v6  ;;  %307 = vmatprep.subr.bf16.mxu1 %v327_v6 }
   0xf   :  { %283 = vmatpush3.bf16.msra.mxu0 %v328_v7  ;;  %315 = vmatpush3.bf16.msra.mxu1 %v328_v7 }
  0x10   :  { %284 = vmatprep.subr.bf16.mxu0 %v329_v8  ;;  %308 = vmatprep.subr.bf16.mxu1 %v329_v8 }
  0x13   :  { %285 = vmatpush3.bf16.msra.mxu0 %v330_v9  ;;  %316 = vmatpush3.bf16.msra.mxu1 %v330_v9 }
  0x14   :  { %286 = vmatprep.subr.bf16.mxu0 %v331_v10  ;;  %309 = vmatprep.subr.bf16.mxu1 %v331_v10 }
  0x17   :  { %287 = vmatpush3.bf16.msra.mxu0 %v332_v14  ;;  %317 = vmatpush3.bf16.msra.mxu1 %v332_v14 }
  0x18   :  { %288 = vmatprep.subr.bf16.mxu0 %v333_v15  ;;  %310 = vmatprep.subr.bf16.mxu1 %v333_v15 }
  0x1b   :  { %289 = vmatpush3.bf16.msra.mxu0 %v334_v16  ;;  %318 = vmatpush3.bf16.msra.mxu1 %v334_v16 }
  0x1c   :  { %290 = vmatprep.subr.bf16.mxu0 %v335_v17  ;;  %311 = vmatprep.subr.bf16.mxu1 %v335_v17 }
  0x1f   :  { %291 = vmatpush3.bf16.msra.mxu0 %v336_v18  ;;  %319 = vmatpush3.bf16.msra.mxu1 %v336_v18 }
  0x22   :  { %207 = vmatmul.mubr.bf16.vlgmr.msra.gmra.mxu0 %v337_v19  ;;  %215 = vmatmul.mubr.bf16.vlgmr.msra.gmra.mxu1 %v257_v20 }
  0xe2   :  { %v292_v22 = vpop.f32.mrf.mxu0  ;;  %v298_v23 = vpop.f32.mrf.mxu1 }
  0xe4   :  { %v293_v25 = vpop.f32.mrf.mxu0  ;;  %v299_v27 = vpop.f32.mrf.mxu1 }
  0xe5   :  { %v294_v28 = vadd.f32 %v293_v25, %v292_v22  ;;  %v300_v29 = vadd.f32 %v299_v27, %v298_v23 }
  0xe6   :  { %v295_v30 = vpop.f32.mrf.mxu0  ;;  %v301_v31 = vpop.f32.mrf.mxu1 }
  0xe7   :  { %v222_v32 = vadd.f32 %v294_v28, %v23_v24  ;;  %v224_v33 = vadd.f32 %v300_v29, %v25_v26 }
  0xe8   :  { %v296_v35 = vpop.f32.mrf.mxu0  ;;  %v302_v36 = vpop.f32.mrf.mxu1 }
  0xe9   :  { %226 = vst.msk [vmem:[#allocation2] sm:$0xff] %vm19_vm0, %v222_v32  ;;  %228 = vst.msk [vmem:[#allocation2 + $0x10] sm:$0xff] %vm19_vm0, %v224_v33  ;;  %v297_v37 = vadd.f32 %v296_v35, %v295_v30 }
  0xeb   :  { %v223_v38 = vadd.f32 %v297_v37, %v24_v34 }
  0xed   :  { %227 = vst.msk [vmem:[#allocation2 + $0x8] sm:$0xff] %vm19_vm0, %v223_v38 }
  0xf0   :  { %v232_v40 = vld [vmem:[#allocation2] sm:$0xff]  ;;  %v234_v41 = vld [vmem:[#allocation2 + $0x10] sm:$0xff] }
  0xf1   :  { %v242_v42 = vadd.f32 %v275_v39, %v232_v40  ;;  %v244_v43 = vadd.f32 %v275_v39, %v234_v41 }
  0xf3   :  { %v245_v44 = vmax.f32 %v242_v42, 0.0  ;;  %v247_v45 = vmax.f32 %v244_v43, 0.0 }
  0xf4   :  { %v233_v46 = vld [vmem:[#allocation2 + $0x8] sm:$0xff] }
  0xf5   :  { %248 = vst.msk [vmem:[%s444_s3] sm:$0xff] %vm19_vm0, %v245_v44  ;;  %250 = vst.msk [vmem:[%s444_s3 + $0x10] sm:$0xff] %vm19_vm0, %v247_v45  ;;  %v243_v47 = vadd.f32 %v275_v39, %v233_v46 }
  0xf7   :  { %v246_v48 = vmax.f32 %v243_v47, 0.0 }
  0xf9   :  { %249 = vst.msk [vmem:[%s444_s3 + $0x8] sm:$0xff] %vm19_vm0, %v246_v48 }

// kernel: metaqda_forward.4
= control target key start
LH: loop header
LB: loop body
LE: loop exit
PB: predicated region body
PF: predicated region fallthrough
CT: control target
= control target key end

     0   :  { %12 = vsyncpa [#allocation3], 0  ;;  %s863_s21 = smov 0   ;;  %s969_s0 = inlined_call_operand.vmem [shape: s32[16,1], index: 0, kind: input, shape index: {}]   ;;  %s970_s1 = inlined_call_operand.vmem [shape: f32[16,32], index: 1, kind: input, shape index: {}]   ;;  %s971_s2 = inlined_call_operand.vmem [shape: f32[1,32], index: 2, kind: input, shape index: {}]   ;;  %s972_s3 = inlined_call_operand.vmem [shape: f32[32,32], index: 3, kind: input, shape index: {}]   ;;  %s973_s4 = inlined_call_operand.vmem [shape: f32[2], index: 4, kind: input, shape index: {}]   ;;  %s974_s5 = inlined_call_operand.vmem [shape: f32[4,32,32], index: 5, kind: output, shape index: {0}]   ;;  %s975_s6 = inlined_call_operand.vmem [shape: f32[4,1,32], index: 6, kind: output, shape index: {1}]  }
   0x1 LB: > { %s869_s22 = sadd.s32 4294967295, %s822_s21   ;;  %p706_p0 = scmp.ge.s32.totalorder %s822_s21, 1  ;;  %s822_s21 = sphi %s863_s21, %s18_s21  }
   0x2   : > { %p180_p1 = scmp.lt.s32.totalorder %s822_s21, 5  ;;  %s205_s25 = sshll.u32 %s973_s4, 4  ;;  %s206_s25 = int_to_ptr.vmem [resolvable:$true] %s205_s25 }
   0x3   : > { %p771_p3 = scmp.eq.s32.totalorder %s869_s22, 0  ;;  %s797_s27 = scalar_lea.vmem %s206_s25, 16 }
   0x4   : > { %p876_p2 = pnand %p706_p0, %p180_p1  ;;  %p798_p6 = scmp.ne.s32.totalorder %s206_s25, %s797_s27 }
   0x5   : > { %p805_p10 = scmp.lt.s32.totalorder %s206_s25, %s206_s25  ;;  %p806_p11 = scmp.lt.s32.totalorder %s797_s27, %s797_s27 }
   0x6   : > { %p767_p4 = pneg %p876_p2 }
   0x7   : > { %p807_p12 = por %p806_p11, %p805_p10 }
   0x8   : > { %p768_p5 = pnand %p771_p3, %p767_p4 }
   0xa   : > { %p799_p7 = pneg %p768_p5 }
   0xc   : > { %p800_p8 = pnand %p799_p7, %p798_p6 }
   0xe   : > { %p801_p9 = pneg %p800_p8 }
  0x10   : > { %p808_p13 = pnand %p807_p12, %p801_p9 }
  0x12   : > { %811 = shalt.err (!%p808_p13)
}
  0x13   : > { %s824_s28 = smov [#allocation2]   ;;  %218 = sbr.rel (%p876_p2) target bundleno = 647 (0x287), region = 40 }
  0x14   : > { %770 = dma.vmem_to_smem (!%p768_p5), %s206_s25, 16, %s824_s28, [#allocation3]  }
  0x18   : > { %817 = dma.done.wait (%p771_p3), [#allocation3], 16  }
  0x19   : > { %819 = vsyncadd (%p771_p3), [#allocation3], 4294967280 }
  0x1a   : > { %224 = sfence }
  0x1b   : > { %v259_v0 = vld [vmem:[%s969_s0] sm:$0xff]  ;;  %v260_v1 = vld [vmem:[%s969_s0 + $0x8] sm:$0xff]  ;;  %v261_v2 = vstv %s869_s22  ;;  %vm268_vm0 = vcmask 7168   ;;  %v825_v3 = vmov 0   ;;  %v826_v4 = vmov 0.0   ;;  %s908_s13 = sld [smem:[#allocation2]] }
  0x1c   : > { %vm262_vm1 = vcmp.eq.s32.totalorder %v259_v0, %v261_v2  ;;  %vm263_vm2 = vcmp.eq.s32.totalorder %v260_v1, %v261_v2  ;;  %785 = vset.pattern.permute.xlu0 %v825_v3  ;;  %v258_v11 = vld [vmem:[%s970_s1 + $0x8] sm:$0xff]  ;;  %v257_v12 = vld [vmem:[%s970_s1] sm:$0xff]  ;;  %vm424_vm3 = vcmask 261120   ;;  %s712_s14 = sld [smem:[#allocation2 + $0x1]]  ;;  %s827_s23 = smov 1.0   ;;  %vm622_vm4 = vcmask 253952  }
  0x1d   : > { %v713_v5 = vsel %vm262_vm1, 1.0, %v826_v4  ;;  %v714_v6 = vsel %vm263_vm2, 1.0, %v826_v4  ;;  %739 = vmatprep.subr.mxu0 %v258_v11  ;;  %p247_p1 = scmp.lt.s32.totalorder %s869_s22, 3  ;;  %v442_v40 = vld [vmem:[%s971_s2] sm:$0x1]  ;;  %vm496_vm5 = vcmask 1040384  }
  0x1e   : > { %v270_v7 = vsel %vm268_vm0, %v714_v6, 0.0  ;;  %v269_v8 = vsel %vm268_vm0, %v713_v5, 0.0  ;;  %v786_v10 = vpack.i.bf16 %v714_v6, %v713_v5  ;;  %740 = vmatpush3.msra.mxu0 %v258_v11  ;;  %vm326_vm6 = vcmask 130048   ;;  %v586_v56 = vld [vmem:[%s972_s3 + $0x8] sm:$0xff]  ;;  %v585_v58 = vld [vmem:[%s972_s3] sm:$0xff]  ;;  %v588_v6 = vld [vmem:[%s972_s3 + $0x18] sm:$0xff] }
  0x1f   : > { %v271_v9 = vadd.f32 %v270_v7, %v269_v8  ;;  %741 = vmatprep.subr.mxu0 %v257_v12  ;;  %s980_s22 = smov (!%p247_p1, %s869_s22), 3 }
  0x20   : > { %742 = vmatpush3.msra.mxu0 %v257_v12  ;;  %s254_s8 = scalar_lea.vmem %s975_s6, %s980_s22 }
  0x21   : > { %272 = vadd.xlane.f32.xlu0 %v271_v9  ;;  %v587_v9 = vld [vmem:[%s972_s3 + $0x10] sm:$0xff] }
  0x37   : > { %787 = vperm.xlu0 %785, %v786_v10  }
  0xaa   : > { %v273_v13 = vpop.xlane.xlu0 %272 }
  0xab   : > { %v274_v14 = vrot.slane %v273_v13, 4 }
  0xad   : > { %v275_v15 = vadd.f32 %v274_v14, %v273_v13 }
  0xaf   : > { %v276_v16 = vrot.slane %v275_v15, 2 }
  0xb1   : > { %v277_v17 = vadd.f32 %v276_v16, %v275_v15 }
  0xb2   : > { %v788_v18 = vpop.permute.xlu0 %787 }
  0xb3   : > { %v278_v19 = vrot.slane %v277_v17, 1  ;;  %v790_v20 = vunpack.i.h.bf16 %v788_v18  ;;  %v789_v21 = vunpack.i.l.bf16 %v788_v18 }
  0xb5   : > { %v279_v22 = vadd.f32 %v278_v19, %v277_v17  ;;  %v292_v23 = vmul.f32 %v789_v21, %v257_v12  ;;  %v293_v24 = vmul.f32 %v790_v20, %v258_v11 }
  0xb7   : > { %757 = vpush %v279_v22  ;;  %294 = vxpose.xlu1.b32.start [1/2] (short) (narrow) %v292_v23, 32  ;;  %v425_v25 = vsel %vm424_vm3, %v292_v23, 0.0  ;;  %v426_v26 = vsel %vm424_vm3, %v293_v24, 0.0 }
  0xb8   : > { %v427_v27 = vadd.f32 %v426_v26, %v425_v25 }
  0xba   : > { %v428_v32 = vrot.slane %v427_v27, 4 }
  0xbb   : > { %295 = vxpose.xlu1.b32.end [2/2] (short) (narrow) %v293_v24, 32 }
  0xbc   : > { %v429_v33 = vadd.f32 %v428_v32, %v427_v27 }
  0xbe   : > { %v430_v35 = vrot.slane %v429_v33, 2 }
  0xc0   : > { %v431_v36 = vadd.f32 %v430_v35, %v429_v33 }
  0xc2   : > { %v432_v37 = vrot.slane %v431_v36, 1 }
  0xc4   : > { %v433_v38 = vadd.f32 %v432_v37, %v431_v36 }
  0xe8   : > { %s910_s15 = spop %757 }
  0xe9   : > { %s914_s16 = sadd.f32 %s910_s15, %s908_s13  ;;  %p602_p0 = scmp.gt.f32.partialorder %s910_s15, 0.5 }
  0xea   : > { %s603_s17 = sadd.f32 %s910_s15, %s712_s14  ;;  %s281_s24 = smax.f32 %s827_s23, %s910_s15 }
  0xeb   : > { %v918_v28 = vstv %s914_s16  ;;  %v434_v34 = vstv %s281_s24  ;;  %s607_s10 = sadd.f32 1.0, %s914_s16 }
  0xec   : > { %s724_s18 = sadd.f32 -32.0, %s603_s17  ;;  %791 = vrcp.f32 %v918_v28  ;;  %s727_s17 = sshll.u32 %s980_s22, 5 }
  0xee   : > { %s605_s19 = sadd.f32 1.0, %s724_s18 }
  0xf0   : > { %s978_s19 = smov (!%p602_p0, %s605_s19), 1.0 }
  0xf1   : > { %s608_s20 = smul.f32 %s978_s19, %s914_s16  ;;  %s251_s19 = scalar_lea.vmem %s974_s5, %s727_s17 }
  0xf3   : > { %v609_v29 = vstv %s608_s20 }
  0xf4   : > { %793 = vrcp.f32 %v609_v29 }
  0xf5   : > { %795 = vrcp.f32 %v434_v34 }
  0xf9   : > { %v792_v30 = vpop.eup %791 }
  0xfa   : > { %759 = vpush %v792_v30 }
 0x101   : > { %v794_v31 = vpop.eup %793 }
 0x102   : > { %761 = vpush %v794_v31  ;;  %v796_v39 = vpop.eup %795 }
 0x103   : > { %v436_v41 = vmul.f32 %v796_v39, %v433_v38 }
 0x12b   : > { %s760_s25 = spop %759 }
 0x12c   : > { %s441_s26 = smul.f32 %s760_s25, %s908_s13 }
 0x12d   : > { %s448_s29 = smul.f32 %s760_s25, %s910_s15 }
 0x12e   : > { %v443_v42 = vstv %s441_s26 }
 0x12f   : > { %v444_v43 = vmul.f32 %v443_v42, %v442_v40  ;;  %v449_v44 = vstv %s448_s29 }
 0x130   : > { %v450_v45 = vmul.f32 %v449_v44, %v436_v41 }
 0x132   : > { %v451_v46 = vadd.f32 %v450_v45, %v444_v43 }
 0x133   : > { %v310_v47 = vpop.trf.xlu1  ;;  %s762_s9 = spop %761 }
 0x134   : > { %623 = vst.msk [vmem:[%s254_s8] sm:$0x1] %vm622_vm4, %v451_v46  ;;  %452 = vxpose.xlu1.b32.start.end [1/1] (short) (narrow) %v451_v46, 32  ;;  %749 = vmatprep.subr.msk.mxu1 %vm496_vm5, %v451_v46  ;;  %s612_s13 = smul.f32 %s762_s9, %s607_s10 }
 0x135   : > { %750 = vmatpush3.msk.msra.mxu1 %vm496_vm5, %v451_v46  ;;  %743 = vmatprep.mubr.msk.f32.mxu0 %vm326_vm6, %v310_v47 }
 0x136   : > { %v613_v2 = vstv %s612_s13 }
 0x137   : > { %v311_v48 = vpop.trf.xlu1 }
 0x138   : > { %744 = vmatmul.mubr.msk.f32.vlgmr.msra.gmra.mxu0 %vm326_vm6, %v311_v48 }
 0x13b   : > { %v312_v49 = vpop.trf.xlu1 }
 0x13c   : > { %746 = vmatprep.mubr.msk.f32.mxu0 %vm326_vm6, %v312_v49 }
 0x13f   : > { %v313_v50 = vpop.trf.xlu1 }
 0x140   : > { %747 = vmatmul.mubr.msk.f32.gmra.mxu0 %vm326_vm6, %v313_v50 }
 0x1b0   : > { %v468_v51 = vpop.trf.xlu1 }
 0x1b1   : > { %751 = vmatprep.mubr.msk.f32.mxu1 %vm268_vm0, %v468_v51 }
 0x1b4   : > { %v469_v52 = vpop.trf.xlu1 }
 0x1b5   : > { %752 = vmatmul.mubr.msk.f32.vlgmr.msra.gmra.mxu1 %vm268_vm0, %v469_v52 }
 0x1b8   : > { %v470_v53 = vpop.trf.xlu1 }
 0x1b9   : > { %754 = vmatprep.mubr.msk.f32.mxu1 %vm268_vm0, %v470_v53 }
 0x1bc   : > { %v471_v54 = vpop.trf.xlu1 }
 0x1bd   : > { %755 = vmatmul.mubr.msk.f32.gmra.mxu1 %vm268_vm0, %v471_v54 }
 0x1f8   : > { %v745_v55 = vpop.f32.mrf.mxu0 }
 0x1f9   : > { %v590_v60 = vadd.f32 %v745_v55, %v586_v56 }
 0x1fa   : > { %v405_v57 = vpop.f32.mrf.mxu0 }
 0x1fb   : > { %v589_v63 = vadd.f32 %v585_v58, %v405_v57 }
 0x200   : > { %v748_v3 = vpop.f32.mrf.mxu0 }
 0x201   : > { %v592_v11 = vadd.f32 %v748_v3, %v588_v6 }
 0x202   : > { %v415_v8 = vpop.f32.mrf.mxu0 }
 0x203   : > { %v591_v14 = vadd.f32 %v587_v9, %v415_v8 }
 0x275   : > { %v753_v59 = vpop.f32.mrf.mxu1 }
 0x276   : > { %v595_v61 = vmul.f32 %v753_v59, %v918_v28 }
 0x277   : > { %v566_v62 = vpop.f32.mrf.mxu1 }
 0x278   : > { %v599_v0 = vsub.f32 %v590_v60, %v595_v61  ;;  %v594_v1 = vmul.f32 %v566_v62, %v918_v28 }
 0x27a   : > { %v615_v4 = vmul.f32 %v613_v2, %v599_v0  ;;  %v598_v5 = vsub.f32 %v589_v63, %v594_v1 }
 0x27c   : > { %619 = vst.msk [vmem:[%s251_s19 + $0x8] sm:$0xff] %vm424_vm3, %v615_v4  ;;  %v614_v7 = vmul.f32 %v613_v2, %v598_v5 }
 0x27d   : > { %v756_v10 = vpop.f32.mrf.mxu1 }
 0x27e   : > { %618 = vst.msk [vmem:[%s251_s19] sm:$0xff] %vm424_vm3, %v614_v7  ;;  %v597_v12 = vmul.f32 %v756_v10, %v918_v28 }
 0x27f   : > { %v576_v13 = vpop.f32.mrf.mxu1 }
 0x280   : > { %v601_v15 = vsub.f32 %v592_v11, %v597_v12  ;;  %v596_v16 = vmul.f32 %v576_v13, %v918_v28 }
 0x282   : > { %v617_v17 = vmul.f32 %v613_v2, %v601_v15  ;;  %v600_v18 = vsub.f32 %v591_v14, %v596_v16 }
 0x284   : > { %621 = vst.msk [vmem:[%s251_s19 + $0x18] sm:$0xff] %vm424_vm3, %v617_v17  ;;  %v616_v19 = vmul.f32 %v613_v2, %v600_v18 }
 0x286   : > { %620 = vst.msk [vmem:[%s251_s19 + $0x10] sm:$0xff] %vm424_vm3, %v616_v19 }
 0x287 PF: > { %s18_s21 = sadd.s32 1, %s822_s21  }
 0x288   : > { %p15_p2 = scmp.ge.s32.totalorder %s18_s21, 6  }
 0x28a   :  { %17 = sbr.rel (!%p15_p2) target bundleno = 1 (0x1), region = 84 }
 0x28f   :  { %657 = vsyncpa [#allocation3], 1 }
 0x290   :  { %659 = vsyncpa [#allocation3 + $0x1], 1 }

// kernel: custom-call.9
= control target key start
LH: loop header
LB: loop body
LE: loop exit
PB: predicated region body
PF: predicated region fallthrough
CT: control target
= control target key end

     0   :  { %s955_s6 = smov 0   ;;  %s957_s7 = smov 0   ;;  %s1239_s0 = inlined_call_operand.vmem [shape: f32[4,1,32,32], index: 0, kind: input, shape index: {}]   ;;  %s1240_s1 = inlined_call_operand.vmem [shape: f32[4,1,32,32], index: 1, kind: output, shape index: {}]  }
   0x1   :  { %s959_s8 = smov 0  }
   0x2 LB: > { %s863_s9 = sadd.s32 4294967295, %s941_s8   ;;  %s33_s10 = sadd.s32 1, %s937_s7  ;;  %s941_s8 = sphi %s959_s8, %s7_s8   ;;  %s937_s7 = sphi %s957_s7, %s1242_s7   ;;  %s933_s6 = sphi %s955_s6, %s1241_s6  }
   0x3   : > { %p35_p0 = scmp.ge.s32.totalorder %s33_s10, 4  ;;  %p865_p1 = scmp.ge.s32.totalorder %s941_s8, 4 }
   0x4   : > { %s49_s11 = sand.u32 (!%p865_p1), 1, %s941_s8   ;;  %s883_s12 = sshll.u32 (!%p865_p1), %s937_s7, 5 }
   0x5   : > { %s1244_s10 = smov (%p35_p0, %s33_s10), 0  ;;  %47 = sbr.rel (%p865_p1) target bundleno = 13 (0xd), region = 16 }
   0x6   : > { %s866_s13 = sshll.u32 (!%p865_p1), %s49_s11, 5  ;;  %s58_s16 = scalar_lea.vmem (!%p865_p1), %s1239_s0, %s883_s12 }
   0x7   : > { %s51_s17 = scalar_lea.vmem (!%p865_p1), [#allocation0], %s866_s13 }
   0xa   : > { %v93_v0 = vld [vmem:[%s58_s16] sm:$0xff]  ;;  %v95_v1 = vld [vmem:[%s58_s16 + $0x8] sm:$0xff]  ;;  %v97_v2 = vld [vmem:[%s58_s16 + $0x10] sm:$0xff] }
   0xb   : > { %94 = vst [vmem:[%s51_s17] sm:$0xff] %v93_v0  ;;  %96 = vst [vmem:[%s51_s17 + $0x8] sm:$0xff] %v95_v1  ;;  %v99_v3 = vld [vmem:[%s58_s16 + $0x18] sm:$0xff] }
   0xc   : > { %98 = vst [vmem:[%s51_s17 + $0x10] sm:$0xff] %v97_v2  ;;  %100 = vst [vmem:[%s51_s17 + $0x18] sm:$0xff] %v99_v3 }
   0xd PF: > { %p869_p2 = scmp.ge.s32.totalorder %s941_s8, 1  ;;  %p105_p3 = scmp.lt.s32.totalorder %s941_s8, 5 }
   0xf   : > { %p106_p4 = pnand %p869_p2, %p105_p3 }
  0x11   : > { %109 = sbr.rel (%p106_p4) target bundleno = 4569 (0x11d9), region = 54 }
  0x16   : > { %s112_s18 = sand.u32 1, %s863_s9   ;;  %v123_v4 = vlaneseq  ;;  %v943_v14 = vmov -1.0   ;;  %v944_v52 = vmov 0.0   ;;  %s884_s21 = sshll.u32 %s933_s6, 5 }
  0x17   : > { %s870_s19 = sshll.u32 %s112_s18, 5  ;;  %s754_s24 = scalar_lea.vmem %s1240_s1, %s884_s21 }
  0x18   : > { %v982_v5 = vand.u32 127, %v123_v4  ;;  %v984_v6 = vshrl.u32 %v123_v4, 7  ;;  %s988_s20 = scalar_lea.vmem [#allocation0], %s870_s19 }
  0x19   : > { %v874_v8 = vld [vmem:[%s988_s20 + $0x18] sm:$0xff]  ;;  %v873_v41 = vld [vmem:[%s988_s20 + $0x10] sm:$0xff] }
  0x1a   : > { %vm125_vm0 = vcmp.lt.s32.totalorder %v982_v5, 32  ;;  %v176_v7 = vadd.s32 24, %v984_v6  ;;  %vm217_vm4 = vcmp.eq.s32.totalorder %v982_v5, 31  ;;  %vm225_vm6 = vcmp.eq.s32.totalorder %v982_v5, 30 }
  0x1b   : > { %v218_v15 = vsel %vm217_vm4, 1.0, %v943_v14  ;;  %vm235_vm7 = vcmp.eq.s32.totalorder %v982_v5, 29  ;;  %vm245_vm8 = vcmp.eq.s32.totalorder %v982_v5, 28  ;;  %vm255_vm9 = vcmp.eq.s32.totalorder %v982_v5, 27 }
  0x1c   : > { %vm177_vm1 = vcmp.eq.s32.totalorder %v176_v7, %v982_v5  ;;  %vm182_vm2 = vcmp.le.s32.totalorder %v176_v7, %v982_v5  ;;  %vm214_vm5 = vcmp.eq.s32.totalorder %v982_v5, %v176_v7  ;;  %v160_v36 = vadd.s32 16, %v984_v6 }
  0x1d   : > { %v179_v9 = vsel %vm177_vm1, %v874_v8, 0.0  ;;  %vm183_vm3 = vmand %vm182_vm2, %vm125_vm0  ;;  %v219_v16 = vsel %vm214_vm5, %v218_v15, 0.0  ;;  %vm265_vm11 = vcmp.eq.s32.totalorder %v982_v5, 26  ;;  %vm275_vm15 = vcmp.eq.s32.totalorder %v982_v5, 25 }
  0x1e   : > { %v184_v10 = vsel %vm183_vm3, %v874_v8, 0.0  ;;  %180 = vadd.xlane.f32.xlu0 %v179_v9  ;;  %vm161_vm10 = vcmp.eq.s32.totalorder %v160_v36, %v982_v5  ;;  %vm166_vm12 = vcmp.le.s32.totalorder %v160_v36, %v982_v5  ;;  %vm207_vm14 = vcmp.eq.s32.totalorder %v982_v5, %v160_v36 }
  0x1f   : > { %v163_v42 = vsel %vm161_vm10, %v873_v41, 0.0  ;;  %vm167_vm13 = vmand %vm166_vm12, %vm125_vm0  ;;  %v208_v53 = vsel %vm207_vm14, -1.0, %v944_v52  ;;  %vm295_vm1 = vcmp.eq.s32.totalorder %v982_v5, 23  ;;  %vm285_vm2 = vcmp.eq.s32.totalorder %v982_v5, 24 }
  0x20   : > { %v168_v49 = vsel %vm167_vm13, %v873_v41, 0.0  ;;  %vm309_vm3 = vcmp.eq.s32.totalorder %v982_v5, 22  ;;  %vm323_vm4 = vcmp.eq.s32.totalorder %v982_v5, 21  ;;  %vm337_vm5 = vcmp.eq.s32.totalorder %v982_v5, 20 }
  0x21   : > { %vm393_vm13 = vcmp.eq.s32.totalorder %v982_v5, 16  ;;  %vm407_vm14 = vcmp.eq.s32.totalorder %v982_v5, 15 }
  0xa7   : > { %v995_v11 = vpop.xlane.xlu0 %180 }
  0xa8   : > { %911 = vrcp.f32 %v995_v11 }
  0xb5   : > { %v998_v12 = vpop.eup %911 }
  0xb6   : > { %v186_v13 = vmul.f32 %v998_v12, %v184_v10 }
  0xb8   : > { %187 = vst [vmem:[#allocation2 + $0x18] sm:$0xff] %v186_v13 }
  0xbf   : > { %v221_v17 = vld [vmem:[#allocation2 + $0x1e] ss:$0 sm:$0xff]  ;;  %v231_v20 = vld [vmem:[#allocation2 + $0x1d] ss:$0 sm:$0xff]  ;;  %v241_v25 = vld [vmem:[#allocation2 + $0x1c] ss:$0 sm:$0xff] }
  0xc0   : > { %v222_v18 = vxor.u32 2147483648, %v221_v17  ;;  %v232_v22 = vxor.u32 2147483648, %v231_v20  ;;  %v242_v27 = vxor.u32 2147483648, %v241_v25  ;;  %v251_v30 = vld [vmem:[#allocation2 + $0x1b] ss:$0 sm:$0xff] }
  0xc1   : > { %v252_v32 = vxor.u32 2147483648, %v251_v30  ;;  %v261_v35 = vld [vmem:[#allocation2 + $0x1a] ss:$0 sm:$0xff]  ;;  %v271_v43 = vld [vmem:[#allocation2 + $0x19] ss:$0 sm:$0xff] }
  0xc2   : > { %v226_v19 = vmul.f32 %v222_v18, %v219_v16  ;;  %v262_v38 = vxor.u32 2147483648, %v261_v35  ;;  %v272_v45 = vxor.u32 2147483648, %v271_v43  ;;  %v281_v57 = vld [vmem:[#allocation2 + $0x18] ss:$0 sm:$0xff]  ;;  %v144_v43 = vadd.s32 8, %v984_v6 }
  0xc3   : > { %v282_v59 = vxor.u32 2147483648, %v281_v57 }
  0xc4   : > { %227 = vadd.xlane.f32.xlu0 %v226_v19  ;;  %vm200_vm12 = vcmp.eq.s32.totalorder %v982_v5, %v144_v43 }
 0x14d   : > { %v228_v21 = vpop.xlane.xlu0 %227 }
 0x14e   : > { %v229_v23 = vsel %vm225_vm6, %v228_v21, %v219_v16  ;;  %vm351_vm6 = vcmp.eq.s32.totalorder %v982_v5, 19 }
 0x14f   : > { %v236_v24 = vmul.f32 %v232_v22, %v229_v23 }
 0x151   : > { %237 = vadd.xlane.f32.xlu1 %v236_v24 }
 0x1da   : > { %v238_v26 = vpop.xlane.xlu1 %237 }
 0x1db   : > { %v239_v28 = vsel %vm235_vm7, %v238_v26, %v229_v23  ;;  %vm365_vm7 = vcmp.eq.s32.totalorder %v982_v5, 18 }
 0x1dc   : > { %v246_v29 = vmul.f32 %v242_v27, %v239_v28 }
 0x1de   : > { %247 = vadd.xlane.f32.xlu1 %v246_v29 }
 0x267   : > { %v248_v31 = vpop.xlane.xlu1 %247 }
 0x268   : > { %v249_v33 = vsel %vm245_vm8, %v248_v31, %v239_v28  ;;  %vm145_vm8 = vcmp.eq.s32.totalorder %v144_v43, %v982_v5 }
 0x269   : > { %v256_v34 = vmul.f32 %v252_v32, %v249_v33 }
 0x26b   : > { %257 = vadd.xlane.f32.xlu0 %v256_v34 }
 0x2f4   : > { %v258_v37 = vpop.xlane.xlu0 %257 }
 0x2f5   : > { %v259_v39 = vsel %vm255_vm9, %v258_v37, %v249_v33  ;;  %vm150_vm9 = vcmp.le.s32.totalorder %v144_v43, %v982_v5 }
 0x2f6   : > { %v266_v40 = vmul.f32 %v262_v38, %v259_v39  ;;  %vm151_vm10 = vmand %vm150_vm9, %vm125_vm0  ;;  %vm193_vm9 = vcmp.eq.s32.totalorder %v982_v5, %v984_v6 }
 0x2f8   : > { %267 = vadd.xlane.f32.xlu1 %v266_v40 }
 0x2fc   : > { %164 = vadd.xlane.f32.xlu1 %v163_v42 }
 0x381   : > { %v268_v44 = vpop.xlane.xlu1 %267 }
 0x382   : > { %v269_v46 = vsel %vm265_vm11, %v268_v44, %v259_v39  ;;  %vm379_vm11 = vcmp.eq.s32.totalorder %v982_v5, 17 }
 0x383   : > { %v276_v47 = vmul.f32 %v272_v45, %v269_v46 }
 0x385   : > { %277 = vadd.xlane.f32.xlu0 %v276_v47  ;;  %v1011_v48 = vpop.xlane.xlu1 %164 }
 0x386   : > { %913 = vrcp.f32 %v1011_v48 }
 0x393   : > { %v1017_v50 = vpop.eup %913 }
 0x394   : > { %v170_v51 = vmul.f32 %v1017_v50, %v168_v49  ;;  %v872_v49 = vld [vmem:[%s988_s20 + $0x8] sm:$0xff] }
 0x396   : > { %171 = vst [vmem:[#allocation2 + $0x10] sm:$0xff] %v170_v51  ;;  %v147_v51 = vsel %vm145_vm8, %v872_v49, 0.0 }
 0x39d   : > { %v291_v54 = vld [vmem:[#allocation2 + $0x17] ss:$0 sm:$0xff]  ;;  %v305_v62 = vld [vmem:[#allocation2 + $0x16] ss:$0 sm:$0xff]  ;;  %v319_v8 = vld [vmem:[#allocation2 + $0x15] ss:$0 sm:$0xff] }
 0x39e   : > { %v292_v55 = vxor.u32 2147483648, %v291_v54  ;;  %v306_v63 = vxor.u32 2147483648, %v305_v62  ;;  %v320_v10 = vxor.u32 2147483648, %v319_v8  ;;  %v333_v18 = vld [vmem:[#allocation2 + $0x14] ss:$0 sm:$0xff] }
 0x39f   : > { %v334_v20 = vxor.u32 2147483648, %v333_v18  ;;  %v347_v26 = vld [vmem:[#allocation2 + $0x13] ss:$0 sm:$0xff]  ;;  %v361_v34 = vld [vmem:[#allocation2 + $0x12] ss:$0 sm:$0xff] }
 0x3a0   : > { %v296_v56 = vmul.f32 %v292_v55, %v208_v53  ;;  %v348_v28 = vxor.u32 2147483648, %v347_v26  ;;  %v362_v36 = vxor.u32 2147483648, %v361_v34  ;;  %v375_v42 = vld [vmem:[#allocation2 + $0x11] ss:$0 sm:$0xff] }
 0x3a1   : > { %v376_v45 = vxor.u32 2147483648, %v375_v42 }
 0x3a2   : > { %297 = vadd.xlane.f32.xlu1 %v296_v56 }
 0x40e   : > { %v278_v58 = vpop.xlane.xlu0 %277 }
 0x40f   : > { %v279_v60 = vsel %vm275_vm15, %v278_v58, %v269_v46  ;;  %v152_v58 = vsel %vm151_vm10, %v872_v49, 0.0  ;;  %vm425_vm15 = vcmp.eq.s32.totalorder %v982_v5, 14  ;;  %vm551_vm10 = vcmp.eq.s32.totalorder %v982_v5, 7 }
 0x410   : > { %v286_v61 = vmul.f32 %v282_v59, %v279_v60 }
 0x412   : > { %287 = vadd.xlane.f32.xlu0 %v286_v61 }
 0x42b   : > { %v298_v0 = vpop.xlane.xlu1 %297 }
 0x42c   : > { %v299_v1 = vsel %vm295_vm1, %v298_v0, %v208_v53 }
 0x42d   : > { %v310_v2 = vmul.f32 %v306_v63, %v299_v1 }
 0x42f   : > { %311 = vadd.xlane.f32.xlu1 %v310_v2 }
 0x49b   : > { %v288_v3 = vpop.xlane.xlu0 %287 }
 0x49c   : > { %v289_v4 = vsel %vm285_vm2, %v288_v3, %v279_v60  ;;  %vm461_vm2 = vcmp.eq.s32.totalorder %v982_v5, 12 }
 0x49d   : > { %v300_v7 = vmul.f32 %v292_v55, %v289_v4 }
 0x49f   : > { %301 = vadd.xlane.f32.xlu0 %v300_v7  ;;  %v201_v7 = vsel %vm200_vm12, -1.0, %v944_v52  ;;  %vm595_vm12 = vcmp.eq.s32.totalorder %v982_v5, 5 }
 0x4b8   : > { %v312_v9 = vpop.xlane.xlu1 %311 }
 0x4b9   : > { %v313_v13 = vsel %vm309_vm3, %v312_v9, %v299_v1 }
 0x4ba   : > { %v324_v14 = vmul.f32 %v320_v10, %v313_v13 }
 0x4bc   : > { %325 = vadd.xlane.f32.xlu1 %v324_v14 }
 0x528   : > { %v302_v15 = vpop.xlane.xlu0 %301 }
 0x529   : > { %v303_v16 = vsel %vm295_vm1, %v302_v15, %v289_v4  ;;  %vm443_vm1 = vcmp.eq.s32.totalorder %v982_v5, 13 }
 0x52a   : > { %v314_v17 = vmul.f32 %v306_v63, %v303_v16  ;;  %v389_v63 = vld [vmem:[#allocation2 + $0x10] ss:$0 sm:$0xff] }
 0x52b   : > { %v390_v3 = vxor.u32 2147483648, %v389_v63 }
 0x52c   : > { %315 = vadd.xlane.f32.xlu0 %v314_v17 }
 0x545   : > { %v326_v19 = vpop.xlane.xlu1 %325 }
 0x546   : > { %v327_v21 = vsel %vm323_vm4, %v326_v19, %v313_v13 }
 0x547   : > { %v338_v22 = vmul.f32 %v334_v20, %v327_v21 }
 0x549   : > { %339 = vadd.xlane.f32.xlu1 %v338_v22 }
 0x5b5   : > { %v316_v23 = vpop.xlane.xlu0 %315 }
 0x5b6   : > { %v317_v24 = vsel %vm309_vm3, %v316_v23, %v303_v16  ;;  %vm479_vm3 = vcmp.eq.s32.totalorder %v982_v5, 11 }
 0x5b7   : > { %v328_v25 = vmul.f32 %v320_v10, %v317_v24 }
 0x5b9   : > { %329 = vadd.xlane.f32.xlu0 %v328_v25 }
 0x5d2   : > { %v340_v27 = vpop.xlane.xlu1 %339 }
 0x5d3   : > { %v341_v29 = vsel %vm337_vm5, %v340_v27, %v327_v21 }
 0x5d4   : > { %v352_v30 = vmul.f32 %v348_v28, %v341_v29 }
 0x5d6   : > { %353 = vadd.xlane.f32.xlu1 %v352_v30 }
 0x642   : > { %v330_v31 = vpop.xlane.xlu0 %329 }
 0x643   : > { %v331_v32 = vsel %vm323_vm4, %v330_v31, %v317_v24  ;;  %vm497_vm4 = vcmp.eq.s32.totalorder %v982_v5, 10 }
 0x644   : > { %v342_v33 = vmul.f32 %v334_v20, %v331_v32 }
 0x646   : > { %343 = vadd.xlane.f32.xlu0 %v342_v33 }
 0x65f   : > { %v354_v35 = vpop.xlane.xlu1 %353 }
 0x660   : > { %v355_v37 = vsel %vm351_vm6, %v354_v35, %v341_v29 }
 0x661   : > { %v366_v38 = vmul.f32 %v362_v36, %v355_v37 }
 0x663   : > { %367 = vadd.xlane.f32.xlu1 %v366_v38 }
 0x6cf   : > { %v344_v39 = vpop.xlane.xlu0 %343 }
 0x6d0   : > { %v345_v40 = vsel %vm337_vm5, %v344_v39, %v331_v32  ;;  %vm129_vm5 = vcmp.eq.s32.totalorder %v984_v6, %v982_v5 }
 0x6d1   : > { %v356_v41 = vmul.f32 %v348_v28, %v345_v40 }
 0x6d3   : > { %357 = vadd.xlane.f32.xlu0 %v356_v41 }
 0x6ec   : > { %v368_v44 = vpop.xlane.xlu1 %367 }
 0x6ed   : > { %v369_v46 = vsel %vm365_vm7, %v368_v44, %v355_v37 }
 0x6ee   : > { %v380_v47 = vmul.f32 %v376_v45, %v369_v46 }
 0x6f0   : > { %381 = vadd.xlane.f32.xlu1 %v380_v47 }
 0x6f4   : > { %148 = vadd.xlane.f32.xlu1 %v147_v51 }
 0x75c   : > { %v358_v53 = vpop.xlane.xlu0 %357 }
 0x75d   : > { %v359_v54 = vsel %vm351_vm6, %v358_v53, %v345_v40  ;;  %vm515_vm6 = vcmp.eq.s32.totalorder %v982_v5, 9 }
 0x75e   : > { %v370_v55 = vmul.f32 %v362_v36, %v359_v54 }
 0x760   : > { %371 = vadd.xlane.f32.xlu0 %v370_v55 }
 0x779   : > { %v382_v56 = vpop.xlane.xlu1 %381 }
 0x77a   : > { %v383_v2 = vsel %vm379_vm11, %v382_v56, %v369_v46 }
 0x77b   : > { %v394_v8 = vmul.f32 %v390_v3, %v383_v2 }
 0x77d   : > { %v1055_v57 = vpop.xlane.xlu1 %148 }
 0x77e   : > { %915 = vrcp.f32 %v1055_v57 }
 0x78b   : > { %v1061_v59 = vpop.eup %915 }
 0x78c   : > { %v154_v60 = vmul.f32 %v1061_v59, %v152_v58 }
 0x78e   : > { %155 = vst [vmem:[#allocation2 + $0x8] sm:$0xff] %v154_v60 }
 0x795   : > { %v403_v0 = vld [vmem:[#allocation2 + $0xf] ss:$0 sm:$0xff]  ;;  %v421_v15 = vld [vmem:[#allocation2 + $0xe] ss:$0 sm:$0xff]  ;;  %v439_v28 = vld [vmem:[#allocation2 + $0xd] ss:$0 sm:$0xff] }
 0x796   : > { %v404_v4 = vxor.u32 2147483648, %v403_v0  ;;  %v422_v19 = vxor.u32 2147483648, %v421_v15  ;;  %v440_v31 = vxor.u32 2147483648, %v439_v28  ;;  %v457_v39 = vld [vmem:[#allocation2 + $0xc] ss:$0 sm:$0xff] }
 0x797   : > { %v458_v42 = vxor.u32 2147483648, %v457_v39  ;;  %v475_v53 = vld [vmem:[#allocation2 + $0xb] ss:$0 sm:$0xff] }
 0x798   : > { %v408_v9 = vmul.f32 %v404_v4, %v201_v7  ;;  %v476_v56 = vxor.u32 2147483648, %v475_v53 }
 0x7e9   : > { %v372_v61 = vpop.xlane.xlu0 %371 }
 0x7ea   : > { %v373_v62 = vsel %vm365_vm7, %v372_v61, %v359_v54  ;;  %vm134_vm7 = vcmp.le.s32.totalorder %v984_v6, %v982_v5 }
 0x7eb   : > { %v384_v1 = vmul.f32 %v376_v45, %v373_v62  ;;  %vm135_vm8 = vmand %vm134_vm7, %vm125_vm0  ;;  %vm533_vm0 = vcmp.eq.s32.totalorder %v982_v5, 8 }
 0x7ed   : > { %385 = vadd.xlane.f32.xlu0 %v384_v1 }
 0x7f1   : > { %395 = vadd.xlane.f32.xlu0 %v394_v8 }
 0x7f5   : > { %409 = vadd.xlane.f32.xlu0 %v408_v9 }
 0x876   : > { %v386_v10 = vpop.xlane.xlu0 %385 }
 0x877   : > { %v387_v13 = vsel %vm379_vm11, %v386_v10, %v373_v62  ;;  %vm573_vm11 = vcmp.eq.s32.totalorder %v982_v5, 6 }
 0x878   : > { %v398_v14 = vmul.f32 %v390_v3, %v387_v13 }
 0x87a   : > { %v396_v16 = vpop.xlane.xlu0 %395  ;;  %399 = vadd.xlane.f32.xlu1 %v398_v14 }
 0x87b   : > { %v397_v17 = vsel %vm393_vm13, %v396_v16, %v383_v2  ;;  %v493_v2 = vld [vmem:[#allocation2 + $0xa] ss:$0 sm:$0xff] }
 0x87c   : > { %v412_v18 = vmul.f32 %v404_v4, %v397_v17 }
 0x87e   : > { %413 = vadd.xlane.f32.xlu1 %v412_v18  ;;  %v410_v20 = vpop.xlane.xlu0 %409 }
 0x87f   : > { %v411_v21 = vsel %vm407_vm14, %v410_v20, %v201_v7  ;;  %v494_v7 = vxor.u32 2147483648, %v493_v2 }
 0x880   : > { %v426_v22 = vmul.f32 %v422_v19, %v411_v21 }
 0x882   : > { %427 = vadd.xlane.f32.xlu1 %v426_v22 }
 0x903   : > { %v400_v23 = vpop.xlane.xlu1 %399 }
 0x904   : > { %v401_v24 = vsel %vm393_vm13, %v400_v23, %v387_v13  ;;  %vm617_vm13 = vcmp.eq.s32.totalorder %v982_v5, 4 }
 0x905   : > { %v416_v25 = vmul.f32 %v404_v4, %v401_v24 }
 0x907   : > { %417 = vadd.xlane.f32.xlu0 %v416_v25  ;;  %v414_v26 = vpop.xlane.xlu1 %413 }
 0x908   : > { %v415_v27 = vsel %vm407_vm14, %v414_v26, %v397_v17  ;;  %v511_v17 = vld [vmem:[#allocation2 + $0x9] ss:$0 sm:$0xff] }
 0x909   : > { %v430_v29 = vmul.f32 %v422_v19, %v415_v27  ;;  %v512_v20 = vxor.u32 2147483648, %v511_v17 }
 0x90b   : > { %431 = vadd.xlane.f32.xlu0 %v430_v29  ;;  %v428_v30 = vpop.xlane.xlu1 %427  ;;  %v130_v29 = vld [vmem:[%s988_s20] sm:$0xff] }
 0x90c   : > { %v429_v32 = vsel %vm425_vm15, %v428_v30, %v411_v21  ;;  %v131_v30 = vsel %vm129_vm5, %v130_v29, 0.0  ;;  %vm728_vm5 = vweird.f32 %v1055_v57 }
 0x90d   : > { %v444_v33 = vmul.f32 %v440_v31, %v429_v32 }
 0x90f   : > { %445 = vadd.xlane.f32.xlu0 %v444_v33 }
 0x990   : > { %v418_v34 = vpop.xlane.xlu0 %417 }
 0x991   : > { %v419_v35 = vsel %vm407_vm14, %v418_v34, %v401_v24  ;;  %v529_v34 = vld [vmem:[#allocation2 + $0x8] ss:$0 sm:$0xff]  ;;  %vm639_vm14 = vcmp.eq.s32.totalorder %v982_v5, 3 }
 0x992   : > { %v434_v36 = vmul.f32 %v422_v19, %v419_v35 }
 0x994   : > { %435 = vadd.xlane.f32.xlu1 %v434_v36  ;;  %v432_v37 = vpop.xlane.xlu0 %431 }
 0x995   : > { %v433_v38 = vsel %vm425_vm15, %v432_v37, %v415_v27 }
 0x996   : > { %v448_v40 = vmul.f32 %v440_v31, %v433_v38 }
 0x998   : > { %449 = vadd.xlane.f32.xlu1 %v448_v40  ;;  %v446_v41 = vpop.xlane.xlu0 %445 }
 0x999   : > { %v447_v43 = vsel %vm443_vm1, %v446_v41, %v429_v32 }
 0x99a   : > { %v462_v44 = vmul.f32 %v458_v42, %v447_v43 }
 0x99c   : > { %463 = vadd.xlane.f32.xlu1 %v462_v44 }
 0xa1d   : > { %v436_v45 = vpop.xlane.xlu1 %435 }
 0xa1e   : > { %v437_v46 = vsel %vm425_vm15, %v436_v45, %v419_v35  ;;  %vm661_vm15 = vcmp.eq.s32.totalorder %v982_v5, 2 }
 0xa1f   : > { %v452_v47 = vmul.f32 %v440_v31, %v437_v46 }
 0xa21   : > { %453 = vadd.xlane.f32.xlu0 %v452_v47  ;;  %v450_v49 = vpop.xlane.xlu1 %449 }
 0xa22   : > { %v451_v51 = vsel %vm443_vm1, %v450_v49, %v433_v38  ;;  %v530_v38 = vxor.u32 2147483648, %v529_v34 }
 0xa23   : > { %v466_v54 = vmul.f32 %v458_v42, %v451_v51 }
 0xa25   : > { %467 = vadd.xlane.f32.xlu0 %v466_v54  ;;  %v464_v55 = vpop.xlane.xlu1 %463 }
 0xa26   : > { %v465_v58 = vsel %vm461_vm2, %v464_v55, %v447_v43  ;;  %v136_v43 = vsel %vm135_vm8, %v130_v29, 0.0 }
 0xa27   : > { %v480_v60 = vmul.f32 %v476_v56, %v465_v58 }
 0xa29   : > { %481 = vadd.xlane.f32.xlu0 %v480_v60 }
 0xaaa   : > { %v454_v61 = vpop.xlane.xlu0 %453 }
 0xaab   : > { %v455_v62 = vsel %vm443_vm1, %v454_v61, %v437_v46  ;;  %v194_v46 = vsel %vm193_vm9, -1.0, %v944_v52  ;;  %vm683_vm1 = vcmp.eq.s32.totalorder %v982_v5, 1 }
 0xaac   : > { %v470_v63 = vmul.f32 %v458_v42, %v455_v62 }
 0xaae   : > { %471 = vadd.xlane.f32.xlu1 %v470_v63  ;;  %v468_v0 = vpop.xlane.xlu0 %467 }
 0xaaf   : > { %v469_v1 = vsel %vm461_vm2, %v468_v0, %v451_v51 }
 0xab0   : > { %v484_v3 = vmul.f32 %v476_v56, %v469_v1 }
 0xab2   : > { %485 = vadd.xlane.f32.xlu1 %v484_v3  ;;  %v482_v4 = vpop.xlane.xlu0 %481 }
 0xab3   : > { %v483_v8 = vsel %vm479_vm3, %v482_v4, %v465_v58 }
 0xab4   : > { %v498_v9 = vmul.f32 %v494_v7, %v483_v8 }
 0xab6   : > { %499 = vadd.xlane.f32.xlu1 %v498_v9 }
 0xb37   : > { %v472_v10 = vpop.xlane.xlu1 %471 }
 0xb38   : > { %v473_v13 = vsel %vm461_vm2, %v472_v10, %v455_v62  ;;  %vm704_vm2 = vcmp.eq.s32.totalorder %v982_v5, 0 }
 0xb39   : > { %v488_v14 = vmul.f32 %v476_v56, %v473_v13 }
 0xb3b   : > { %489 = vadd.xlane.f32.xlu0 %v488_v14  ;;  %v486_v15 = vpop.xlane.xlu1 %485 }
 0xb3c   : > { %v487_v16 = vsel %vm479_vm3, %v486_v15, %v469_v1 }
 0xb3d   : > { %v502_v18 = vmul.f32 %v494_v7, %v487_v16 }
 0xb3f   : > { %503 = vadd.xlane.f32.xlu0 %v502_v18  ;;  %v500_v19 = vpop.xlane.xlu1 %499 }
 0xb40   : > { %v501_v21 = vsel %vm497_vm4, %v500_v19, %v483_v8 }
 0xb41   : > { %v516_v22 = vmul.f32 %v512_v20, %v501_v21 }
 0xb43   : > { %517 = vadd.xlane.f32.xlu0 %v516_v22 }
 0xbc4   : > { %v490_v23 = vpop.xlane.xlu0 %489 }
 0xbc5   : > { %v491_v24 = vsel %vm479_vm3, %v490_v23, %v473_v13 }
 0xbc6   : > { %v506_v25 = vmul.f32 %v494_v7, %v491_v24 }
 0xbc8   : > { %507 = vadd.xlane.f32.xlu1 %v506_v25  ;;  %v504_v26 = vpop.xlane.xlu0 %503 }
 0xbc9   : > { %v505_v27 = vsel %vm497_vm4, %v504_v26, %v487_v16 }
 0xbca   : > { %v520_v28 = vmul.f32 %v512_v20, %v505_v27 }
 0xbcc   : > { %521 = vadd.xlane.f32.xlu1 %v520_v28  ;;  %v518_v31 = vpop.xlane.xlu0 %517 }
 0xbcd   : > { %v519_v36 = vsel %vm515_vm6, %v518_v31, %v501_v21 }
 0xbce   : > { %v534_v40 = vmul.f32 %v530_v38, %v519_v36 }
 0xbd0   : > { %132 = vadd.xlane.f32.xlu1 %v131_v30 }
 0xc51   : > { %v508_v32 = vpop.xlane.xlu1 %507 }
 0xc52   : > { %v509_v33 = vsel %vm497_vm4, %v508_v32, %v491_v24  ;;  %vm734_vm4 = vweird.f32 %v1011_v48 }
 0xc53   : > { %v524_v35 = vmul.f32 %v512_v20, %v509_v33 }
 0xc55   : > { %525 = vadd.xlane.f32.xlu0 %v524_v35  ;;  %v522_v37 = vpop.xlane.xlu1 %521 }
 0xc56   : > { %v523_v39 = vsel %vm515_vm6, %v522_v37, %v505_v27 }
 0xc57   : > { %v538_v41 = vmul.f32 %v530_v38, %v523_v39 }
 0xc59   : > { %535 = vadd.xlane.f32.xlu0 %v534_v40  ;;  %539 = vadd.xlane.f32.xlu1 %v538_v41  ;;  %v1124_v42 = vpop.xlane.xlu1 %132 }
 0xc5a   : > { %917 = vrcp.f32 %v1124_v42  ;;  %vm723_vm3 = vweird.f32 %v1124_v42 }
 0xc67   : > { %v1131_v44 = vpop.eup %917 }
 0xc68   : > { %v138_v45 = vmul.f32 %v1131_v44, %v136_v43 }
 0xc6a   : > { %139 = vst [vmem:[#allocation2] sm:$0xff] %v138_v45 }
 0xc71   : > { %v547_v47 = vld [vmem:[#allocation2 + $0x7] ss:$0 sm:$0xff]  ;;  %v569_v62 = vld [vmem:[#allocation2 + $0x6] ss:$0 sm:$0xff]  ;;  %v591_v16 = vld [vmem:[#allocation2 + $0x5] ss:$0 sm:$0xff] }
 0xc72   : > { %v548_v49 = vxor.u32 2147483648, %v547_v47  ;;  %v570_v63 = vxor.u32 2147483648, %v569_v62  ;;  %v592_v18 = vxor.u32 2147483648, %v591_v16  ;;  %v613_v30 = vld [vmem:[#allocation2 + $0x4] ss:$0 sm:$0xff] }
 0xc73   : > { %v614_v32 = vxor.u32 2147483648, %v613_v30 }
 0xc74   : > { %v552_v51 = vmul.f32 %v548_v49, %v194_v46 }
 0xc76   : > { %553 = vadd.xlane.f32.xlu1 %v552_v51 }
 0xcde   : > { %v526_v53 = vpop.xlane.xlu0 %525 }
 0xcdf   : > { %v527_v54 = vsel %vm515_vm6, %v526_v53, %v509_v33  ;;  %vm740_vm6 = vweird.f32 %v995_v11 }
 0xce0   : > { %v542_v55 = vmul.f32 %v530_v38, %v527_v54 }
 0xce2   : > { %543 = vadd.xlane.f32.xlu0 %v542_v55  ;;  %v536_v56 = vpop.xlane.xlu0 %535  ;;  %v540_v58 = vpop.xlane.xlu1 %539 }
 0xce3   : > { %v537_v60 = vsel %vm533_vm0, %v536_v56, %v519_v36  ;;  %v541_v6 = vsel %vm533_vm0, %v540_v58, %v523_v39 }
 0xce4   : > { %v556_v52 = vmul.f32 %v548_v49, %v537_v60  ;;  %v560_v61 = vmul.f32 %v548_v49, %v541_v6 }
 0xce6   : > { %557 = vadd.xlane.f32.xlu0 %v556_v52  ;;  %561 = vadd.xlane.f32.xlu1 %v560_v61 }
 0xcff   : > { %v554_v0 = vpop.xlane.xlu1 %553 }
 0xd00   : > { %v555_v1 = vsel %vm551_vm10, %v554_v0, %v194_v46  ;;  %v635_v46 = vld [vmem:[#allocation2 + $0x3] ss:$0 sm:$0xff] }
 0xd01   : > { %v574_v2 = vmul.f32 %v570_v63, %v555_v1 }
 0xd03   : > { %575 = vadd.xlane.f32.xlu1 %v574_v2 }
 0xd6b   : > { %v544_v3 = vpop.xlane.xlu0 %543 }
 0xd6c   : > { %v545_v4 = vsel %vm533_vm0, %v544_v3, %v527_v54 }
 0xd6d   : > { %v564_v7 = vmul.f32 %v548_v49, %v545_v4  ;;  %v636_v49 = vxor.u32 2147483648, %v635_v46 }
 0xd6f   : > { %565 = vadd.xlane.f32.xlu0 %v564_v7  ;;  %v558_v8 = vpop.xlane.xlu0 %557  ;;  %v562_v9 = vpop.xlane.xlu1 %561 }
 0xd70   : > { %v559_v10 = vsel %vm551_vm10, %v558_v8, %v537_v60  ;;  %v563_v13 = vsel %vm551_vm10, %v562_v9, %v541_v6 }
 0xd71   : > { %v578_v14 = vmul.f32 %v570_v63, %v559_v10  ;;  %v582_v15 = vmul.f32 %v570_v63, %v563_v13 }
 0xd73   : > { %579 = vadd.xlane.f32.xlu0 %v578_v14  ;;  %583 = vadd.xlane.f32.xlu1 %v582_v15 }
 0xd8c   : > { %v576_v17 = vpop.xlane.xlu1 %575 }
 0xd8d   : > { %v577_v19 = vsel %vm573_vm11, %v576_v17, %v555_v1  ;;  %v679_v17 = vld [vmem:[#allocation2 + $0x1] ss:$0 sm:$0xff] }
 0xd8e   : > { %v596_v20 = vmul.f32 %v592_v18, %v577_v19 }
 0xd90   : > { %597 = vadd.xlane.f32.xlu1 %v596_v20 }
 0xdf8   : > { %v566_v21 = vpop.xlane.xlu0 %565 }
 0xdf9   : > { %v567_v22 = vsel %vm551_vm10, %v566_v21, %v545_v4 }
 0xdfa   : > { %v586_v23 = vmul.f32 %v570_v63, %v567_v22  ;;  %v657_v63 = vld [vmem:[#allocation2 + $0x2] ss:$0 sm:$0xff] }
 0xdfb   : > { %v658_v1 = vxor.u32 2147483648, %v657_v63 }
 0xdfc   : > { %587 = vadd.xlane.f32.xlu0 %v586_v23  ;;  %v580_v24 = vpop.xlane.xlu0 %579  ;;  %v584_v25 = vpop.xlane.xlu1 %583 }
 0xdfd   : > { %v581_v26 = vsel %vm573_vm11, %v580_v24, %v559_v10  ;;  %v585_v27 = vsel %vm573_vm11, %v584_v25, %v563_v13 }
 0xdfe   : > { %v600_v28 = vmul.f32 %v592_v18, %v581_v26  ;;  %v604_v29 = vmul.f32 %v592_v18, %v585_v27 }
 0xe00   : > { %601 = vadd.xlane.f32.xlu0 %v600_v28  ;;  %605 = vadd.xlane.f32.xlu1 %v604_v29 }
 0xe19   : > { %v598_v31 = vpop.xlane.xlu1 %597 }
 0xe1a   : > { %v599_v33 = vsel %vm595_vm12, %v598_v31, %v577_v19  ;;  %v680_v19 = vxor.u32 2147483648, %v679_v17  ;;  %v700_v31 = vld [vmem:[#allocation2] ss:$0 sm:$0xff] }
 0xe1b   : > { %v618_v34 = vmul.f32 %v614_v32, %v599_v33 }
 0xe1d   : > { %619 = vadd.xlane.f32.xlu1 %v618_v34 }
 0xe85   : > { %v588_v35 = vpop.xlane.xlu0 %587 }
 0xe86   : > { %v589_v36 = vsel %vm573_vm11, %v588_v35, %v567_v22 }
 0xe87   : > { %v608_v37 = vmul.f32 %v592_v18, %v589_v36 }
 0xe89   : > { %609 = vadd.xlane.f32.xlu0 %v608_v37  ;;  %v602_v38 = vpop.xlane.xlu0 %601  ;;  %v606_v39 = vpop.xlane.xlu1 %605 }
 0xe8a   : > { %v603_v40 = vsel %vm595_vm12, %v602_v38, %v581_v26  ;;  %v607_v41 = vsel %vm595_vm12, %v606_v39, %v585_v27 }
 0xe8b   : > { %v622_v43 = vmul.f32 %v614_v32, %v603_v40  ;;  %v626_v45 = vmul.f32 %v614_v32, %v607_v41 }
 0xe8d   : > { %623 = vadd.xlane.f32.xlu0 %v622_v43  ;;  %627 = vadd.xlane.f32.xlu1 %v626_v45 }
 0xea6   : > { %v620_v47 = vpop.xlane.xlu1 %619 }
 0xea7   : > { %v621_v51 = vsel %vm617_vm13, %v620_v47, %v599_v33  ;;  %v701_v33 = vxor.u32 2147483648, %v700_v31 }
 0xea8   : > { %v640_v53 = vmul.f32 %v636_v49, %v621_v51 }
 0xeaa   : > { %641 = vadd.xlane.f32.xlu1 %v640_v53 }
 0xf12   : > { %v610_v54 = vpop.xlane.xlu0 %609 }
 0xf13   : > { %v611_v55 = vsel %vm595_vm12, %v610_v54, %v589_v36 }
 0xf14   : > { %v630_v56 = vmul.f32 %v614_v32, %v611_v55 }
 0xf16   : > { %631 = vadd.xlane.f32.xlu0 %v630_v56  ;;  %v624_v58 = vpop.xlane.xlu0 %623  ;;  %v628_v60 = vpop.xlane.xlu1 %627 }
 0xf17   : > { %v625_v6 = vsel %vm617_vm13, %v624_v58, %v603_v40  ;;  %v629_v52 = vsel %vm617_vm13, %v628_v60, %v607_v41 }
 0xf18   : > { %v644_v61 = vmul.f32 %v636_v49, %v625_v6  ;;  %v648_v62 = vmul.f32 %v636_v49, %v629_v52 }
 0xf1a   : > { %645 = vadd.xlane.f32.xlu0 %v644_v61  ;;  %649 = vadd.xlane.f32.xlu1 %v648_v62 }
 0xf33   : > { %v642_v0 = vpop.xlane.xlu1 %641 }
 0xf34   : > { %v643_v2 = vsel %vm639_vm14, %v642_v0, %v621_v51 }
 0xf35   : > { %v662_v3 = vmul.f32 %v658_v1, %v643_v2 }
 0xf37   : > { %663 = vadd.xlane.f32.xlu1 %v662_v3 }
 0xf9f   : > { %v632_v4 = vpop.xlane.xlu0 %631 }
 0xfa0   : > { %v633_v7 = vsel %vm617_vm13, %v632_v4, %v611_v55 }
 0xfa1   : > { %v652_v8 = vmul.f32 %v636_v49, %v633_v7 }
 0xfa3   : > { %653 = vadd.xlane.f32.xlu0 %v652_v8  ;;  %v646_v9 = vpop.xlane.xlu0 %645  ;;  %v650_v10 = vpop.xlane.xlu1 %649 }
 0xfa4   : > { %v647_v13 = vsel %vm639_vm14, %v646_v9, %v625_v6  ;;  %v651_v14 = vsel %vm639_vm14, %v650_v10, %v629_v52 }
 0xfa5   : > { %v666_v15 = vmul.f32 %v658_v1, %v647_v13  ;;  %v670_v16 = vmul.f32 %v658_v1, %v651_v14 }
 0xfa7   : > { %667 = vadd.xlane.f32.xlu0 %v666_v15  ;;  %671 = vadd.xlane.f32.xlu1 %v670_v16 }
 0xfc0   : > { %v664_v18 = vpop.xlane.xlu1 %663 }
 0xfc1   : > { %v665_v20 = vsel %vm661_vm15, %v664_v18, %v643_v2 }
 0xfc2   : > { %v684_v21 = vmul.f32 %v680_v19, %v665_v20 }
 0xfc4   : > { %685 = vadd.xlane.f32.xlu1 %v684_v21 }
0x102c   : > { %v654_v22 = vpop.xlane.xlu0 %653 }
0x102d   : > { %v655_v23 = vsel %vm639_vm14, %v654_v22, %v633_v7 }
0x102e   : > { %v674_v24 = vmul.f32 %v658_v1, %v655_v23 }
0x1030   : > { %675 = vadd.xlane.f32.xlu0 %v674_v24  ;;  %v668_v25 = vpop.xlane.xlu0 %667  ;;  %v672_v26 = vpop.xlane.xlu1 %671 }
0x1031   : > { %v669_v27 = vsel %vm661_vm15, %v668_v25, %v647_v13  ;;  %v673_v28 = vsel %vm661_vm15, %v672_v26, %v651_v14 }
0x1032   : > { %v688_v29 = vmul.f32 %v680_v19, %v669_v27  ;;  %v692_v30 = vmul.f32 %v680_v19, %v673_v28 }
0x1034   : > { %689 = vadd.xlane.f32.xlu0 %v688_v29  ;;  %693 = vadd.xlane.f32.xlu1 %v692_v30 }
0x104d   : > { %v686_v32 = vpop.xlane.xlu1 %685 }
0x104e   : > { %v687_v34 = vsel %vm683_vm1, %v686_v32, %v665_v20 }
0x104f   : > { %v705_v35 = vmul.f32 %v701_v33, %v687_v34 }
0x1051   : > { %706 = vadd.xlane.f32.xlu1 %v705_v35 }
0x10b9   : > { %v676_v36 = vpop.xlane.xlu0 %675 }
0x10ba   : > { %v677_v37 = vsel %vm661_vm15, %v676_v36, %v655_v23 }
0x10bb   : > { %v696_v38 = vmul.f32 %v680_v19, %v677_v37 }
0x10bd   : > { %697 = vadd.xlane.f32.xlu0 %v696_v38  ;;  %v690_v39 = vpop.xlane.xlu0 %689  ;;  %v694_v40 = vpop.xlane.xlu1 %693 }
0x10be   : > { %v691_v41 = vsel %vm683_vm1, %v690_v39, %v669_v27  ;;  %v695_v43 = vsel %vm683_vm1, %v694_v40, %v673_v28 }
0x10bf   : > { %v709_v45 = vmul.f32 %v701_v33, %v691_v41  ;;  %v713_v46 = vmul.f32 %v701_v33, %v695_v43 }
0x10c1   : > { %710 = vadd.xlane.f32.xlu0 %v709_v45  ;;  %714 = vadd.xlane.f32.xlu1 %v713_v46 }
0x10da   : > { %v707_v47 = vpop.xlane.xlu1 %706 }
0x10db   : > { %v708_v49 = vsel %vm704_vm2, %v707_v47, %v687_v34 }
0x10dc   : > { %v722_v51 = vmul.f32 %v1131_v44, %v708_v49 }
0x10de   : > { %v724_v53 = vsel %vm723_vm3, %v708_v49, %v722_v51 }
0x10df   : > { %790 = vst [vmem:[%s754_s24] sm:$0xff] %v724_v53 }
0x1146   : > { %v698_v54 = vpop.xlane.xlu0 %697 }
0x1147   : > { %v699_v55 = vsel %vm683_vm1, %v698_v54, %v677_v37 }
0x1148   : > { %v717_v56 = vmul.f32 %v701_v33, %v699_v55 }
0x114a   : > { %718 = vadd.xlane.f32.xlu0 %v717_v56  ;;  %v711_v58 = vpop.xlane.xlu0 %710  ;;  %v715_v60 = vpop.xlane.xlu1 %714 }
0x114b   : > { %v712_v6 = vsel %vm704_vm2, %v711_v58, %v691_v41  ;;  %v716_v52 = vsel %vm704_vm2, %v715_v60, %v695_v43 }
0x114c   : > { %v727_v44 = vmul.f32 %v1061_v59, %v712_v6  ;;  %v733_v42 = vmul.f32 %v1017_v50, %v716_v52 }
0x114e   : > { %v729_v61 = vsel %vm728_vm5, %v712_v6, %v727_v44  ;;  %v735_v62 = vsel %vm734_vm4, %v716_v52, %v733_v42 }
0x114f   : > { %792 = vst [vmem:[%s754_s24 + $0x8] sm:$0xff] %v729_v61  ;;  %794 = vst [vmem:[%s754_s24 + $0x10] sm:$0xff] %v735_v62 }
0x11d3   : > { %v719_v63 = vpop.xlane.xlu0 %718 }
0x11d4   : > { %v720_v0 = vsel %vm704_vm2, %v719_v63, %v699_v55 }
0x11d5   : > { %v739_v1 = vmul.f32 %v998_v12, %v720_v0 }
0x11d7   : > { %v741_v2 = vsel %vm740_vm6, %v720_v0, %v739_v1 }
0x11d8   : > { %796 = vst [vmem:[%s754_s24 + $0x18] sm:$0xff] %v741_v2 }
0x11d9 PF: > { %s7_s8 = sadd.s32 1, %s941_s8   ;;  %s1241_s6 = smov %s937_s7 }
0x11da   : > { %p4_p5 = scmp.ge.s32.totalorder %s7_s8, 6   ;;  %s1242_s7 = smov %s1244_s10 }
0x11dc   :  { %6 = sbr.rel (!%p4_p5) target bundleno = 2 (0x2), region = 157 }

// kernel: metaqda_forward.5
= control target key start
LH: loop header
LB: loop body
LE: loop exit
PB: predicated region body
PF: predicated region fallthrough
CT: control target
= control target key end

     0   :  { %s1430_s21 = smov 0   ;;  %s1432_s22 = smov 0   ;;  %s1631_s0 = inlined_call_operand.vmem [shape: f32[8,128], index: 0, kind: input, shape index: {}]   ;;  %s1632_s1 = inlined_call_operand.vmem [shape: bf16[128,512], index: 1, kind: input, shape index: {}]   ;;  %s1633_s2 = inlined_call_operand.vmem [shape: f32[2,2,128], index: 2, kind: input, shape index: {}]   ;;  %s1634_s3 = inlined_call_operand.vmem [shape: f32[2,1,2], index: 3, kind: input, shape index: {}]   ;;  %s1635_s4 = inlined_call_operand.vmem [shape: f32[2,1,2], index: 4, kind: input, shape index: {}]   ;;  %s1636_s5 = inlined_call_operand.vmem [shape: f32[2,1,2], index: 5, kind: input, shape index: {}]   ;;  %s1637_s6 = inlined_call_operand.vmem [shape: f32[2,8,2], index: 6, kind: output, shape index: {}]  }
   0x1   :  { %s1434_s23 = smov 0   ;;  %s1436_s24 = smov 0  }
   0x2   :  { %s1438_s25 = smov 0  }
   0x3 LB: > { %s28_s26 = sadd.s32 1, %s1383_s24  ;;  %p68_p1 = scmp.ne.s32.totalorder %s1375_s22, %s1371_s21  ;;  %s1387_s25 = sphi %s1438_s25, %s16_s25   ;;  %s1383_s24 = sphi %s1436_s24, %s1641_s24   ;;  %s1379_s23 = sphi %s1434_s23, %s1640_s23   ;;  %s1375_s22 = sphi %s1432_s22, %s1639_s22   ;;  %s1371_s21 = sphi %s1430_s21, %s1638_s21  }
   0x4   : > { %p30_p0 = scmp.ge.s32.totalorder %s28_s26, 2  ;;  %p69_p2 = scmp.eq.s32.totalorder %s1387_s25, 0 }
   0x5   : > { %s61_s28 = sadd.s32 1, %s1375_s22  ;;  %p1222_p5 = scmp.ge.s32.totalorder %s1387_s25, 2 }
   0x6   : > { %s1643_s26 = smov (%p30_p0, %s28_s26), 0  ;;  %p70_p3 = por %p69_p2, %p68_p1 }
   0x7   : > { %s58_s27 = ssub.s32 %s1383_s24, %s1643_s26  ;;  %233 = sbr.rel (%p1222_p5) target bundleno = 24 (0x18), region = 20 }
   0x8   : > { %p59_p4 = scmp.eq.s32.totalorder %s58_s27, 0 }
   0xa   : > { %s1465_s29 = scalar_select %p59_p4, %s1375_s22, %s61_s28  }
   0xc   : > { %236 = sbr.rel (!%p70_p3) target bundleno = 24 (0x18), region = 24  ;;  %s238_s30 = sand.u32 (%p70_p3), 1, %s1375_s22  }
   0xd   : > { %s1250_s7 = sshll.u32 (%p70_p3), %s1383_s24, 3  ;;  %s1223_s8 = sshll.u32 (%p70_p3), %s238_s30, 7 }
   0xe   : > { %s1473_s11 = scalar_lea.vmem (%p70_p3), %s1632_s1, %s1250_s7  ;;  %s240_s12 = scalar_lea.vmem (%p70_p3), [#allocation2], %s1223_s8 }
   0xf   : > { %v302_v0 = vld [vmem:[%s1473_s11] sm:$0xff] (%p70_p3)  ;;  %v304_v1 = vld [vmem:[%s1473_s11 + $0x10] sm:$0xff] (%p70_p3) }
  0x10   : > { %v306_v2 = vld [vmem:[%s1473_s11 + $0x20] sm:$0xff] (%p70_p3)  ;;  %303 = vst [vmem:[%s240_s12] sm:$0xff] (%p70_p3), %v302_v0  ;;  %305 = vst [vmem:[%s240_s12 + $0x8] sm:$0xff] (%p70_p3), %v304_v1  ;;  %v308_v3 = vld [vmem:[%s1473_s11 + $0x30] sm:$0xff] (%p70_p3) }
  0x11   : > { %307 = vst [vmem:[%s240_s12 + $0x10] sm:$0xff] %v306_v2  ;;  %v310_v4 = vld [vmem:[%s1473_s11 + $0x40] sm:$0xff]  ;;  %v312_v5 = vld [vmem:[%s1473_s11 + $0x50] sm:$0xff]  ;;  %309 = vst [vmem:[%s240_s12 + $0x18] sm:$0xff] %v308_v3 }
  0x12   : > { %311 = vst [vmem:[%s240_s12 + $0x20] sm:$0xff] %v310_v4  ;;  %313 = vst [vmem:[%s240_s12 + $0x28] sm:$0xff] %v312_v5  ;;  %v314_v6 = vld [vmem:[%s1473_s11 + $0x60] sm:$0xff]  ;;  %v316_v7 = vld [vmem:[%s1473_s11 + $0x70] sm:$0xff] }
  0x13   : > { %v318_v8 = vld [vmem:[%s1473_s11 + $0x80] sm:$0xff]  ;;  %315 = vst [vmem:[%s240_s12 + $0x30] sm:$0xff] %v314_v6  ;;  %317 = vst [vmem:[%s240_s12 + $0x38] sm:$0xff] %v316_v7  ;;  %v320_v9 = vld [vmem:[%s1473_s11 + $0x90] sm:$0xff] }
  0x14   : > { %319 = vst [vmem:[%s240_s12 + $0x40] sm:$0xff] %v318_v8  ;;  %v322_v10 = vld [vmem:[%s1473_s11 + $0xa0] sm:$0xff]  ;;  %v324_v11 = vld [vmem:[%s1473_s11 + $0xb0] sm:$0xff]  ;;  %321 = vst [vmem:[%s240_s12 + $0x48] sm:$0xff] %v320_v9 }
  0x15   : > { %323 = vst [vmem:[%s240_s12 + $0x50] sm:$0xff] %v322_v10  ;;  %325 = vst [vmem:[%s240_s12 + $0x58] sm:$0xff] %v324_v11  ;;  %v326_v12 = vld [vmem:[%s1473_s11 + $0xc0] sm:$0xff]  ;;  %v328_v13 = vld [vmem:[%s1473_s11 + $0xd0] sm:$0xff] }
  0x16   : > { %v330_v14 = vld [vmem:[%s1473_s11 + $0xe0] sm:$0xff]  ;;  %327 = vst [vmem:[%s240_s12 + $0x60] sm:$0xff] %v326_v12  ;;  %329 = vst [vmem:[%s240_s12 + $0x68] sm:$0xff] %v328_v13  ;;  %v332_v15 = vld [vmem:[%s1473_s11 + $0xf0] sm:$0xff] }
  0x17   : > { %331 = vst [vmem:[%s240_s12 + $0x70] sm:$0xff] %v330_v14  ;;  %333 = vst [vmem:[%s240_s12 + $0x78] sm:$0xff] %v332_v15 }
  0x18 PF: > { %p1226_p6 = scmp.ge.s32.totalorder %s1387_s25, 1  ;;  %p363_p7 = scmp.lt.s32.totalorder %s1387_s25, 3 }
  0x1a   : > { %p364_p8 = pnand %p1226_p6, %p363_p7 }
  0x1b   : > { %p423_p9 = scmp.lt.s32.totalorder (!%p364_p8), %s1379_s23, 1  ;;  %s370_s13 = sand.u32 (!%p364_p8), 1, %s1371_s21  }
  0x1c   : > { %367 = sbr.rel (%p364_p8) target bundleno = 597 (0x255), region = 78  ;;  %s1227_s14 = sshll.u32 (!%p364_p8), %s370_s13, 7 }
  0x1d   : > { %s1501_s16 = scalar_lea.vmem (!%p364_p8), [#allocation2], %s1227_s14 }
  0x21   : > { %v1389_v16 = vmov 0.0   ;;  %vm1390_vm0 = vmmov 0   ;;  %s1645_s23 = smov (!%p423_p9, %s1379_s23), 1  ;;  %v1391_v17 = vmov 0   ;;  %v1306_v18 = vld [vmem:[%s1501_s16 + $0x74] ss:$8 sps:$4 sm:$0xff]   ;;  %v587_v37 = vlaneseq }
  0x22   : > { %1253 = vmatprep.subr.mxu1 %v1389_v16  ;;  %1255 = vmatprep.mubr.msk.f32.mxu1 %vm1390_vm0, %v1389_v16  ;;  %s1228_s15 = sshll.u32 %s1645_s23, 1  ;;  %v1308_v19 = vld [vmem:[%s1501_s16 + $0x70] ss:$8 sps:$4 sm:$0xff]   ;;  %v1511_v21 = vld [vmem:[%s1631_s0] sm:$0xff]  ;;  %v1313_v24 = vld [vmem:[%s1501_s16 + $0x54] ss:$8 sps:$4 sm:$0xff]   ;;  %s435_s30 = scalar_lea.vmem %s1636_s5, %s1645_s23 }
  0x23   : > { %574 = vmatprep.mubr.bf16.mxu0 %v1391_v17  ;;  %1304 = vset.pattern.permute.xlu0 %v1391_v17  ;;  %s426_s19 = scalar_lea.vmem %s1633_s2, %s1228_s15  ;;  %v1310_v22 = vld [vmem:[%s1501_s16 + $0x64] ss:$8 sps:$4 sm:$0xff]   ;;  %v1312_v23 = vld [vmem:[%s1501_s16 + $0x60] ss:$8 sps:$4 sm:$0xff]   ;;  %v1315_v25 = vld [vmem:[%s1501_s16 + $0x50] ss:$8 sps:$4 sm:$0xff]   ;;  %v445_v36 = vpack.c.bf16 %v1511_v21, %v1511_v21  ;;  %s429_s9 = scalar_lea.vmem %s1634_s3, %s1645_s23  ;;  %v650_v9 = vcombine.high %v1511_v21, %v1511_v21 }
  0x24   : > { %1305 = vset.pattern.permute.xlu1 %v1391_v17  ;;  %v772_v20 = vld [vmem:[%s426_s19] sm:$0x3]  ;;  %542 = vmatprep.subr.bf16.mxu0 %v1306_v18  ;;  %v1316_v26 = vld [vmem:[%s1501_s16 + $0x44] ss:$8 sps:$4 sm:$0xff]   ;;  %v1319_v28 = vld [vmem:[%s1501_s16 + $0x34] ss:$8 sps:$4 sm:$0xff]   ;;  %s432_s12 = scalar_lea.vmem %s1635_s4, %s1645_s23 }
  0x25   : > { %1254 = vmatpush3.xpose.msra.mxu1 %v772_v20  ;;  %543 = vmatpush1.bf16.msra.mxu0 %v1308_v19  ;;  %v1318_v27 = vld [vmem:[%s1501_s16 + $0x40] ss:$8 sps:$4 sm:$0xff]   ;;  %v1321_v29 = vld [vmem:[%s1501_s16 + $0x30] ss:$8 sps:$4 sm:$0xff]   ;;  %v1322_v30 = vld [vmem:[%s1501_s16 + $0x24] ss:$8 sps:$4 sm:$0xff]  }
  0x26   : > { %544 = vmatprep.subr.bf16.mxu0 %v1310_v22  ;;  %v1324_v31 = vld [vmem:[%s1501_s16 + $0x20] ss:$8 sps:$4 sm:$0xff]   ;;  %v1325_v32 = vld [vmem:[%s1501_s16 + $0x14] ss:$8 sps:$4 sm:$0xff]   ;;  %v1327_v33 = vld [vmem:[%s1501_s16 + $0x10] ss:$8 sps:$4 sm:$0xff]  }
  0x27   : > { %v1328_v34 = vld [vmem:[%s1501_s16 + $0x4] ss:$8 sps:$4 sm:$0xff]   ;;  %v1330_v35 = vld [vmem:[%s1501_s16] ss:$8 sps:$4 sm:$0xff]   ;;  %v1531_v38 = vshrl.u32 %v587_v37, 7  ;;  %vm747_vm1 = vcmask 1041408  }
  0x28   : > { %1256 = vmatmul.mubr.f32.vlgmr.msra.gmra.mxu1 %v1511_v21  ;;  %v1540_v40 = vld [vmem:[%s435_s30] sm:$0x1]  ;;  %v1392_v57 = vmov 1966171168   ;;  %v1393_v60 = vmov 1983009808  }
  0x29   : > { %545 = vmatpush1.bf16.msra.mxu0 %v1312_v23  ;;  %v1538_v39 = vsub.s32 0, %v1531_v38  ;;  %v1246_v42 = vld [vmem:[%s429_s9] ss:$0 sm:$0xff]  ;;  %v854_v43 = vsub.s32 1, %v1531_v38  ;;  %v868_v49 = vsub.s32 3, %v1531_v38  ;;  %v861_v50 = vsub.s32 2, %v1531_v38 }
  0x2a   : > { %546 = vmatprep.subr.bf16.mxu0 %v1313_v24  ;;  %924 = vbcast.lane.b32.xlu1 %v1246_v42, 256  ;;  %v875_v53 = vsub.s32 4, %v1531_v38  ;;  %v882_v54 = vsub.s32 5, %v1531_v38  ;;  %v652_v58 = vunpack.c.l.s4 %v1392_v57  ;;  %v585_v61 = vunpack.c.l.s4 %v1393_v60  ;;  %s1229_s13 = sshll.u32 %s1645_s23, 3 }
  0x2b   : > { %v951_v41 = vrot.slane %v1540_v40, %v1538_v39  ;;  %v1394_v0 = vmov 1934713408   ;;  %vm1061_vm2 = vcmask 1041409   ;;  %vm1063_vm3 = vcmask 1042434   ;;  %s442_s16 = scalar_lea.vmem %s1637_s6, %s1229_s13 }
  0x2c   : > { %v653_v59 = vunpack.c.0.s8 %v652_v58  ;;  %v586_v63 = vunpack.c.0.s8 %v585_v61  ;;  %v616_v1 = vunpack.c.l.s4 %v1394_v0  ;;  %vm1065_vm4 = vcmask 1043459  }
  0x2d   : > { %547 = vmatpush1.bf16.msra.mxu0 %v1315_v25  ;;  %953 = vbcast.lane.b32.xlu0 %v951_v41, 256  ;;  %vm1067_vm5 = vcmask 1044484   ;;  %vm1069_vm6 = vcmask 1045509   ;;  %vm1071_vm7 = vcmask 1046534   ;;  %vm1073_vm8 = vcmask 1047559  }
  0x2e   : > { %548 = vmatprep.subr.bf16.mxu0 %v1316_v26  ;;  %v656_v62 = vsub.s32 %v653_v59, %v1531_v38  ;;  %v589_v3 = vsub.s32 %v586_v63, %v1531_v38  ;;  %v617_v4 = vunpack.c.0.s8 %v616_v1  ;;  %vm1084_vm9 = vcmask 15360  }
  0x30   : > { %v657_v2 = vrot.slane %v1511_v21, %v656_v62  ;;  %v620_v14 = vsub.s32 %v617_v4, %v1531_v38  ;;  %v664_v25 = vrot.slane %v650_v9, %v656_v62 }
  0x31   : > { %549 = vmatpush1.bf16.msra.mxu0 %v1318_v27 }
  0x32   : > { %550 = vmatprep.subr.bf16.mxu0 %v1319_v28  ;;  %v673_v7 = vrot.slane %v657_v2, %v656_v62  ;;  %v665_v8 = vcombine.high %v657_v2, %v657_v2 }
  0x34   : > { %v702_v18 = vrot.slane %v673_v7, %v1538_v39  ;;  %v687_v19 = vrot.slane %v665_v8, %v656_v62  ;;  %v695_v21 = vcombine.high %v673_v7, %v673_v7  ;;  %v896_v8 = vsub.s32 7, %v1531_v38 }
  0x35   : > { %551 = vmatpush1.bf16.msra.mxu0 %v1321_v29 }
  0x36   : > { %552 = vmatprep.subr.bf16.mxu0 %v1322_v30  ;;  %v706_v29 = vrot.slane %v687_v19, %v1538_v39 }
  0x39   : > { %553 = vmatpush1.bf16.msra.mxu0 %v1324_v31  ;;  %v680_v31 = vrot.slane %v664_v25, %v656_v62 }
  0x3a   : > { %554 = vmatprep.subr.bf16.mxu0 %v1325_v32 }
  0x3b   : > { %v718_v42 = vrot.slane %v680_v31, %v1538_v39 }
  0x3d   : > { %555 = vmatpush1.bf16.msra.mxu0 %v1327_v33  ;;  %v710_v33 = vrot.slane %v695_v21, %v1538_v39 }
  0x3e   : > { %556 = vmatprep.subr.bf16.mxu0 %v1328_v34  ;;  %v697_v34 = vcombine.high %v687_v19, %v687_v19 }
  0x41   : > { %557 = vmatpush1.bf16.msra.mxu0 %v1330_v35 }
  0x44   : > { %575 = vmatmul.mubr.bf16.vlgmr.msra.gmra.mxu0 %v445_v36 }
  0xe8   : > { %v839_v44 = vpop.f32.mrf.mxu1 }
  0xe9   : > { %v1549_v45 = vmul.f32 2.0, %v839_v44  ;;  %v666_v44 = vcombine.high %v664_v25, %v664_v25 }
  0xea   : > { %v1257_v46 = vpop.f32.mrf.mxu1 }
  0xeb   : > { %v855_v47 = vrot.slane %v1549_v45, %v854_v43  ;;  %v848_v48 = vrot.slane %v1549_v45, %v1538_v39  ;;  %v869_v51 = vrot.slane %v1549_v45, %v868_v49  ;;  %v862_v52 = vrot.slane %v1549_v45, %v861_v50 }
  0xec   : > { %v876_v55 = vrot.slane %v1549_v45, %v875_v53  ;;  %v883_v56 = vrot.slane %v1549_v45, %v882_v54  ;;  %v696_v43 = vcombine.high %v680_v31, %v680_v31  ;;  %v714_v49 = vrot.slane %v697_v34, %v1538_v39 }
  0xed   : > { %857 = vbcast.lane.b32.xlu0 %v855_v47, 256  ;;  %850 = vbcast.lane.b32.xlu1 %v848_v48, 256  ;;  %v897_v9 = vrot.slane %v1549_v45, %v896_v8 }
  0xf1   : > { %871 = vbcast.lane.b32.xlu0 %v869_v51, 256  ;;  %864 = vbcast.lane.b32.xlu1 %v862_v52, 256  ;;  %v694_v52 = vrot.slane %v666_v44, %v656_v62 }
  0xf3   : > { %v698_v58 = vcombine.high %v694_v52, %v694_v52  ;;  %v722_v63 = vrot.slane %v694_v52, %v1538_v39 }
  0xf5   : > { %878 = vbcast.lane.b32.xlu0 %v876_v55, 256  ;;  %885 = vbcast.lane.b32.xlu1 %v883_v56, 256  ;;  %v726_v56 = vrot.slane %v696_v43, %v1538_v39  ;;  %v730_v2 = vrot.slane %v698_v58, %v1538_v39 }
 0x104   : > { %v576_v5 = vpop.f32.mrf.mxu0 }
 0x105   : > { %v590_v6 = vrot.slane %v576_v5, %v589_v3  ;;  %v583_v11 = vcombine.high %v576_v5, %v1389_v16 }
 0x106   : > { %v578_v10 = vpop.f32.mrf.mxu0 }
 0x107   : > { %v598_v12 = vcombine.high %v578_v10, %v1389_v16  ;;  %v605_v13 = vrot.slane %v578_v10, %v589_v3  ;;  %v597_v22 = vrot.slane %v583_v11, %v589_v3  ;;  %v1594_v10 = vpop.permute.xlu1 %924 }
 0x108   : > { %v580_v15 = vpop.f32.mrf.mxu0 }
 0x109   : > { %v613_v17 = vcombine.low %v590_v6, %v605_v13  ;;  %v612_v23 = vrot.slane %v598_v12, %v589_v3  ;;  %v614_v26 = vcombine.high %v590_v6, %v605_v13  ;;  %v889_v6 = vsub.s32 6, %v1531_v38 }
 0x10a   : > { %v581_v20 = vpop.f32.mrf.mxu0 }
 0x10b   : > { %v621_v24 = vrot.slane %v613_v17, %v620_v14  ;;  %v629_v30 = vcombine.low %v597_v22, %v612_v23  ;;  %v628_v32 = vrot.slane %v614_v26, %v620_v14  ;;  %v630_v46 = vcombine.high %v597_v22, %v612_v23 }
 0x10c   : > { %v890_v7 = vrot.slane %v1549_v45, %v889_v6 }
 0x10d   : > { %v739_v27 = vmul.f32 %v702_v18, %v621_v24  ;;  %v645_v28 = vcombine.high %v621_v24, %v1389_v16  ;;  %v637_v41 = vrot.slane %v629_v30, %v620_v14  ;;  %v741_v47 = vmul.f32 %v710_v33, %v628_v32 }
 0x10e   : > { %v646_v48 = vcombine.high %v628_v32, %v1389_v16  ;;  %v644_v55 = vrot.slane %v630_v46, %v620_v14 }
 0x10f   : > { %v748_v35 = vsel %vm747_vm1, %v739_v27, 0.0  ;;  %v740_v36 = vmul.f32 %v706_v29, %v645_v28  ;;  %v743_v51 = vmul.f32 %v718_v42, %v637_v41  ;;  %v754_v53 = vsel %vm747_vm1, %v741_v47, 0.0 }
 0x110   : > { %v742_v54 = vmul.f32 %v714_v49, %v646_v48  ;;  %v745_v60 = vmul.f32 %v726_v56, %v644_v55  ;;  %v647_v61 = vcombine.high %v637_v41, %v1389_v16  ;;  %v648_v1 = vcombine.high %v644_v55, %v1389_v16  ;;  %v954_v16 = vpop.permute.xlu0 %953 }
 0x111   : > { %v751_v50 = vsel %vm747_vm1, %v740_v36, 0.0  ;;  %v760_v57 = vsel %vm747_vm1, %v743_v51, 0.0  ;;  %1331 = vrcp.f32 %v954_v16 }
 0x112   : > { %v757_v59 = vsel %vm747_vm1, %v742_v54, 0.0  ;;  %v766_v62 = vsel %vm747_vm1, %v745_v60, 0.0  ;;  %v744_v0 = vmul.f32 %v722_v63, %v647_v61  ;;  %v746_v4 = vmul.f32 %v730_v2, %v648_v1 }
 0x114   : > { %749 = vadd.xlane.f32.xlu0 %v748_v35  ;;  %v763_v3 = vsel %vm747_vm1, %v744_v0, 0.0  ;;  %v769_v5 = vsel %vm747_vm1, %v746_v4, 0.0 }
 0x118   : > { %752 = vadd.xlane.f32.xlu0 %v751_v50 }
 0x119   : > { %755 = vadd.xlane.f32.xlu1 %v754_v53 }
 0x11c   : > { %761 = vadd.xlane.f32.xlu0 %v760_v57 }
 0x11d   : > { %758 = vadd.xlane.f32.xlu1 %v757_v59 }
 0x11e   : > { %v1332_v45 = vpop.eup %1331 }
 0x121   : > { %767 = vadd.xlane.f32.xlu1 %v766_v62 }
 0x125   : > { %764 = vadd.xlane.f32.xlu1 %v763_v3 }
 0x129   : > { %770 = vadd.xlane.f32.xlu1 %v769_v5 }
 0x132   : > { %892 = vbcast.lane.b32.xlu0 %v890_v7, 256 }
 0x13a   : > { %899 = vbcast.lane.b32.xlu1 %v897_v9, 256 }
 0x15f   : > { %v858_v11 = vpop.permute.xlu0 %857  ;;  %v851_v12 = vpop.permute.xlu1 %850 }
 0x163   : > { %v872_v13 = vpop.permute.xlu0 %871  ;;  %v865_v14 = vpop.permute.xlu1 %864 }
 0x167   : > { %v879_v15 = vpop.permute.xlu0 %878  ;;  %v886_v18 = vpop.permute.xlu1 %885 }
 0x19d   : > { %v750_v17 = vpop.xlane.xlu0 %749 }
 0x19e   : > { %v909_v19 = vsub.f32 %v750_v17, %v851_v12 }
 0x1a0   : > { %v927_v20 = vadd.f32 %v1594_v10, %v909_v19 }
 0x1a1   : > { %v753_v22 = vpop.xlane.xlu0 %752 }
 0x1a2   : > { %v935_v23 = vmax.f32 %v927_v20, 0.0  ;;  %v910_v24 = vsub.f32 %v753_v22, %v858_v11  ;;  %v756_v25 = vpop.xlane.xlu1 %755 }
 0x1a3   : > { %v911_v26 = vsub.f32 %v756_v25, %v865_v14 }
 0x1a4   : > { %v957_v21 = vmul.f32 %v1332_v45, %v935_v23  ;;  %v928_v27 = vadd.f32 %v1594_v10, %v910_v24 }
 0x1a5   : > { %v929_v28 = vadd.f32 %v1594_v10, %v911_v26  ;;  %v762_v29 = vpop.xlane.xlu0 %761 }
 0x1a6   : > { %v965_v30 = vadd.f32 1.0, %v957_v21  ;;  %v936_v31 = vmax.f32 %v928_v27, 0.0  ;;  %v913_v32 = vsub.f32 %v762_v29, %v879_v15  ;;  %v759_v33 = vpop.xlane.xlu1 %758 }
 0x1a7   : > { %v937_v34 = vmax.f32 %v929_v28, 0.0  ;;  %v912_v35 = vsub.f32 %v759_v33, %v872_v13 }
 0x1a8   : > { %1333 = vlog2.f32 %v965_v30  ;;  %v958_v36 = vmul.f32 %v1332_v45, %v936_v31  ;;  %v931_v41 = vadd.f32 %v1594_v10, %v913_v32 }
 0x1a9   : > { %v959_v42 = vmul.f32 %v1332_v45, %v937_v34  ;;  %v930_v43 = vadd.f32 %v1594_v10, %v912_v35  ;;  %v893_v44 = vpop.permute.xlu0 %892  ;;  %v945_v35 = vadd.f32 32.0, %v1540_v40 }
 0x1aa   : > { %v966_v46 = vadd.f32 1.0, %v958_v36  ;;  %v939_v47 = vmax.f32 %v931_v41, 0.0  ;;  %v768_v48 = vpop.xlane.xlu1 %767 }
 0x1ab   : > { %v967_v49 = vadd.f32 1.0, %v959_v42  ;;  %v938_v50 = vmax.f32 %v930_v43, 0.0  ;;  %v915_v51 = vsub.f32 %v768_v48, %v893_v44 }
 0x1ac   : > { %v961_v52 = vmul.f32 %v1332_v45, %v939_v47 }
 0x1ad   : > { %1335 = vlog2.f32 %v967_v49  ;;  %v960_v53 = vmul.f32 %v1332_v45, %v938_v50  ;;  %v933_v54 = vadd.f32 %v1594_v10, %v915_v51 }
 0x1ae   : > { %1337 = vlog2.f32 %v966_v46  ;;  %v765_v55 = vpop.xlane.xlu1 %764  ;;  %v969_v56 = vadd.f32 1.0, %v961_v52  ;;  %v946_v46 = vmul.f32 0.5, %v945_v35 }
 0x1af   : > { %v968_v57 = vadd.f32 1.0, %v960_v53  ;;  %v941_v58 = vmax.f32 %v933_v54, 0.0  ;;  %v914_v59 = vsub.f32 %v765_v55, %v886_v18  ;;  %v1247_v53 = vld [vmem:[%s432_s12] ss:$0 sm:$0xff] }
 0x1b0   : > { %v993_v50 = vrot.slane %v946_v46, %v1538_v39 }
 0x1b1   : > { %1339 = vlog2.f32 %v968_v57  ;;  %v963_v60 = vmul.f32 %v1332_v45, %v941_v58  ;;  %v932_v61 = vadd.f32 %v1594_v10, %v914_v59 }
 0x1b2   : > { %v771_v63 = vpop.xlane.xlu1 %770  ;;  %1341 = vlog2.f32 %v969_v56 }
 0x1b3   : > { %v971_v62 = vadd.f32 1.0, %v963_v60  ;;  %v940_v0 = vmax.f32 %v932_v61, 0.0 }
 0x1b5   : > { %v1334_v1 = vpop.eup %1333  ;;  %v962_v2 = vmul.f32 %v1332_v45, %v940_v0  ;;  %1343 = vlog2.f32 %v971_v62 }
 0x1b6   : > { %v900_v3 = vpop.permute.xlu1 %899  ;;  %v974_v4 = vmul.f32 0.6931472, %v1334_v1 }
 0x1b7   : > { %v970_v5 = vadd.f32 1.0, %v962_v2  ;;  %v916_v6 = vsub.f32 %v771_v63, %v900_v3 }
 0x1b8   : > { %1004 = vperm.xlu0 %1304, %v974_v4  }
 0x1b9   : > { %1345 = vlog2.f32 %v970_v5  ;;  %v934_v7 = vadd.f32 %v1594_v10, %v916_v6 }
 0x1ba   : > { %v1336_v8 = vpop.eup %1335 }
 0x1bb   : > { %v1338_v9 = vpop.eup %1337  ;;  %v942_v16 = vmax.f32 %v934_v7, 0.0  ;;  %v978_v11 = vmul.f32 0.6931472, %v1336_v8 }
 0x1bc   : > { %v976_v17 = vmul.f32 0.6931472, %v1338_v9 }
 0x1bd   : > { %v964_v12 = vmul.f32 %v1332_v45, %v942_v16  ;;  %1010 = vperm.xlu1 %1305, %v978_v11   ;;  %v1028_v45 = vand.u32 127, %v587_v37 }
 0x1be   : > { %v1340_v13 = vpop.eup %1339 }
 0x1bf   : > { %v972_v14 = vadd.f32 1.0, %v964_v12  ;;  %v980_v15 = vmul.f32 0.6931472, %v1340_v13  ;;  %v1342_v18 = vpop.eup %1341  ;;  %v1031_v21 = vsub.s32 %v1028_v45, %v1531_v38 }
 0x1c0   : > { %v982_v19 = vmul.f32 0.6931472, %v1342_v18 }
 0x1c1   : > { %1347 = vlog2.f32 %v972_v14  ;;  %1013 = vperm.xlu0 %1304, %v980_v15   ;;  %1007 = vperm.xlu1 %1305, %v976_v17  }
 0x1c2   : > { %v1344_v20 = vpop.eup %1343 }
 0x1c3   : > { %v986_v23 = vmul.f32 0.6931472, %v1344_v20 }
 0x1c5   : > { %1016 = vperm.xlu1 %1305, %v982_v19  }
 0x1c6   : > { %v1346_v22 = vpop.eup %1345 }
 0x1c7   : > { %v984_v10 = vmul.f32 0.6931472, %v1346_v22 }
 0x1c9   : > { %1022 = vperm.xlu1 %1305, %v986_v23   ;;  %1019 = vperm.xlu0 %1304, %v984_v10  }
 0x1ce   : > { %v1348_v24 = vpop.eup %1347 }
 0x1cf   : > { %v988_v25 = vmul.f32 0.6931472, %v1348_v24 }
 0x1d1   : > { %1025 = vperm.xlu0 %1304, %v988_v25  }
 0x233   : > { %v1005_v27 = vpop.permute.xlu0 %1004 }
 0x234   : > { %v1032_v30 = vrot.slane %v1005_v27, %v1031_v21 }
 0x238   : > { %v1011_v26 = vpop.permute.xlu1 %1010 }
 0x239   : > { %v1040_v34 = vrot.slane %v1011_v26, %v1031_v21 }
 0x23c   : > { %v1008_v28 = vpop.permute.xlu1 %1007  ;;  %v1014_v31 = vpop.permute.xlu0 %1013 }
 0x23d   : > { %v1036_v29 = vrot.slane %v1008_v28, %v1031_v21  ;;  %v1044_v37 = vrot.slane %v1014_v31, %v1031_v21 }
 0x23f   : > { %v1062_v32 = vsel %vm1061_vm2, %v1036_v29, %v1032_v30 }
 0x240   : > { %v1017_v33 = vpop.permute.xlu1 %1016  ;;  %v1064_v36 = vsel %vm1063_vm3, %v1040_v34, %v1062_v32 }
 0x241   : > { %v1048_v42 = vrot.slane %v1017_v33, %v1031_v21  ;;  %v1066_v43 = vsel %vm1065_vm4, %v1044_v37, %v1064_v36 }
 0x243   : > { %v1068_v47 = vsel %vm1067_vm5, %v1048_v42, %v1066_v43 }
 0x244   : > { %v1020_v41 = vpop.permute.xlu0 %1019  ;;  %v1023_v44 = vpop.permute.xlu1 %1022 }
 0x245   : > { %v1052_v38 = vrot.slane %v1020_v41, %v1031_v21  ;;  %v1056_v48 = vrot.slane %v1023_v44, %v1031_v21 }
 0x247   : > { %v1070_v49 = vsel %vm1069_vm6, %v1052_v38, %v1068_v47 }
 0x248   : > { %v1072_v52 = vsel %vm1071_vm7, %v1056_v48, %v1070_v49 }
 0x24c   : > { %v1026_v40 = vpop.permute.xlu0 %1025 }
 0x24d   : > { %v1060_v51 = vrot.slane %v1026_v40, %v1031_v21 }
 0x24f   : > { %v1074_v54 = vsel %vm1073_vm8, %v1060_v51, %v1072_v52 }
 0x250   : > { %v1076_v55 = vmul.f32 %v1074_v54, %v993_v50 }
 0x252   : > { %v1083_v56 = vsub.f32 %v1247_v53, %v1076_v55 }
 0x254   : > { %1085 = vst.msk [vmem:[%s442_s16] sm:$0xff] %vm1084_vm9, %v1083_v56 }
 0x255 PF: > { %s16_s25 = sadd.s32 1, %s1387_s25   ;;  %s1638_s21 = smov %s1375_s22 }
 0x256   : > { %p13_p10 = scmp.ge.s32.totalorder %s16_s25, 4   ;;  %s1639_s22 = smov %s1465_s29 }
 0x257   : > { %s1640_s23 = smov %s1383_s24  ;;  %s1641_s24 = smov %s1643_s26 }
 0x258   :  { %15 = sbr.rel (!%p13_p10) target bundleno = 3 (0x3), region = 132 }

</bundles_post_ra>
